<compile_context>
chip_gen: v7x
topology: tpu7x:2x2x1
jax: 0.10.0
libtpu: 0.0.40
codegen_flags: <defaults>
</compile_context>

<pallas_src>
import functools

import jax
import jax.numpy as jnp
from jax.experimental import pallas as pl
from jax.experimental.pallas import tpu as pltpu


def _wb_kernel(xp_ref, wc_ref, shift_ref, w1_ref, b1_ref, w2_ref, b2_ref,
               o_ref, *, H, W, B):
    """Processes B batch elements per grid step.

    xp_ref   : (B, H+2, W+2, Cin)  padded input tile (bf16)
    wc_ref   : (9, Cin, Cout)      3x3 conv weight, BN scale folded in (bf16)
    shift_ref: (1, Cout)           folded BatchNorm shift (f32)
    w1/b1    : (Cout, Cr), (1, Cr) 1x1 squeeze conv (f32)
    w2/b2    : (Cr, Cout), (1, Cout) 1x1 excite conv (f32)
    o_ref    : (B, Cout, H*W)      channel-major, lane-dense output (f32)
    """
    HW = H * W
    Cout = o_ref.shape[1]

    xp = xp_ref[...]                                   # (B, H+2, W+2, Cin)

    # Conv3x3 as 9 accumulated shifted-view matmuls (f32 accumulator, bf16
    # operands). Rows = B*H*W so the MXU M-dim is well filled.
    acc = jnp.zeros((B * HW, Cout), jnp.float32)
    k = 0
    for dy in range(3):
        for dx in range(3):
            patch = xp[:, dy:dy + H, dx:dx + W, :].reshape(B * HW, -1)
            acc = acc + jnp.dot(patch, wc_ref[k],
                                preferred_element_type=jnp.float32)
            k += 1

    # Folded BN shift + ReLU (scale already folded into the weights).
    out = jnp.maximum(acc + shift_ref[...], 0.0)       # (B*HW, Cout) f32

    # Global avg / max pools per batch element (mean = sum * const).
    inv_hw = 1.0 / float(HW)
    obs, avg_rows, max_rows = [], [], []
    for b in range(B):
        ob = out[b * HW:(b + 1) * HW, :]               # (HW, Cout)
        obs.append(ob)
        avg_rows.append(jnp.sum(ob, axis=0, keepdims=True) * inv_hw)
        max_rows.append(jnp.max(ob, axis=0, keepdims=True))
    pooled = jnp.concatenate(avg_rows + max_rows, axis=0)   # (2B, Cout)

    # Single squeeze-excite pass over the stacked avg/max rows.
    h = jnp.maximum(
        jnp.dot(pooled, w1_ref[...], preferred_element_type=jnp.float32)
        + b1_ref[...], 0.0)                            # (2B, Cr)
    a = (jnp.dot(h, w2_ref[...], preferred_element_type=jnp.float32)
         + b2_ref[...])                                # (2B, Cout)
    att = jax.nn.sigmoid(a[:B, :] + a[B:, :])          # (B, Cout)

    # Scale and write channel-major (Cout, HW): lane-dense stores, and the
    # result already matches the NCHW output layout (no wrapper transpose).
    for b in range(B):
        o_ref[b] = (obs[b] * att[b:b + 1, :]).T        # (Cout, HW)


def wb_forward(x_nchw, params, *, block_batch=8, conv_dtype=jnp.bfloat16):
    """Pallas implementation of WB.forward. x_nchw: (N, Cin, H, W) float32."""
    wc, gamma, beta, rmean, rvar, w1, b1, w2, b2 = params
    eps = 1e-5
    N, Cin, H, W = x_nchw.shape
    Cout = wc.shape[0]
    Cr = w1.shape[0]

    # Fold BatchNorm (inference) into the conv weights + a per-channel shift.
    scale = gamma / jnp.sqrt(rvar + eps)                     # (Cout,)
    shift = (beta - rmean * scale).reshape(1, Cout).astype(jnp.float32)

    # torch conv weight (Cout, Cin, 3, 3): fold scale in f32, then reshape to
    # (9, Cin, Cout) with k = dy*3 + dx, and cast to bf16 once.
    wc_folded = wc * scale[:, None, None, None]
    wc_k = jnp.transpose(wc_folded, (2, 3, 1, 0)).reshape(9, Cin, Cout)
    wc_k = wc_k.astype(conv_dtype)

    # 1x1 conv weights (O, I, 1, 1) -> (I, O) matmul matrices (kept f32).
    w1_mat = jnp.transpose(w1[:, :, 0, 0], (1, 0)).astype(jnp.float32)  # (Cout, Cr)
    b1_row = b1.reshape(1, Cr).astype(jnp.float32)
    w2_mat = jnp.transpose(w2[:, :, 0, 0], (1, 0)).astype(jnp.float32)  # (Cr, Cout)
    b2_row = b2.reshape(1, Cout).astype(jnp.float32)

    # NCHW -> NHWC, zero-pad spatially by 1 (conv padding=1), cast to bf16.
    x = jnp.transpose(x_nchw, (0, 2, 3, 1)).astype(conv_dtype)
    xp = jnp.pad(x, ((0, 0), (1, 1), (1, 1), (0, 0)))

    # Batch blocking: B elements per grid step (pad batch if needed).
    B = min(block_batch, N)
    pad_n = (-N) % B
    if pad_n:
        xp = jnp.pad(xp, ((0, pad_n), (0, 0), (0, 0), (0, 0)))
    Ng = xp.shape[0]

    kernel = functools.partial(_wb_kernel, H=H, W=W, B=B)

    out_cm = pl.pallas_call(
        kernel,
        out_shape=jax.ShapeDtypeStruct((Ng, Cout, H * W), jnp.float32),
        grid=(Ng // B,),
        in_specs=[
            pl.BlockSpec((B, H + 2, W + 2, Cin), lambda n: (n, 0, 0, 0)),
            pl.BlockSpec((9, Cin, Cout), lambda n: (0, 0, 0)),
            pl.BlockSpec((1, Cout), lambda n: (0, 0)),
            pl.BlockSpec((Cout, Cr), lambda n: (0, 0)),
            pl.BlockSpec((1, Cr), lambda n: (0, 0)),
            pl.BlockSpec((Cr, Cout), lambda n: (0, 0)),
            pl.BlockSpec((1, Cout), lambda n: (0, 0)),
        ],
        out_specs=pl.BlockSpec((B, Cout, H * W), lambda n: (n, 0, 0)),
        compiler_params=pltpu.CompilerParams(
            dimension_semantics=("parallel",),
            vmem_limit_bytes=48 * 1024 * 1024),
    )(xp, wc_k, shift, w1_mat, b1_row, w2_mat, b2_row)

    # Output is already channel-major: just drop batch padding and unflatten.
    return out_cm[:N].reshape(N, Cout, H, W)


def wb_reference(x_nchw, params):
    """Pure-JAX reference (mirrors the PyTorch forward) for validation."""
    wc, gamma, beta, rmean, rvar, w1, b1, w2, b2 = params
    eps = 1e-5
    scale = gamma / jnp.sqrt(rvar + eps)
    shift = beta - rmean * scale
    conv = jax.lax.conv_general_dilated(
        x_nchw, wc, window_strides=(1, 1), padding="SAME",
        dimension_numbers=("NCHW", "OIHW", "NCHW"))
    out = jnp.maximum(conv * scale[None, :, None, None]
                      + shift[None, :, None, None], 0.0)
    avg = jnp.mean(out, axis=(2, 3), keepdims=True)
    mx = jnp.max(out, axis=(2, 3), keepdims=True)

    def se(v):
        h = jnp.maximum(
            jnp.einsum("nchw,oc->nohw", v, w1[:, :, 0, 0])
            + b1[None, :, None, None], 0.0)
        return (jnp.einsum("nchw,oc->nohw", h, w2[:, :, 0, 0])
                + b2[None, :, None, None])

    att = jax.nn.sigmoid(se(avg) + se(mx))
    return out * att


def make_params(key, inc, outc, reduction_ratio=8):
    cr = outc // reduction_ratio
    ks = jax.random.split(key, 9)
    wc = jax.random.normal(ks[0], (outc, inc, 3, 3), jnp.float32) / jnp.sqrt(9.0 * inc)
    gamma = jax.random.uniform(ks[1], (outc,), jnp.float32, 0.5, 1.5)
    beta = 0.1 * jax.random.normal(ks[2], (outc,), jnp.float32)
    rmean = 0.1 * jax.random.normal(ks[3], (outc,), jnp.float32)
    rvar = jax.random.uniform(ks[4], (outc,), jnp.float32, 0.5, 1.5)
    w1 = jax.random.normal(ks[5], (cr, outc, 1, 1), jnp.float32) / jnp.sqrt(float(outc))
    b1 = 0.1 * jax.random.normal(ks[6], (cr,), jnp.float32)
    w2 = jax.random.normal(ks[7], (outc, cr, 1, 1), jnp.float32) / jnp.sqrt(float(cr))
    b2 = 0.1 * jax.random.normal(ks[8], (outc,), jnp.float32)
    return (wc, gamma, beta, rmean, rvar, w1, b1, w2, b2)


if __name__ == "__main__":
    key = jax.random.PRNGKey(0)
    k_x, k_p = jax.random.split(key)

    N, Cin, H, W = 2, 4, 16, 16
    Cout = 16                      # reduction_ratio=8 -> hidden = 2
    x = jax.random.normal(k_x, (N, Cin, H, W), jnp.float32)
    params = make_params(k_p, Cin, Cout, reduction_ratio=8)

    fout = jax.block_until_ready(wb_forward(x, params))
    ref = jax.block_until_ready(wb_reference(x, params))

    assert fout.shape == (N, Cout, H, W), fout.shape
    max_err = float(jnp.max(jnp.abs(fout - ref)))
    # bf16 conv operands (f32 accumulation) -> slightly relaxed tolerance.
    assert jnp.allclose(fout, ref, rtol=2e-2, atol=2e-2), max_err

    print("KERNEL_OK")
</pallas_src>

<mosaic_0001>
module attributes {stable_mosaic.version = 11 : i64} {
  func.func @_wb_kernel(%arg0: i32, %arg1: memref<2x18x18x4xbf16, #tpu.memory_space<vmem>>, %arg2: memref<9x4x16xbf16, #tpu.memory_space<vmem>>, %arg3: memref<1x16xf32, #tpu.memory_space<vmem>>, %arg4: memref<16x2xf32, #tpu.memory_space<vmem>>, %arg5: memref<1x2xf32, #tpu.memory_space<vmem>>, %arg6: memref<2x16xf32, #tpu.memory_space<vmem>>, %arg7: memref<1x16xf32, #tpu.memory_space<vmem>>, %arg8: memref<2x16x256xf32, #tpu.memory_space<vmem>>) attributes {dimension_semantics = [#tpu.dimension_semantics<parallel>], iteration_bounds = array<i64: 1>, scalar_prefetch = 0 : i64, scratch_operands = 0 : i64, tpu.core_type = #tpu.core_type<tc>, window_params = [{transform_indices = @transform_0, window_bounds = array<i64: 2, 18, 18, 4>}, {pipeline_mode = #tpu.pipeline_mode<synchronous>, transform_indices = @transform_1, window_bounds = array<i64: 9, 4, 16>}, {pipeline_mode = #tpu.pipeline_mode<synchronous>, transform_indices = @transform_2, window_bounds = array<i64: 1, 16>}, {pipeline_mode = #tpu.pipeline_mode<synchronous>, transform_indices = @transform_3, window_bounds = array<i64: 16, 2>}, {pipeline_mode = #tpu.pipeline_mode<synchronous>, transform_indices = @transform_4, window_bounds = array<i64: 1, 2>}, {pipeline_mode = #tpu.pipeline_mode<synchronous>, transform_indices = @transform_5, window_bounds = array<i64: 2, 16>}, {pipeline_mode = #tpu.pipeline_mode<synchronous>, transform_indices = @transform_6, window_bounds = array<i64: 1, 16>}, {transform_indices = @transform_7, window_bounds = array<i64: 2, 16, 256>}]} {
    %c0 = arith.constant 0 : index
    %c0_0 = arith.constant 0 : index
    %c0_1 = arith.constant 0 : index
    %c0_2 = arith.constant 0 : index
    %0 = vector.load %arg1[%c0, %c0_0, %c0_1, %c0_2] : memref<2x18x18x4xbf16, #tpu.memory_space<vmem>>, vector<2x18x18x4xbf16>
    %cst = arith.constant 0.000000e+00 : f32
    %1 = vector.broadcast %cst : f32 to vector<512x16xf32>
    %2 = vector.extract_strided_slice %0 {offsets = [0, 0, 0, 0], sizes = [2, 16, 16, 4], strides = [1, 1, 1, 1]} : vector<2x18x18x4xbf16> to vector<2x16x16x4xbf16>
    %3 = vector.shape_cast %2 : vector<2x16x16x4xbf16> to vector<512x4xbf16>
    %c0_3 = arith.constant 0 : index
    %c0_4 = arith.constant 0 : index
    %c0_5 = arith.constant 0 : index
    %4 = vector.load %arg2[%c0_3, %c0_4, %c0_5] : memref<9x4x16xbf16, #tpu.memory_space<vmem>>, vector<1x4x16xbf16>
    %5 = vector.shape_cast %4 : vector<1x4x16xbf16> to vector<4x16xbf16>
    %cst_6 = arith.constant dense<0.000000e+00> : vector<512x16xf32>
    %6 = tpu.matmul %3, %5, %cst_6 {dimension_numbers = #tpu.dot_dimension_numbers<[1], [0], [0], [1], [0, 0, 1, 1], [], []>} : vector<512x4xbf16>, vector<4x16xbf16>, vector<512x16xf32> -> vector<512x16xf32>
    %7 = arith.addf %1, %6 : vector<512x16xf32>
    %8 = vector.extract_strided_slice %0 {offsets = [0, 0, 1, 0], sizes = [2, 16, 16, 4], strides = [1, 1, 1, 1]} : vector<2x18x18x4xbf16> to vector<2x16x16x4xbf16>
    %9 = vector.shape_cast %8 : vector<2x16x16x4xbf16> to vector<512x4xbf16>
    %c1 = arith.constant 1 : index
    %c0_7 = arith.constant 0 : index
    %c0_8 = arith.constant 0 : index
    %10 = vector.load %arg2[%c1, %c0_7, %c0_8] : memref<9x4x16xbf16, #tpu.memory_space<vmem>>, vector<1x4x16xbf16>
    %11 = vector.shape_cast %10 : vector<1x4x16xbf16> to vector<4x16xbf16>
    %cst_9 = arith.constant dense<0.000000e+00> : vector<512x16xf32>
    %12 = tpu.matmul %9, %11, %cst_9 {dimension_numbers = #tpu.dot_dimension_numbers<[1], [0], [0], [1], [0, 0, 1, 1], [], []>} : vector<512x4xbf16>, vector<4x16xbf16>, vector<512x16xf32> -> vector<512x16xf32>
    %13 = arith.addf %7, %12 : vector<512x16xf32>
    %14 = vector.extract_strided_slice %0 {offsets = [0, 0, 2, 0], sizes = [2, 16, 16, 4], strides = [1, 1, 1, 1]} : vector<2x18x18x4xbf16> to vector<2x16x16x4xbf16>
    %15 = vector.shape_cast %14 : vector<2x16x16x4xbf16> to vector<512x4xbf16>
    %c2 = arith.constant 2 : index
    %c0_10 = arith.constant 0 : index
    %c0_11 = arith.constant 0 : index
    %16 = vector.load %arg2[%c2, %c0_10, %c0_11] : memref<9x4x16xbf16, #tpu.memory_space<vmem>>, vector<1x4x16xbf16>
    %17 = vector.shape_cast %16 : vector<1x4x16xbf16> to vector<4x16xbf16>
    %cst_12 = arith.constant dense<0.000000e+00> : vector<512x16xf32>
    %18 = tpu.matmul %15, %17, %cst_12 {dimension_numbers = #tpu.dot_dimension_numbers<[1], [0], [0], [1], [0, 0, 1, 1], [], []>} : vector<512x4xbf16>, vector<4x16xbf16>, vector<512x16xf32> -> vector<512x16xf32>
    %19 = arith.addf %13, %18 : vector<512x16xf32>
    %20 = vector.extract_strided_slice %0 {offsets = [0, 1, 0, 0], sizes = [2, 16, 16, 4], strides = [1, 1, 1, 1]} : vector<2x18x18x4xbf16> to vector<2x16x16x4xbf16>
    %21 = vector.shape_cast %20 : vector<2x16x16x4xbf16> to vector<512x4xbf16>
    %c3 = arith.constant 3 : index
    %c0_13 = arith.constant 0 : index
    %c0_14 = arith.constant 0 : index
    %22 = vector.load %arg2[%c3, %c0_13, %c0_14] : memref<9x4x16xbf16, #tpu.memory_space<vmem>>, vector<1x4x16xbf16>
    %23 = vector.shape_cast %22 : vector<1x4x16xbf16> to vector<4x16xbf16>
    %cst_15 = arith.constant dense<0.000000e+00> : vector<512x16xf32>
    %24 = tpu.matmul %21, %23, %cst_15 {dimension_numbers = #tpu.dot_dimension_numbers<[1], [0], [0], [1], [0, 0, 1, 1], [], []>} : vector<512x4xbf16>, vector<4x16xbf16>, vector<512x16xf32> -> vector<512x16xf32>
    %25 = arith.addf %19, %24 : vector<512x16xf32>
    %26 = vector.extract_strided_slice %0 {offsets = [0, 1, 1, 0], sizes = [2, 16, 16, 4], strides = [1, 1, 1, 1]} : vector<2x18x18x4xbf16> to vector<2x16x16x4xbf16>
    %27 = vector.shape_cast %26 : vector<2x16x16x4xbf16> to vector<512x4xbf16>
    %c4 = arith.constant 4 : index
    %c0_16 = arith.constant 0 : index
    %c0_17 = arith.constant 0 : index
    %28 = vector.load %arg2[%c4, %c0_16, %c0_17] : memref<9x4x16xbf16, #tpu.memory_space<vmem>>, vector<1x4x16xbf16>
    %29 = vector.shape_cast %28 : vector<1x4x16xbf16> to vector<4x16xbf16>
    %cst_18 = arith.constant dense<0.000000e+00> : vector<512x16xf32>
    %30 = tpu.matmul %27, %29, %cst_18 {dimension_numbers = #tpu.dot_dimension_numbers<[1], [0], [0], [1], [0, 0, 1, 1], [], []>} : vector<512x4xbf16>, vector<4x16xbf16>, vector<512x16xf32> -> vector<512x16xf32>
    %31 = arith.addf %25, %30 : vector<512x16xf32>
    %32 = vector.extract_strided_slice %0 {offsets = [0, 1, 2, 0], sizes = [2, 16, 16, 4], strides = [1, 1, 1, 1]} : vector<2x18x18x4xbf16> to vector<2x16x16x4xbf16>
    %33 = vector.shape_cast %32 : vector<2x16x16x4xbf16> to vector<512x4xbf16>
    %c5 = arith.constant 5 : index
    %c0_19 = arith.constant 0 : index
    %c0_20 = arith.constant 0 : index
    %34 = vector.load %arg2[%c5, %c0_19, %c0_20] : memref<9x4x16xbf16, #tpu.memory_space<vmem>>, vector<1x4x16xbf16>
    %35 = vector.shape_cast %34 : vector<1x4x16xbf16> to vector<4x16xbf16>
    %cst_21 = arith.constant dense<0.000000e+00> : vector<512x16xf32>
    %36 = tpu.matmul %33, %35, %cst_21 {dimension_numbers = #tpu.dot_dimension_numbers<[1], [0], [0], [1], [0, 0, 1, 1], [], []>} : vector<512x4xbf16>, vector<4x16xbf16>, vector<512x16xf32> -> vector<512x16xf32>
    %37 = arith.addf %31, %36 : vector<512x16xf32>
    %38 = vector.extract_strided_slice %0 {offsets = [0, 2, 0, 0], sizes = [2, 16, 16, 4], strides = [1, 1, 1, 1]} : vector<2x18x18x4xbf16> to vector<2x16x16x4xbf16>
    %39 = vector.shape_cast %38 : vector<2x16x16x4xbf16> to vector<512x4xbf16>
    %c6 = arith.constant 6 : index
    %c0_22 = arith.constant 0 : index
    %c0_23 = arith.constant 0 : index
    %40 = vector.load %arg2[%c6, %c0_22, %c0_23] : memref<9x4x16xbf16, #tpu.memory_space<vmem>>, vector<1x4x16xbf16>
    %41 = vector.shape_cast %40 : vector<1x4x16xbf16> to vector<4x16xbf16>
    %cst_24 = arith.constant dense<0.000000e+00> : vector<512x16xf32>
    %42 = tpu.matmul %39, %41, %cst_24 {dimension_numbers = #tpu.dot_dimension_numbers<[1], [0], [0], [1], [0, 0, 1, 1], [], []>} : vector<512x4xbf16>, vector<4x16xbf16>, vector<512x16xf32> -> vector<512x16xf32>
    %43 = arith.addf %37, %42 : vector<512x16xf32>
    %44 = vector.extract_strided_slice %0 {offsets = [0, 2, 1, 0], sizes = [2, 16, 16, 4], strides = [1, 1, 1, 1]} : vector<2x18x18x4xbf16> to vector<2x16x16x4xbf16>
    %45 = vector.shape_cast %44 : vector<2x16x16x4xbf16> to vector<512x4xbf16>
    %c7 = arith.constant 7 : index
    %c0_25 = arith.constant 0 : index
    %c0_26 = arith.constant 0 : index
    %46 = vector.load %arg2[%c7, %c0_25, %c0_26] : memref<9x4x16xbf16, #tpu.memory_space<vmem>>, vector<1x4x16xbf16>
    %47 = vector.shape_cast %46 : vector<1x4x16xbf16> to vector<4x16xbf16>
    %cst_27 = arith.constant dense<0.000000e+00> : vector<512x16xf32>
    %48 = tpu.matmul %45, %47, %cst_27 {dimension_numbers = #tpu.dot_dimension_numbers<[1], [0], [0], [1], [0, 0, 1, 1], [], []>} : vector<512x4xbf16>, vector<4x16xbf16>, vector<512x16xf32> -> vector<512x16xf32>
    %49 = arith.addf %43, %48 : vector<512x16xf32>
    %50 = vector.extract_strided_slice %0 {offsets = [0, 2, 2, 0], sizes = [2, 16, 16, 4], strides = [1, 1, 1, 1]} : vector<2x18x18x4xbf16> to vector<2x16x16x4xbf16>
    %51 = vector.shape_cast %50 : vector<2x16x16x4xbf16> to vector<512x4xbf16>
    %c8 = arith.constant 8 : index
    %c0_28 = arith.constant 0 : index
    %c0_29 = arith.constant 0 : index
    %52 = vector.load %arg2[%c8, %c0_28, %c0_29] : memref<9x4x16xbf16, #tpu.memory_space<vmem>>, vector<1x4x16xbf16>
    %53 = vector.shape_cast %52 : vector<1x4x16xbf16> to vector<4x16xbf16>
    %cst_30 = arith.constant dense<0.000000e+00> : vector<512x16xf32>
    %54 = tpu.matmul %51, %53, %cst_30 {dimension_numbers = #tpu.dot_dimension_numbers<[1], [0], [0], [1], [0, 0, 1, 1], [], []>} : vector<512x4xbf16>, vector<4x16xbf16>, vector<512x16xf32> -> vector<512x16xf32>
    %55 = arith.addf %49, %54 : vector<512x16xf32>
    %c0_31 = arith.constant 0 : index
    %c0_32 = arith.constant 0 : index
    %56 = vector.load %arg3[%c0_31, %c0_32] : memref<1x16xf32, #tpu.memory_space<vmem>>, vector<1x16xf32>
    %57 = vector.broadcast %56 : vector<1x16xf32> to vector<512x16xf32>
    %58 = arith.addf %55, %57 : vector<512x16xf32>
    %cst_33 = arith.constant 0.000000e+00 : f32
    %59 = vector.broadcast %cst_33 : f32 to vector<512x16xf32>
    %60 = arith.maximumf %58, %59 : vector<512x16xf32>
    %61 = vector.extract_strided_slice %60 {offsets = [0, 0], sizes = [256, 16], strides = [1, 1]} : vector<512x16xf32> to vector<256x16xf32>
    %cst_34 = arith.constant dense<0.000000e+00> : vector<16xf32>
    %62 = vector.multi_reduction <add>, %61, %cst_34 [0] : vector<256x16xf32> to vector<16xf32>
    %63 = vector.shape_cast %62 : vector<16xf32> to vector<1x16xf32>
    %cst_35 = arith.constant 3.906250e-03 : f32
    %64 = vector.broadcast %cst_35 : f32 to vector<1x16xf32>
    %65 = arith.mulf %63, %64 : vector<1x16xf32>
    %cst_36 = arith.constant dense<0xFF800000> : vector<16xf32>
    %66 = vector.multi_reduction <maximumf>, %61, %cst_36 [0] : vector<256x16xf32> to vector<16xf32>
    %67 = vector.shape_cast %66 : vector<16xf32> to vector<1x16xf32>
    %68 = vector.extract_strided_slice %60 {offsets = [256, 0], sizes = [256, 16], strides = [1, 1]} : vector<512x16xf32> to vector<256x16xf32>
    %cst_37 = arith.constant dense<0.000000e+00> : vector<16xf32>
    %69 = vector.multi_reduction <add>, %68, %cst_37 [0] : vector<256x16xf32> to vector<16xf32>
    %70 = vector.shape_cast %69 : vector<16xf32> to vector<1x16xf32>
    %cst_38 = arith.constant 3.906250e-03 : f32
    %71 = vector.broadcast %cst_38 : f32 to vector<1x16xf32>
    %72 = arith.mulf %70, %71 : vector<1x16xf32>
    %cst_39 = arith.constant dense<0xFF800000> : vector<16xf32>
    %73 = vector.multi_reduction <maximumf>, %68, %cst_39 [0] : vector<256x16xf32> to vector<16xf32>
    %74 = vector.shape_cast %73 : vector<16xf32> to vector<1x16xf32>
    %75 = tpu.concatenate %65, %72, %67, %74 in 0 : vector<1x16xf32>, vector<1x16xf32>, vector<1x16xf32>, vector<1x16xf32> -> vector<4x16xf32>
    %c0_40 = arith.constant 0 : index
    %c0_41 = arith.constant 0 : index
    %76 = vector.load %arg4[%c0_40, %c0_41] : memref<16x2xf32, #tpu.memory_space<vmem>>, vector<16x2xf32>
    %cst_42 = arith.constant dense<0.000000e+00> : vector<4x2xf32>
    %77 = tpu.matmul %75, %76, %cst_42 {dimension_numbers = #tpu.dot_dimension_numbers<[1], [0], [0], [1], [0, 0, 1, 1], [], []>} : vector<4x16xf32>, vector<16x2xf32>, vector<4x2xf32> -> vector<4x2xf32>
    %c0_43 = arith.constant 0 : index
    %c0_44 = arith.constant 0 : index
    %78 = vector.load %arg5[%c0_43, %c0_44] : memref<1x2xf32, #tpu.memory_space<vmem>>, vector<1x2xf32>
    %79 = vector.broadcast %78 : vector<1x2xf32> to vector<4x2xf32>
    %80 = arith.addf %77, %79 : vector<4x2xf32>
    %cst_45 = arith.constant 0.000000e+00 : f32
    %81 = vector.broadcast %cst_45 : f32 to vector<4x2xf32>
    %82 = arith.maximumf %80, %81 : vector<4x2xf32>
    %c0_46 = arith.constant 0 : index
    %c0_47 = arith.constant 0 : index
    %83 = vector.load %arg6[%c0_46, %c0_47] : memref<2x16xf32, #tpu.memory_space<vmem>>, vector<2x16xf32>
    %cst_48 = arith.constant dense<0.000000e+00> : vector<4x16xf32>
    %84 = tpu.matmul %82, %83, %cst_48 {dimension_numbers = #tpu.dot_dimension_numbers<[1], [0], [0], [1], [0, 0, 1, 1], [], []>} : vector<4x2xf32>, vector<2x16xf32>, vector<4x16xf32> -> vector<4x16xf32>
    %c0_49 = arith.constant 0 : index
    %c0_50 = arith.constant 0 : index
    %85 = vector.load %arg7[%c0_49, %c0_50] : memref<1x16xf32, #tpu.memory_space<vmem>>, vector<1x16xf32>
    %86 = vector.broadcast %85 : vector<1x16xf32> to vector<4x16xf32>
    %87 = arith.addf %84, %86 : vector<4x16xf32>
    %88 = vector.extract_strided_slice %87 {offsets = [0, 0], sizes = [2, 16], strides = [1, 1]} : vector<4x16xf32> to vector<2x16xf32>
    %89 = vector.extract_strided_slice %87 {offsets = [2, 0], sizes = [2, 16], strides = [1, 1]} : vector<4x16xf32> to vector<2x16xf32>
    %90 = arith.addf %88, %89 : vector<2x16xf32>
    %91 = arith.negf %90 : vector<2x16xf32>
    %92 = math.exp %91 : vector<2x16xf32>
    %cst_51 = arith.constant 1.000000e+00 : f32
    %93 = vector.broadcast %cst_51 : f32 to vector<2x16xf32>
    %94 = arith.addf %93, %92 : vector<2x16xf32>
    %95 = arith.divf %93, %94 : vector<2x16xf32>
    %96 = vector.extract_strided_slice %95 {offsets = [0, 0], sizes = [1, 16], strides = [1, 1]} : vector<2x16xf32> to vector<1x16xf32>
    %97 = vector.broadcast %96 : vector<1x16xf32> to vector<256x16xf32>
    %98 = arith.mulf %61, %97 : vector<256x16xf32>
    %99 = tpu.transpose %98, [1, 0] : vector<256x16xf32> -> vector<16x256xf32>
    %c0_52 = arith.constant 0 : index
    %c0_53 = arith.constant 0 : index
    %c0_54 = arith.constant 0 : index
    %100 = vector.load %arg8[%c0_52, %c0_53, %c0_54] : memref<2x16x256xf32, #tpu.memory_space<vmem>>, vector<1x16x256xf32>
    %101 = vector.shape_cast %100 : vector<1x16x256xf32> to vector<16x256xf32>
    %102 = vector.shape_cast %99 : vector<16x256xf32> to vector<1x16x256xf32>
    tpu.vector_store %arg8[%c0_52, %c0_53, %c0_54], %102 {strides = array<i32>} : memref<2x16x256xf32, #tpu.memory_space<vmem>>, vector<1x16x256xf32>,
    %103 = vector.extract_strided_slice %95 {offsets = [1, 0], sizes = [1, 16], strides = [1, 1]} : vector<2x16xf32> to vector<1x16xf32>
    %104 = vector.broadcast %103 : vector<1x16xf32> to vector<256x16xf32>
    %105 = arith.mulf %68, %104 : vector<256x16xf32>
    %106 = tpu.transpose %105, [1, 0] : vector<256x16xf32> -> vector<16x256xf32>
    %c1_55 = arith.constant 1 : index
    %c0_56 = arith.constant 0 : index
    %c0_57 = arith.constant 0 : index
    %107 = vector.load %arg8[%c1_55, %c0_56, %c0_57] : memref<2x16x256xf32, #tpu.memory_space<vmem>>, vector<1x16x256xf32>
    %108 = vector.shape_cast %107 : vector<1x16x256xf32> to vector<16x256xf32>
    %109 = vector.shape_cast %106 : vector<16x256xf32> to vector<1x16x256xf32>
    tpu.vector_store %arg8[%c1_55, %c0_56, %c0_57], %109 {strides = array<i32>} : memref<2x16x256xf32, #tpu.memory_space<vmem>>, vector<1x16x256xf32>,
    return
  }
  func.func @transform_0(%arg0: i32) -> (i32, i32, i32, i32) {
    %c0_i32 = arith.constant 0 : i32
    %c0_i32_0 = arith.constant 0 : i32
    %c0_i32_1 = arith.constant 0 : i32
    %c0_i32_2 = arith.constant 0 : i32
    return %arg0, %c0_i32, %c0_i32_0, %c0_i32_1 : i32, i32, i32, i32
  }
  func.func @transform_1(%arg0: i32) -> (i32, i32, i32) {
    %c0_i32 = arith.constant 0 : i32
    %c0_i32_0 = arith.constant 0 : i32
    %c0_i32_1 = arith.constant 0 : i32
    %c0_i32_2 = arith.constant 0 : i32
    return %c0_i32, %c0_i32_0, %c0_i32_1 : i32, i32, i32
  }
  func.func @transform_2(%arg0: i32) -> (i32, i32) {
    %c0_i32 = arith.constant 0 : i32
    %c0_i32_0 = arith.constant 0 : i32
    %c0_i32_1 = arith.constant 0 : i32
    return %c0_i32, %c0_i32_0 : i32, i32
  }
  func.func @transform_3(%arg0: i32) -> (i32, i32) {
    %c0_i32 = arith.constant 0 : i32
    %c0_i32_0 = arith.constant 0 : i32
    %c0_i32_1 = arith.constant 0 : i32
    return %c0_i32, %c0_i32_0 : i32, i32
  }
  func.func @transform_4(%arg0: i32) -> (i32, i32) {
    %c0_i32 = arith.constant 0 : i32
    %c0_i32_0 = arith.constant 0 : i32
    %c0_i32_1 = arith.constant 0 : i32
    return %c0_i32, %c0_i32_0 : i32, i32
  }
  func.func @transform_5(%arg0: i32) -> (i32, i32) {
    %c0_i32 = arith.constant 0 : i32
    %c0_i32_0 = arith.constant 0 : i32
    %c0_i32_1 = arith.constant 0 : i32
    return %c0_i32, %c0_i32_0 : i32, i32
  }
  func.func @transform_6(%arg0: i32) -> (i32, i32) {
    %c0_i32 = arith.constant 0 : i32
    %c0_i32_0 = arith.constant 0 : i32
    %c0_i32_1 = arith.constant 0 : i32
    return %c0_i32, %c0_i32_0 : i32, i32
  }
  func.func @transform_7(%arg0: i32) -> (i32, i32, i32) {
    %c0_i32 = arith.constant 0 : i32
    %c0_i32_0 = arith.constant 0 : i32
    %c0_i32_1 = arith.constant 0 : i32
    return %arg0, %c0_i32, %c0_i32_0 : i32, i32, i32
  }
}

</mosaic_0001>

<bundles_post_ra>
// kernel: tpu_custom_call.1
= control target key start
LH: loop header
LB: loop body
LE: loop exit
PB: predicated region body
PF: predicated region fallthrough
CT: control target
= control target key end

     0   :  { %vm1103_vm0 = vcmask 1041408   ;;  %vm137_vm1 = vsmask.f32 3328  ;;  %vm138_vm2 = vsmask.f32 7440  ;;  %v11059_v29 = vmov 0  ;;  %s10914_s0 = inlined_call_operand.vmem [shape: bf16[2,18,18,4], index: 0, kind: input, shape index: {}]   ;;  %s10915_s1 = inlined_call_operand.vmem [shape: bf16[9,4,16], index: 1, kind: input, shape index: {}]   ;;  %s10916_s2 = inlined_call_operand.vmem [shape: f32[1,16], index: 2, kind: input, shape index: {}]   ;;  %s10917_s3 = inlined_call_operand.vmem [shape: f32[16,2], index: 3, kind: input, shape index: {}]   ;;  %s10918_s4 = inlined_call_operand.vmem [shape: f32[1,2], index: 4, kind: input, shape index: {}]   ;;  %s10919_s5 = inlined_call_operand.vmem [shape: f32[2,16], index: 5, kind: input, shape index: {}]   ;;  %s10920_s6 = inlined_call_operand.vmem [shape: f32[1,16], index: 6, kind: input, shape index: {}]   ;;  %s10921_s7 = inlined_call_operand.hbm [shape: f32[2,16,256], index: 7, kind: output, shape index: {}]  }
   0x1   :  { %v6192_v0 = vld [vmem:[%s10915_s1 + $0x8] sm:$0x3]  ;;  %v5931_v1 = vld [vmem:[%s10915_s1 + $0x2] sm:$0x3]  ;;  %v29_v5 = vld [vmem:[%s10914_s0 + $0x4] sm:$0xf] }
   0x2   :  { %7807 = vmatprep.subr.msk.bf16.mxu0 %vm1103_vm0, %v6192_v0  ;;  %7803 = vmatprep.subr.msk.bf16.mxu1 %vm1103_vm0, %v5931_v1  ;;  %v7991_v2 = vsel %vm1103_vm0, %v6192_v0, 0  ;;  %v1105_v3 = vsel %vm1103_vm0, %v5931_v1, 0  ;;  %v28_v4 = vld [vmem:[%s10914_s0] sm:$0xf]  ;;  %v30_v6 = vld [vmem:[%s10914_s0 + $0x8] sm:$0x1]  ;;  %vm8035_vm3 = vmor %vm137_vm1, %vm138_vm2 }
   0x3   :  { %11058 = vst [vmem:[#allocation5_spill] sm:$0xff] %v7991_v2  ;;  %6945 = vmatpush3.bf16.msra.mxu0 %v7991_v2  ;;  %6681 = vmatpush3.bf16.msra.mxu1 %v1105_v3  ;;  %v141_v7 = vshrl.u32 %v28_v4, 16  ;;  %v144_v8 = vshll.u32 %v28_v4, 16  ;;  %v150_v9 = vshll.u32 %v29_v5, 16  ;;  %v154_v10 = vshrl.u32 %v29_v5, 16 }
   0x4   :  { %v8007_v11 = vld [vmem:[%s10914_s0 + $0xc] sm:$0xf]  ;;  %v160_v12 = vshll.u32 %v30_v6, 16  ;;  %v8012_v13 = vld [vmem:[%s10914_s0 + $0x10] sm:$0xf]  ;;  %v11060_v29 = vsel %vm8035_vm3, 4294967295, %v11059_v29 }
   0x5   :  { %v8017_v14 = vld [vmem:[%s10914_s0 + $0x14] sm:$0x1]  ;;  %v143_v15 = vrot.slane %v141_v7, 4  ;;  %v146_v16 = vrot.slane %v144_v8, 5  ;;  %v152_v17 = vrot.slane %v150_v9, 5  ;;  %v156_v18 = vrot.slane %v154_v10, 4 }
   0x6   :  { %v6229_v19 = vld [vmem:[%s10915_s1 + $0xa] sm:$0x3]  ;;  %v162_v20 = vrot.slane %v160_v12, 5  ;;  %v165_v21 = vshrl.u32 %v8007_v11, 16  ;;  %v168_v22 = vshll.u32 %v8007_v11, 16  ;;  %v174_v23 = vshll.u32 %v8012_v13, 16 }
   0x7   :  { %7809 = vmatprep.subr.msk.bf16.mxu0 %vm1103_vm0, %v6229_v19  ;;  %v147_v24 = vor.u32 %v146_v16, %v143_v15  ;;  %v157_v25 = vor.u32 %v156_v18, %v152_v17  ;;  %v178_v26 = vshrl.u32 %v8012_v13, 16  ;;  %v184_v27 = vshll.u32 %v8017_v14, 16  ;;  %v8031_v28 = vld [vmem:[%s10914_s0 + $0x18] sm:$0xf]  ;;  %11061 = vst [vmem:[#allocation6_spill] sm:$0xff] %v11060_v29 }
   0x8   :  { %vm1006_vm4 = vcmask 31744   ;;  %v167_v30 = vrot.slane %v165_v21, 4  ;;  %v170_v31 = vrot.slane %v168_v22, 5  ;;  %v176_v32 = vrot.slane %v174_v23, 5  ;;  %v8042_v33 = vld [vmem:[%s10914_s0 + $0x1c] sm:$0xf] }
   0x9   :  { %v148_v34 = vrot.slane %v147_v24, 4  ;;  %v158_v35 = vrot.slane %v157_v25, 4  ;;  %v180_v36 = vrot.slane %v178_v26, 4  ;;  %v186_v37 = vrot.slane %v184_v27, 5  ;;  %v8048_v40 = vld [vmem:[%s10914_s0 + $0x20] sm:$0x1] }
   0xa   :  { %v171_v38 = vor.u32 %v170_v31, %v167_v30  ;;  %v189_v41 = vshrl.u32 %v8031_v28, 16  ;;  %v192_v42 = vshll.u32 %v8031_v28, 16  ;;  %v198_v46 = vshll.u32 %v8042_v33, 16  ;;  %v8060_v51 = vld [vmem:[%s10914_s0 + $0x24] sm:$0xf] }
   0xb   :  { %v153_v43 = vsel %vm8035_vm3, %v148_v34, %v152_v17  ;;  %v163_v44 = vsel %vm8035_vm3, %v158_v35, %v162_v20  ;;  %v181_v45 = vor.u32 %v180_v36, %v176_v32  ;;  %v202_v54 = vshrl.u32 %v8042_v33, 16  ;;  %v8067_v56 = vld [vmem:[%s10915_s1] sm:$0x3]  ;;  %v8077_v61 = vld [vmem:[%s10914_s0 + $0x28] sm:$0xf] }
   0xc   :  { %v5932_v47 = vcombine.low %v153_v43, %v163_v44  ;;  %v172_v48 = vrot.slane %v171_v38, 4  ;;  %v191_v49 = vrot.slane %v189_v41, 4  ;;  %v194_v50 = vrot.slane %v192_v42, 5  ;;  %v8082_v62 = vld [vmem:[%s10914_s0 + $0x2c] sm:$0x1]  ;;  %7804 = vmatprep.subr.msk.bf16.mxu1 %vm1103_vm0, %v8067_v56 }
   0xd   :  { %v182_v52 = vrot.slane %v181_v45, 4  ;;  %v200_v53 = vrot.slane %v198_v46, 5  ;;  %v208_v55 = vshll.u32 %v8048_v40, 16  ;;  %v204_v0 = vrot.slane %v202_v54, 4  ;;  %v8092_v4 = vld [vmem:[%s10914_s0 + $0x30] sm:$0xf] }
   0xe   :  { %6682 = vmatprep.mubr.msk.bf16.mxu1 %vm1006_vm4, %v5932_v47  ;;  %v177_v57 = vsel %vm8035_vm3, %v172_v48, %v176_v32  ;;  %v195_v58 = vor.u32 %v194_v50, %v191_v49  ;;  %v3576_v3 = vsel %vm1103_vm0, %v6229_v19, 0  ;;  %v213_v7 = vshrl.u32 %v8060_v51, 16  ;;  %v8102_v16 = vld [vmem:[%s10914_s0 + $0x34] sm:$0xf]  ;;  %v8111_v20 = vld [vmem:[%s10914_s0 + $0x38] sm:$0x1] }
   0xf   :  { %v187_v63 = vsel %vm8035_vm3, %v182_v52, %v186_v37  ;;  %v210_v1 = vrot.slane %v208_v55, 5  ;;  %v216_v8 = vshll.u32 %v8060_v51, 16  ;;  %v205_v9 = vor.u32 %v204_v0, %v200_v53  ;;  %v8119_v32 = vld [vmem:[%s10914_s0 + $0x3c] sm:$0xf]  ;;  %v8128_v38 = vld [vmem:[%s10914_s0 + $0x40] sm:$0xf] }
  0x10   :  { %v5933_v5 = vcombine.low %v177_v57, %v187_v63  ;;  %v196_v6 = vrot.slane %v195_v58, 4  ;;  %v222_v10 = vshll.u32 %v8077_v61, 16  ;;  %v226_v12 = vshrl.u32 %v8077_v61, 16  ;;  %v8142_v52 = vld [vmem:[%s10914_s0 + $0x44] sm:$0x1] }
  0x11   :  { %v232_v15 = vshll.u32 %v8082_v62, 16  ;;  %v215_v18 = vrot.slane %v213_v7, 4  ;;  %v218_v19 = vrot.slane %v216_v8, 5  ;;  %v237_v21 = vshrl.u32 %v8092_v4, 16  ;;  %v8152_v0 = vld [vmem:[%s10914_s0 + $0x48] sm:$0xf] }
  0x12   :  { %6946 = vmatprep.mubr.msk.bf16.mxu0 %vm1006_vm4, %v5933_v5  ;;  %6683 = vmatmul.mubr.msk.bf16.vlgmr.msra.gmra.mrb[0].mxu1 %vm1006_vm4, %v5933_v5  ;;  %v201_v17 = vsel %vm8035_vm3, %v196_v6, %v200_v53  ;;  %v206_v22 = vrot.slane %v205_v9, 4  ;;  %v224_v23 = vrot.slane %v222_v10, 5  ;;  %v228_v24 = vrot.slane %v226_v12, 4 }
  0x13   :  { %v234_v25 = vrot.slane %v232_v15, 5  ;;  %v219_v26 = vor.u32 %v218_v19, %v215_v18  ;;  %v239_v27 = vrot.slane %v237_v21, 4  ;;  %v240_v30 = vshll.u32 %v8092_v4, 16  ;;  %v8173_v18 = vld [vmem:[%s10914_s0 + $0x50] sm:$0x1] }
  0x14   :  { %v246_v31 = vshll.u32 %v8102_v16, 16  ;;  %v211_v34 = vsel %vm8035_vm3, %v206_v22, %v210_v1  ;;  %v229_v35 = vor.u32 %v228_v24, %v224_v23  ;;  %v250_v36 = vshrl.u32 %v8102_v16, 16 }
  0x15   :  { %v256_v37 = vshll.u32 %v8111_v20, 16  ;;  %v8130_v41 = vcombine.low %v201_v17, %v211_v34  ;;  %v220_v42 = vrot.slane %v219_v26, 4  ;;  %v242_v43 = vrot.slane %v240_v30, 5  ;;  %v8190_v34 = vld [vmem:[%s10914_s0 + $0x58] sm:$0xf] }
  0x16   :  { %v248_v44 = vrot.slane %v246_v31, 5  ;;  %v230_v45 = vrot.slane %v229_v35, 4  ;;  %v252_v46 = vrot.slane %v250_v36, 4  ;;  %v261_v48 = vshrl.u32 %v8119_v32, 16 }
  0x17   :  { %11062 = vst [vmem:[#allocation7_spill] sm:$0xff] %v8130_v41  ;;  %v258_v47 = vrot.slane %v256_v37, 5  ;;  %6947 = vmatmul.mubr.msk.bf16.vlgmr.msra.gmra.mrb[0].mxu0 %vm1006_vm4, %v8130_v41  ;;  %6686 = vmatprep.mubr.msk.bf16.mxu1 %vm1006_vm4, %v8130_v41  ;;  %v225_v49 = vsel %vm8035_vm3, %v220_v42, %v224_v23  ;;  %v243_v50 = vor.u32 %v242_v43, %v239_v27  ;;  %v264_v53 = vshll.u32 %v8119_v32, 16 }
  0x18   :  { %v270_v54 = vshll.u32 %v8128_v38, 16  ;;  %7011 = vmatpush3.bf16.msra.mxu0 %v3576_v3  ;;  %v235_v55 = vsel %vm8035_vm3, %v230_v45, %v234_v25  ;;  %v253_v57 = vor.u32 %v252_v46, %v248_v44  ;;  %v263_v58 = vrot.slane %v261_v48, 4  ;;  %v8159_v3 = vld [vmem:[%s10914_s0 + $0x4c] sm:$0xf]  ;;  %v8183_v25 = vld [vmem:[%s10914_s0 + $0x54] sm:$0xf] }
  0x19   :  { %v274_v63 = vshrl.u32 %v8128_v38, 16  ;;  %v8154_v1 = vcombine.low %v225_v49, %v235_v55  ;;  %v244_v5 = vrot.slane %v243_v50, 4  ;;  %v266_v6 = vrot.slane %v264_v53, 5  ;;  %v8203_v45 = vld [vmem:[%s10914_s0 + $0x5c] sm:$0x1] }
  0x1a   :  { %v272_v7 = vrot.slane %v270_v54, 5  ;;  %v254_v8 = vrot.slane %v253_v57, 4  ;;  %v280_v10 = vshll.u32 %v8142_v52, 16  ;;  %v1653_v12 = vsel %vm1103_vm0, %v8067_v56, 0  ;;  %v8213_v54 = vld [vmem:[%s10914_s0 + $0x60] sm:$0xf] }
  0x1b   :  { %11063 = vst [vmem:[#allocation8_spill] sm:$0xff] %v8154_v1  ;;  %v276_v9 = vrot.slane %v274_v63, 4  ;;  %6950 = vmatprep.mubr.msk.bf16.mxu0 %vm1006_vm4, %v8154_v1  ;;  %6687 = vmatmul.mubr.msk.bf16.gmra.mrb[4].mxu1 %vm1006_vm4, %v8154_v1  ;;  %v249_v15 = vsel %vm8035_vm3, %v244_v5, %v248_v44  ;;  %v267_v17 = vor.u32 %v266_v6, %v263_v58  ;;  %v285_v19 = vshrl.u32 %v8152_v0, 16  ;;  %v8220_v5 = vld [vmem:[%s10914_s0 + $0x64] sm:$0xf] }
  0x1c   :  { %v288_v21 = vshll.u32 %v8152_v0, 16  ;;  %v259_v56 = vsel %vm8035_vm3, %v254_v8, %v258_v47  ;;  %v282_v23 = vrot.slane %v280_v10, 5  ;;  %6747 = vmatpush3.bf16.msra.mxu1 %v1653_v12  ;;  %v294_v24 = vshll.u32 %v8159_v3, 16 }
  0x1d   :  { %v277_v22 = vor.u32 %v276_v9, %v272_v7  ;;  %v8185_v26 = vcombine.low %v249_v15, %v259_v56  ;;  %v268_v27 = vrot.slane %v267_v17, 4  ;;  %v287_v30 = vrot.slane %v285_v19, 4  ;;  %v8233_v15 = vld [vmem:[%s10914_s0 + $0x68] sm:$0x1] }
  0x1e   :  { %v290_v31 = vrot.slane %v288_v21, 5  ;;  %v296_v36 = vrot.slane %v294_v24, 5  ;;  %v298_v37 = vshrl.u32 %v8159_v3, 16  ;;  %v304_v42 = vshll.u32 %v8173_v18, 16 }
  0x1f   :  { %11064 = vst [vmem:[#allocation9_spill] sm:$0xff] %v8185_v26  ;;  %v278_v35 = vrot.slane %v277_v22, 4  ;;  %6951 = vmatmul.mubr.msk.bf16.gmra.mrb[4].mxu0 %vm1006_vm4, %v8185_v26  ;;  %6690 = vmatprep.mubr.msk.bf16.mxu1 %vm1006_vm4, %v8185_v26  ;;  %v273_v43 = vsel %vm8035_vm3, %v268_v27, %v272_v7  ;;  %v309_v46 = vshrl.u32 %v8183_v25, 16  ;;  %v312_v47 = vshll.u32 %v8183_v25, 16 }
  0x20   :  { %v291_v44 = vor.u32 %v290_v31, %v287_v30  ;;  %v300_v49 = vrot.slane %v298_v37, 4  ;;  %v306_v50 = vrot.slane %v304_v42, 5  ;;  %v318_v53 = vshll.u32 %v8190_v34, 16 }
  0x21   :  { %v283_v48 = vsel %vm8035_vm3, %v278_v35, %v282_v23  ;;  %v311_v58 = vrot.slane %v309_v46, 4  ;;  %v314_v63 = vrot.slane %v312_v47, 5  ;;  %v322_v8 = vshrl.u32 %v8190_v34, 16  ;;  %v8242_v35 = vld [vmem:[%s10914_s0 + $0x6c] sm:$0xf] }
  0x22   :  { %v8215_v55 = vcombine.low %v273_v43, %v283_v48  ;;  %v292_v57 = vrot.slane %v291_v44, 4  ;;  %v301_v6 = vor.u32 %v300_v49, %v296_v36  ;;  %v320_v7 = vrot.slane %v318_v53, 5  ;;  %v8250_v44 = vld [vmem:[%s10914_s0 + $0x70] sm:$0xf] }
  0x23   :  { %v328_v9 = vshll.u32 %v8203_v45, 16  ;;  %v315_v12 = vor.u32 %v314_v63, %v311_v58  ;;  %v333_v17 = vshrl.u32 %v8213_v54, 16  ;;  %v336_v19 = vshll.u32 %v8213_v54, 16 }
  0x24   :  { %11065 = vst [vmem:[#allocation10_spill] sm:$0xff] %v8215_v55  ;;  %6954 = vmatprep.mubr.msk.bf16.mxu0 %vm1006_vm4, %v8215_v55  ;;  %6691 = vmatmul.mubr.msk.bf16.gmra.mrb[8].mxu1 %vm1006_vm4, %v8215_v55  ;;  %v297_v10 = vsel %vm8035_vm3, %v292_v57, %v296_v36  ;;  %v302_v21 = vrot.slane %v301_v6, 4  ;;  %v324_v56 = vrot.slane %v322_v8, 4  ;;  %v342_v23 = vshll.u32 %v8220_v5, 16 }
  0x25   :  { %v330_v22 = vrot.slane %v328_v9, 5  ;;  %v316_v24 = vrot.slane %v315_v12, 4  ;;  %v335_v27 = vrot.slane %v333_v17, 4  ;;  %v338_v30 = vrot.slane %v336_v19, 5 }
  0x26   :  { %v346_v31 = vshrl.u32 %v8220_v5, 16  ;;  %v307_v36 = vsel %vm8035_vm3, %v302_v21, %v306_v50  ;;  %v325_v37 = vor.u32 %v324_v56, %v320_v7  ;;  %v344_v42 = vrot.slane %v342_v23, 5  ;;  %v8259_v50 = vld [vmem:[%s10914_s0 + $0x74] sm:$0x1]  ;;  %v8280_v56 = vld [vmem:[%s10914_s0 + $0x7c] sm:$0xf] }
  0x27   :  { %v352_v43 = vshll.u32 %v8233_v15, 16  ;;  %v8252_v46 = vcombine.low %v297_v10, %v307_v36  ;;  %v321_v47 = vsel %vm8035_vm3, %v316_v24, %v320_v7  ;;  %v339_v48 = vor.u32 %v338_v30, %v335_v27  ;;  %v8272_v10 = vld [vmem:[%s10914_s0 + $0x78] sm:$0xf] }
  0x28   :  { %v348_v49 = vrot.slane %v346_v31, 4  ;;  %v326_v53 = vrot.slane %v325_v37, 4  ;;  %v357_v58 = vshrl.u32 %v8242_v35, 16  ;;  %v360_v63 = vshll.u32 %v8242_v35, 16 }
  0x29   :  { %11066 = vst [vmem:[#allocation11_spill] sm:$0xff] %v8252_v46  ;;  %v354_v57 = vrot.slane %v352_v43, 5  ;;  %6955 = vmatmul.mubr.msk.bf16.gmra.mrb[8].mxu0 %vm1006_vm4, %v8252_v46  ;;  %6694 = vmatprep.mubr.msk.bf16.mxu1 %vm1006_vm4, %v8252_v46  ;;  %v340_v6 = vrot.slane %v339_v48, 4  ;;  %v366_v8 = vshll.u32 %v8250_v44, 16  ;;  %v370_v9 = vshrl.u32 %v8250_v44, 16 }
  0x2a   :  { %v349_v7 = vor.u32 %v348_v49, %v344_v42  ;;  %v331_v12 = vsel %vm8035_vm3, %v326_v53, %v330_v22  ;;  %v359_v17 = vrot.slane %v357_v58, 4  ;;  %v362_v19 = vrot.slane %v360_v63, 5  ;;  %v8289_v22 = vld [vmem:[%s10914_s0 + $0x80] sm:$0x1]  ;;  %v8304_v53 = vld [vmem:[%s10914_s0 + $0x84] sm:$0xf] }
  0x2b   :  { %v376_v21 = vshll.u32 %v8259_v50, 16  ;;  %v8282_v23 = vcombine.low %v321_v47, %v331_v12  ;;  %v345_v24 = vsel %vm8035_vm3, %v340_v6, %v344_v42  ;;  %v368_v30 = vrot.slane %v366_v8, 5  ;;  %v8316_v8 = vld [vmem:[%s10915_s1 + $0xc] sm:$0x3] }
  0x2c   :  { %v350_v27 = vrot.slane %v349_v7, 4  ;;  %v363_v31 = vor.u32 %v362_v19, %v359_v17  ;;  %v372_v36 = vrot.slane %v370_v9, 4  ;;  %v381_v43 = vshrl.u32 %v8272_v10, 16  ;;  %7810 = vmatprep.subr.msk.bf16.mxu0 %vm1103_vm0, %v8316_v8 }
  0x2d   :  { %11067 = vst [vmem:[#allocation12_spill] sm:$0xff] %v8282_v23  ;;  %v378_v37 = vrot.slane %v376_v21, 5  ;;  %6958 = vmatprep.mubr.msk.bf16.mxu0 %vm1006_vm4, %v8282_v23  ;;  %6695 = vmatmul.mubr.msk.bf16.gmra.mrb[12].mxu1 %vm1006_vm4, %v8282_v23  ;;  %v384_v47 = vshll.u32 %v8272_v10, 16  ;;  %v390_v48 = vshll.u32 %v8280_v56, 16  ;;  %v394_v49 = vshrl.u32 %v8280_v56, 16 }
  0x2e   :  { %v355_v42 = vsel %vm8035_vm3, %v350_v27, %v354_v57  ;;  %v364_v63 = vrot.slane %v363_v31, 4  ;;  %v373_v6 = vor.u32 %v372_v36, %v368_v30  ;;  %v383_v7 = vrot.slane %v381_v43, 4  ;;  %v8311_v57 = vld [vmem:[%s10914_s0 + $0x88] sm:$0xf] }
  0x2f   :  { %v8306_v58 = vcombine.low %v345_v24, %v355_v42  ;;  %v386_v9 = vrot.slane %v384_v47, 5  ;;  %v392_v12 = vrot.slane %v390_v48, 5  ;;  %v396_v17 = vrot.slane %v394_v49, 4  ;;  %v8332_v47 = vld [vmem:[%s10914_s0 + $0x8c] sm:$0x1] }
  0x30   :  { %v400_v19 = vshll.u32 %v8289_v22, 16  ;;  %v369_v21 = vsel %vm8035_vm3, %v364_v63, %v368_v30  ;;  %v374_v24 = vrot.slane %v373_v6, 4  ;;  %v405_v27 = vshrl.u32 %v8304_v53, 16  ;;  %v64_v30 = vld [vmem:[%s10914_s0 + $0x90] sm:$0xf] }
  0x31   :  { %11068 = vst [vmem:[#allocation13_spill] sm:$0xff] %v8306_v58  ;;  %6698 = vmatprep.mubr.msk.bf16.mxu1 %vm1006_vm4, %v8306_v58  ;;  %v408_v31 = vshll.u32 %v8304_v53, 16  ;;  %6959 = vmatmul.mubr.msk.bf16.gmra.mrb[12].mxu0 %vm1006_vm4, %v8306_v58  ;;  %v387_v36 = vor.u32 %v386_v9, %v383_v7  ;;  %v397_v43 = vor.u32 %v396_v17, %v392_v12  ;;  %v414_v48 = vshll.u32 %v8311_v57, 16  ;;  %v65_v9 = vld [vmem:[%s10914_s0 + $0x94] sm:$0xf] }
  0x32   :  { %v402_v42 = vrot.slane %v400_v19, 5  ;;  %v379_v49 = vsel %vm8035_vm3, %v374_v24, %v378_v37  ;;  %v407_v63 = vrot.slane %v405_v27, 4  ;;  %v418_v7 = vshrl.u32 %v8311_v57, 16  ;;  %v8358_v24 = vld [vmem:[%s10914_s0 + $0x98] sm:$0x1] }
  0x33   :  { %v410_v6 = vrot.slane %v408_v31, 5  ;;  %v8344_v17 = vcombine.low %v369_v21, %v379_v49  ;;  %v388_v19 = vrot.slane %v387_v36, 4  ;;  %v398_v60 = vrot.slane %v397_v43, 4  ;;  %v67_v36 = vld [vmem:[%s10914_s0 + $0x9c] sm:$0xf] }
  0x34   :  { %v416_v59 = vrot.slane %v414_v48, 5  ;;  %v420_v2 = vrot.slane %v418_v7, 4  ;;  %v424_v58 = vshll.u32 %v8332_v47, 16  ;;  %v429_v23 = vshrl.u32 %v64_v30, 16 }
  0x35   :  { %11069 = vst [vmem:[#allocation14_spill] sm:$0xff] %v8344_v17  ;;  %v411_v39 = vor.u32 %v410_v6, %v407_v63  ;;  %6962 = vmatprep.mubr.msk.bf16.mxu0 %vm1006_vm4, %v8344_v17  ;;  %6699 = vmatmul.mubr.msk.bf16.gmra.mrb[16].mxu1 %vm1006_vm4, %v8344_v17  ;;  %v393_v37 = vsel %vm8035_vm3, %v388_v19, %v392_v12  ;;  %v432_v27 = vshll.u32 %v64_v30, 16  ;;  %v438_v31 = vshll.u32 %v65_v9, 16 }
  0x36   :  { %v403_v21 = vsel %vm8035_vm3, %v398_v60, %v402_v42  ;;  %v421_v49 = vor.u32 %v420_v2, %v416_v59  ;;  %v426_v63 = vrot.slane %v424_v58, 5  ;;  %v68_v60 = vld [vmem:[%s10914_s0 + $0xa0] sm:$0xf]  ;;  %v431_v12 = vrot.slane %v429_v23, 4  ;;  %v69_v2 = vld [vmem:[%s10914_s0 + $0xa4] sm:$0x1] }
  0x37   :  { %v8363_v43 = vcombine.low %v393_v37, %v403_v21  ;;  %v412_v48 = vrot.slane %v411_v39, 4  ;;  %v434_v42 = vrot.slane %v432_v27, 5  ;;  %v440_v6 = vrot.slane %v438_v31, 5  ;;  %v70_v27 = vld [vmem:[%s10914_s0 + $0xa8] sm:$0xf] }
  0x38   :  { %v442_v7 = vshrl.u32 %v65_v9, 16  ;;  %v422_v19 = vrot.slane %v421_v49, 4  ;;  %v448_v37 = vshll.u32 %v8358_v24, 16  ;;  %v453_v39 = vshrl.u32 %v67_v36, 16 }
  0x39   :  { %11070 = vst [vmem:[#allocation15_spill] sm:$0xff] %v8363_v43  ;;  %6702 = vmatprep.mubr.msk.bf16.mxu1 %vm1006_vm4, %v8363_v43  ;;  %v417_v30 = vsel %vm8035_vm3, %v412_v48, %v416_v59  ;;  %6963 = vmatmul.mubr.msk.bf16.gmra.mrb[16].mxu0 %vm1006_vm4, %v8363_v43  ;;  %v435_v23 = vor.u32 %v434_v42, %v431_v12  ;;  %v456_v9 = vshll.u32 %v67_v36, 16  ;;  %v462_v21 = vshll.u32 %v68_v60, 16  ;;  %v71_v36 = vld [vmem:[%s10914_s0 + $0xac] sm:$0xf] }
  0x3a   :  { %v444_v58 = vrot.slane %v442_v7, 4  ;;  %v427_v59 = vsel %vm8035_vm3, %v422_v19, %v426_v63  ;;  %v450_v31 = vrot.slane %v448_v37, 5  ;;  %v455_v48 = vrot.slane %v453_v39, 4  ;;  %v72_v19 = vld [vmem:[%s10914_s0 + $0xb0] sm:$0x1] }
  0x3b   :  { %v466_v49 = vshrl.u32 %v68_v60, 16  ;;  %v8383_v17 = vcombine.low %v417_v30, %v427_v59  ;;  %v436_v46 = vrot.slane %v435_v23, 4  ;;  %v458_v26 = vrot.slane %v456_v9, 5  ;;  %v73_v9 = vld [vmem:[%s10914_s0 + $0xb4] sm:$0xf] }
  0x3c   :  { %v445_v55 = vor.u32 %v444_v58, %v440_v6  ;;  %v464_v12 = vrot.slane %v462_v21, 5  ;;  %v472_v7 = vshll.u32 %v69_v2, 16  ;;  %v477_v43 = vshrl.u32 %v70_v27, 16 }
  0x3d   :  { %11071 = vst [vmem:[#allocation16_spill] sm:$0xff] %v8383_v17  ;;  %v468_v42 = vrot.slane %v466_v49, 4  ;;  %6966 = vmatprep.mubr.msk.bf16.mxu0 %vm1006_vm4, %v8383_v17  ;;  %6703 = vmatmul.mubr.msk.bf16.gmra.mrb[20].mxu1 %vm1006_vm4, %v8383_v17  ;;  %v441_v63 = vsel %vm8035_vm3, %v436_v46, %v440_v6  ;;  %v459_v30 = vor.u32 %v458_v26, %v455_v48  ;;  %v480_v37 = vshll.u32 %v70_v27, 16  ;;  %v74_v26 = vld [vmem:[%s10914_s0 + $0xb8] sm:$0xf] }
  0x3e   :  { %v446_v60 = vrot.slane %v445_v55, 4  ;;  %v474_v23 = vrot.slane %v472_v7, 5  ;;  %v479_v2 = vrot.slane %v477_v43, 4  ;;  %v486_v58 = vshll.u32 %v71_v36, 16 }
  0x3f   :  { %v469_v39 = vor.u32 %v468_v42, %v464_v12  ;;  %v460_v59 = vrot.slane %v459_v30, 4  ;;  %v482_v46 = vrot.slane %v480_v37, 5  ;;  %v490_v55 = vshrl.u32 %v71_v36, 16 }
  0x40   :  { %v451_v21 = vsel %vm8035_vm3, %v446_v60, %v450_v31  ;;  %v488_v48 = vrot.slane %v486_v58, 5  ;;  %v496_v43 = vshll.u32 %v72_v19, 16  ;;  %v8412_v31 = vld [vmem:[%s10914_s0 + $0xbc] sm:$0x1]  ;;  %v501_v36 = vshrl.u32 %v73_v9, 16 }
  0x41   :  { %v8405_v6 = vcombine.low %v441_v63, %v451_v21  ;;  %v470_v27 = vrot.slane %v469_v39, 4  ;;  %v465_v49 = vsel %vm8035_vm3, %v460_v59, %v464_v12  ;;  %v483_v42 = vor.u32 %v482_v46, %v479_v2  ;;  %v8423_v19 = vld [vmem:[%s10914_s0 + $0xc0] sm:$0xf]  ;;  %v8430_v21 = vld [vmem:[%s10914_s0 + $0xc4] sm:$0xf] }
  0x42   :  { %v492_v7 = vrot.slane %v490_v55, 4  ;;  %v498_v60 = vrot.slane %v496_v43, 5  ;;  %v504_v30 = vshll.u32 %v73_v9, 16  ;;  %v510_v12 = vshll.u32 %v74_v26, 16  ;;  %v8442_v43 = vld [vmem:[%s10914_s0 + $0xc8] sm:$0x1] }
  0x43   :  { %11072 = vst [vmem:[#allocation17_spill] sm:$0xff] %v8405_v6  ;;  %6967 = vmatmul.mubr.msk.bf16.gmra.mrb[20].mxu0 %vm1006_vm4, %v8405_v6  ;;  %6706 = vmatprep.mubr.msk.bf16.mxu1 %vm1006_vm4, %v8405_v6  ;;  %v475_v63 = vsel %vm8035_vm3, %v470_v27, %v474_v23  ;;  %v484_v39 = vrot.slane %v483_v42, 4  ;;  %v503_v58 = vrot.slane %v501_v36, 4  ;;  %v514_v46 = vshrl.u32 %v74_v26, 16 }
  0x44   :  { %v8425_v37 = vcombine.low %v465_v49, %v475_v63  ;;  %v493_v2 = vor.u32 %v492_v7, %v488_v48  ;;  %v506_v59 = vrot.slane %v504_v30, 5  ;;  %v512_v23 = vrot.slane %v510_v12, 5  ;;  %v82_v30 = vld [vmem:[%s10914_s0 + $0xd8] sm:$0xf] }
  0x45   :  { %v520_v9 = vshll.u32 %v8412_v31, 16  ;;  %v489_v55 = vsel %vm8035_vm3, %v484_v39, %v488_v48  ;;  %v3128_v49 = vshrl.u32 %v8423_v19, 16  ;;  %v3131_v26 = vshll.u32 %v8423_v19, 16 }
  0x46   :  { %11073 = vst [vmem:[#allocation18_spill] sm:$0xff] %v8425_v37  ;;  %6970 = vmatprep.mubr.msk.bf16.mxu0 %vm1006_vm4, %v8425_v37  ;;  %6707 = vmatmul.mubr.msk.bf16.gmra.mrb[24].mxu1 %vm1006_vm4, %v8425_v37  ;;  %v494_v27 = vrot.slane %v493_v2, 4  ;;  %v507_v42 = vor.u32 %v506_v59, %v503_v58  ;;  %v516_v7 = vrot.slane %v514_v46, 4  ;;  %v3137_v63 = vshll.u32 %v8430_v21, 16  ;;  %v83_v37 = vld [vmem:[%s10914_s0 + $0xdc] sm:$0xf] }
  0x47   :  { %v522_v36 = vrot.slane %v520_v9, 5  ;;  %v3130_v12 = vrot.slane %v3128_v49, 4  ;;  %v3133_v39 = vrot.slane %v3131_v26, 5  ;;  %v3141_v2 = vshrl.u32 %v8430_v21, 16 }
  0x48   :  { %v499_v48 = vsel %vm8035_vm3, %v494_v27, %v498_v60  ;;  %v508_v59 = vrot.slane %v507_v42, 4  ;;  %v517_v46 = vor.u32 %v516_v7, %v512_v23  ;;  %v3139_v9 = vrot.slane %v3137_v63, 5 }
  0x49   :  { %v8456_v58 = vcombine.low %v489_v55, %v499_v48  ;;  %v3134_v6 = vor.u32 %v3133_v39, %v3130_v12  ;;  %v3143_v17 = vrot.slane %v3141_v2, 4  ;;  %v3147_v1 = vshll.u32 %v8442_v43, 16  ;;  %v84_v55 = vld [vmem:[%s10914_s0 + $0xe0] sm:$0x1]  ;;  %v8471_v12 = vld [vmem:[%s10914_s0 + $0xe4] sm:$0xf] }
  0x4a   :  { %v525_v41 = vshrl.u32 %v82_v30, 16  ;;  %v513_v60 = vsel %vm8035_vm3, %v508_v59, %v512_v23  ;;  %v518_v27 = vrot.slane %v517_v46, 4  ;;  %v528_v49 = vshll.u32 %v82_v30, 16  ;;  %11075 = vst [vmem:[#allocation20_spill] sm:$0xff] %v8471_v12  ;;  %v8478_v30 = vld [vmem:[%s10914_s0 + $0xe8] sm:$0xf] }
  0x4b   :  { %11074 = vst [vmem:[#allocation19_spill] sm:$0xff] %v8456_v58  ;;  %6971 = vmatmul.mubr.msk.bf16.gmra.mrb[24].mxu0 %vm1006_vm4, %v8456_v58  ;;  %6710 = vmatprep.mubr.msk.bf16.mxu1 %vm1006_vm4, %v8456_v58  ;;  %v534_v26 = vshll.u32 %v83_v37, 16  ;;  %v3135_v42 = vrot.slane %v3134_v6, 4  ;;  %v3144_v7 = vor.u32 %v3143_v17, %v3139_v9  ;;  %v3149_v63 = vrot.slane %v3147_v1, 5  ;;  %11076 = vst [vmem:[#allocation21_spill] sm:$0xff] %v8478_v30 }
  0x4c   :  { %v527_v48 = vrot.slane %v525_v41, 4  ;;  %v523_v39 = vsel %vm8035_vm3, %v518_v27, %v522_v36  ;;  %v530_v23 = vrot.slane %v528_v49, 5  ;;  %v538_v59 = vshrl.u32 %v83_v37, 16  ;;  %v8487_v46 = vld [vmem:[%s10914_s0 + $0xec] sm:$0x1] }
  0x4d   :  { %v536_v2 = vrot.slane %v534_v26, 5  ;;  %v8480_v6 = vcombine.low %v513_v60, %v523_v39  ;;  %v3140_v41 = vsel %vm8035_vm3, %v3135_v42, %v3139_v9  ;;  %v3145_v1 = vrot.slane %v3144_v7, 4  ;;  %11078 = vst [vmem:[#allocation23_spill] sm:$0xff] %v8487_v46  ;;  %v8492_v37 = vld [vmem:[%s10915_s1 + $0x4] sm:$0x3] }
  0x4e   :  { %v544_v17 = vshll.u32 %v84_v55, 16  ;;  %11079 = vst [vmem:[#allocation24_spill] sm:$0xff] %v8492_v37  ;;  %v531_v36 = vor.u32 %v530_v23, %v527_v48  ;;  %v540_v27 = vrot.slane %v538_v59, 4  ;;  %v549_v60 = vshrl.u32 %v8471_v12, 16  ;;  %7805 = vmatprep.subr.msk.bf16.mxu1 %vm1103_vm0, %v8492_v37 }
  0x4f   :  { %11077 = vst [vmem:[#allocation22_spill] sm:$0xff] %v8480_v6  ;;  %v552_v49 = vshll.u32 %v8471_v12, 16 }
  0x50   :  { %12 = vsyncpa [#allocation3], 0  ;;  %6974 = vmatprep.mubr.msk.bf16.mxu0 %vm1006_vm4, %v8480_v6  ;;  %6711 = vmatmul.mubr.msk.bf16.gmra.mrb[28].mxu1 %vm1006_vm4, %v8480_v6  ;;  %v3150_v9 = vsel %vm8035_vm3, %v3145_v1, %v3149_v63  ;;  %v546_v55 = vrot.slane %v544_v17, 5  ;;  %v558_v26 = vshll.u32 %v8478_v30, 16  ;;  %v562_v42 = vshrl.u32 %v8478_v30, 16 }
  0x51   :  { %v8509_v7 = vld [vmem:[%s10914_s0 + $0xf0] sm:$0xf]  ;;  %v8511_v48 = vcombine.low %v3140_v41, %v3150_v9  ;;  %v532_v39 = vrot.slane %v531_v36, 4  ;;  %v541_v23 = vor.u32 %v540_v27, %v536_v2  ;;  %v551_v59 = vrot.slane %v549_v60, 4  ;;  %v8516_v6 = vld [vmem:[%s10914_s0 + $0xf4] sm:$0xf] }
  0x52   :  { %11080 = vst [vmem:[#allocation25_spill] sm:$0xff] %v8509_v7  ;;  %v554_v63 = vrot.slane %v552_v49, 5  ;;  %v560_v1 = vrot.slane %v558_v26, 5  ;;  %v564_v17 = vrot.slane %v562_v42, 4  ;;  %v568_v58 = vshll.u32 %v8487_v46, 16 }
  0x53   :  { %11081 = vst [vmem:[#allocation26_spill] sm:$0xff] %v8511_v48  ;;  %6975 = vmatmul.mubr.msk.bf16.gmra.mrb[28].mxu0 %vm1006_vm4, %v8511_v48  ;;  %v537_v41 = vsel %vm8035_vm3, %v532_v39, %v536_v2  ;;  %v542_v9 = vrot.slane %v541_v23, 4  ;;  %v573_v36 = vshrl.u32 %v8509_v7, 16  ;;  %v576_v27 = vshll.u32 %v8509_v7, 16  ;;  %v8528_v49 = vld [vmem:[%s10914_s0 + $0xf8] sm:$0x1] }
  0x54   :  { %v555_v60 = vor.u32 %v554_v63, %v551_v59  ;;  %v565_v37 = vor.u32 %v564_v17, %v560_v1  ;;  %v570_v30 = vrot.slane %v568_v58, 5  ;;  %v582_v26 = vshll.u32 %v8516_v6, 16  ;;  %v8537_v58 = vld [vmem:[%s10914_s0 + $0xfc] sm:$0xf] }
  0x55   :  { %v547_v42 = vsel %vm8035_vm3, %v542_v9, %v546_v55  ;;  %v575_v48 = vrot.slane %v573_v36, 4  ;;  %v578_v2 = vrot.slane %v576_v27, 5  ;;  %v586_v39 = vshrl.u32 %v8516_v6, 16  ;;  %11082 = vst [vmem:[#allocation27_spill] sm:$0xff] %v8537_v58  ;;  %v8543_v55 = vld [vmem:[%s10914_s0 + $0x100] sm:$0xf] }
  0x56   :  { %v5948_v23 = vcombine.low %v537_v41, %v547_v42  ;;  %v556_v46 = vrot.slane %v555_v60, 4  ;;  %v566_v7 = vrot.slane %v565_v37, 4  ;;  %v584_v59 = vrot.slane %v582_v26, 5  ;;  %v8554_v9 = vld [vmem:[%s10914_s0 + $0x104] sm:$0x1] }
  0x57   :  { %v579_v63 = vor.u32 %v578_v2, %v575_v48  ;;  %v588_v17 = vrot.slane %v586_v39, 4  ;;  %v592_v12 = vshll.u32 %v8528_v49, 16  ;;  %vm1976_vm5 = vcmask 1042432  }
  0x58   :  { %6714 = vmatprep.mubr.msk.bf16.mxu1 %vm1006_vm4, %v5948_v23  ;;  %v561_v37 = vsel %vm8035_vm3, %v556_v46, %v560_v1  ;;  %v571_v41 = vsel %vm8035_vm3, %v566_v7, %v570_v30  ;;  %vm1977_vm6 = vcmask 1046532   ;;  %v6061_v48 = vrot.slane %v8007_v11, 9 }
  0x59   :  { %v5949_v36 = vcombine.low %v561_v37, %v571_v41  ;;  %v580_v27 = vrot.slane %v579_v63, 4  ;;  %v589_v60 = vor.u32 %v588_v17, %v584_v59  ;;  %v594_v26 = vrot.slane %v592_v12, 5  ;;  %vm8557_vm7 = vmor %vm1976_vm5, %vm1977_vm6 }
  0x5a   :  { %v1988_v46 = vrot.slane %v8012_v13, 5  ;;  %v597_v30 = vshrl.u32 %v8537_v58, 16  ;;  %v600_v11 = vshll.u32 %v8537_v58, 16  ;;  %v606_v7 = vshll.u32 %v8543_v55, 16 }
  0x5b   :  { %6978 = vmatprep.mubr.msk.bf16.mxu0 %vm1006_vm4, %v5949_v36  ;;  %6715 = vmatmul.mubr.msk.bf16.gmra.mrb[32].mxu1 %vm1006_vm4, %v5949_v36  ;;  %v585_v12 = vsel %vm8035_vm3, %v580_v27, %v584_v59  ;;  %v590_v1 = vrot.slane %v589_v60, 4  ;;  %v610_v2 = vshrl.u32 %v8543_v55, 16  ;;  %v616_v39 = vshll.u32 %v8554_v9, 16  ;;  %v8578_v59 = vld [vmem:[%s10914_s0 + $0x108] sm:$0xf] }
  0x5c   :  { %v1989_v13 = vsel %vm8557_vm7, %v6061_v48, %v1988_v46  ;;  %v1990_v23 = vrot.slane %v1988_v46, 4  ;;  %v599_v63 = vrot.slane %v597_v30, 4  ;;  %v602_v17 = vrot.slane %v600_v11, 5 }
  0x5d   :  { %v595_v37 = vsel %vm8035_vm3, %v590_v1, %v594_v26  ;;  %v608_v41 = vrot.slane %v606_v7, 5  ;;  %v612_v58 = vrot.slane %v610_v2, 4  ;;  %v618_v36 = vrot.slane %v616_v39, 5  ;;  %v8590_v26 = vld [vmem:[%s10914_s0 + $0x10c] sm:$0xf] }
  0x5e   :  { %v8580_v27 = vcombine.low %v585_v12, %v595_v37  ;;  %v11086_v60 = vrot.slane %v8017_v14, 5  ;;  %v603_v46 = vor.u32 %v602_v17, %v599_v63  ;;  %v6062_v30 = vrot.slane %v8031_v28, 9 }
  0x5f   :  { %v613_v7 = vor.u32 %v612_v58, %v608_v41  ;;  %v11088_v1 = vrot.slane %v8042_v33, 5  ;;  %v3950_v14 = vsel %vm1103_vm0, %v8316_v8, 0  ;;  %v8609_v58 = vld [vmem:[%s10914_s0 + $0x110] sm:$0x1]  ;;  %v624_v8 = vshll.u32 %v8578_v59, 16 }
  0x60   :  { %11085 = vst [vmem:[#allocation28_spill] sm:$0xff] %v8580_v27  ;;  %v1992_v48 = vsel %vm8557_vm7, %v1990_v23, %v11086_v60  ;;  %6979 = vmatmul.mubr.msk.bf16.gmra.mrb[32].mxu0 %vm1006_vm4, %v8580_v27  ;;  %6718 = vmatprep.mubr.msk.bf16.mxu1 %vm1006_vm4, %v8580_v27  ;;  %v604_v28 = vrot.slane %v603_v46, 4  ;;  %v11090_v63 = vrot.slane %v8048_v40, 5  ;;  %v630_v17 = vshll.u32 %v8590_v26, 16 }
  0x61   :  { %v8592_v11 = vcombine.low %v1989_v13, %v1992_v48  ;;  %v1997_v12 = vrot.slane %v11088_v1, 4  ;;  %v11089_v2 = vmov %v11088_v1  ;;  %v621_v13 = vshrl.u32 %v8578_v59, 16 }
  0x62   :  { %v1996_v39 = vsel %vm8557_vm7, %v6062_v30, %v11089_v2  ;;  %v614_v23 = vrot.slane %v613_v7, 4  ;;  %v634_v37 = vshrl.u32 %v8590_v26, 16  ;;  %v609_v60 = vsel %vm8035_vm3, %v604_v28, %v608_v41  ;;  %v8628_v7 = vld [vmem:[%s10914_s0 + $0x114] sm:$0xf] }
  0x63   :  { %11087 = vst [vmem:[#allocation29_spill] sm:$0xff] %v8592_v11  ;;  %7012 = vmatprep.mubr.msk.bf16.mxu0 %vm1006_vm4, %v8592_v11  ;;  %v1999_v33 = vsel %vm8557_vm7, %v1997_v12, %v11090_v63  ;;  %v623_v46 = vrot.slane %v621_v13, 4  ;;  %v626_v30 = vrot.slane %v624_v8, 5  ;;  %v632_v1 = vrot.slane %v630_v17, 5 }
  0x64   :  { %v8623_v48 = vcombine.low %v1996_v39, %v1999_v33  ;;  %v619_v40 = vsel %vm8035_vm3, %v614_v23, %v618_v36  ;;  %v636_v12 = vrot.slane %v634_v37, 4  ;;  %v640_v2 = vshll.u32 %v8609_v58, 16  ;;  %v8640_v39 = vld [vmem:[%s10914_s0 + $0x118] sm:$0xf]  ;;  %v8646_v23 = vld [vmem:[%s10914_s0 + $0x11c] sm:$0x1] }
  0x65   :  { %v8633_v63 = vcombine.low %v609_v60, %v619_v40  ;;  %v627_v27 = vor.u32 %v626_v30, %v623_v46  ;;  %v6063_v41 = vrot.slane %v8060_v51, 9  ;;  %v2002_v28 = vrot.slane %v8077_v61, 5 }
  0x66   :  { %11091 = vst [vmem:[#allocation30_spill] sm:$0xff] %v8623_v48  ;;  %v637_v13 = vor.u32 %v636_v12, %v632_v1  ;;  %v642_v8 = vrot.slane %v640_v2, 5  ;;  %v2005_v36 = vrot.slane %v8082_v62, 5  ;;  %v645_v33 = vshrl.u32 %v8628_v7, 16 }
  0x67   :  { %11092 = vst [vmem:[#allocation31_spill] sm:$0xff] %v8633_v63  ;;  %6719 = vmatmul.mubr.msk.bf16.gmra.mrb[36].mxu1 %vm1006_vm4, %v8633_v63  ;;  %v628_v51 = vrot.slane %v627_v27, 4  ;;  %v2003_v61 = vsel %vm8557_vm7, %v6063_v41, %v2002_v28  ;;  %v2004_v17 = vrot.slane %v2002_v28, 4  ;;  %v648_v37 = vshll.u32 %v8628_v7, 16  ;;  %v8666_v41 = vld [vmem:[%s10914_s0 + $0x120] sm:$0xf] }
  0x68   :  { %v638_v60 = vrot.slane %v637_v13, 4  ;;  %v647_v46 = vrot.slane %v645_v33, 4  ;;  %v654_v62 = vshll.u32 %v8640_v39, 16  ;;  %v658_v30 = vshrl.u32 %v8640_v39, 16  ;;  %7013 = vmatmul.mubr.msk.bf16.vlgmr.msra.gmra.mrb[0].mxu0 %vm1006_vm4, %v8623_v48 }
  0x69   :  { %v633_v40 = vsel %vm8035_vm3, %v628_v51, %v632_v1  ;;  %v2006_v27 = vsel %vm8557_vm7, %v2004_v17, %v2005_v36  ;;  %v650_v12 = vrot.slane %v648_v37, 5  ;;  %v664_v2 = vshll.u32 %v8646_v23, 16  ;;  %7077 = vmatpush3.bf16.msra.mxu0 %v3950_v14  ;;  %v8675_v1 = vld [vmem:[%s10914_s0 + $0x124] sm:$0xf] }
  0x6a   :  { %v643_v28 = vsel %vm8035_vm3, %v638_v60, %v642_v8  ;;  %v8670_v13 = vcombine.low %v2003_v61, %v2006_v27  ;;  %v656_v33 = vrot.slane %v654_v62, 5  ;;  %v660_v63 = vrot.slane %v658_v30, 4 }
  0x6b   :  { %v8677_v36 = vcombine.low %v633_v40, %v643_v28  ;;  %v651_v51 = vor.u32 %v650_v12, %v647_v46  ;;  %v666_v17 = vrot.slane %v664_v2, 5  ;;  %v6064_v37 = vrot.slane %v8092_v4, 9  ;;  %v8690_v46 = vld [vmem:[%s10914_s0 + $0x128] sm:$0x1] }
  0x6c   :  { %11093 = vst [vmem:[#allocation32_spill] sm:$0xff] %v8670_v13  ;;  %7016 = vmatprep.mubr.msk.bf16.mxu0 %vm1006_vm4, %v8670_v13  ;;  %v661_v14 = vor.u32 %v660_v63, %v656_v33  ;;  %v2009_v8 = vrot.slane %v8102_v16, 5  ;;  %v2012_v61 = vrot.slane %v8111_v20, 5  ;;  %v669_v60 = vshrl.u32 %v8666_v41, 16 }
  0x6d   :  { %11094 = vst [vmem:[#allocation33_spill] sm:$0xff] %v8677_v36  ;;  %6722 = vmatprep.mubr.msk.bf16.mxu1 %vm1006_vm4, %v8677_v36  ;;  %v652_v62 = vrot.slane %v651_v51, 4  ;;  %v672_v4 = vshll.u32 %v8666_v41, 16  ;;  %v678_v30 = vshll.u32 %v8675_v1, 16  ;;  %v682_v63 = vshrl.u32 %v8675_v1, 16 }
  0x6e   :  { %v662_v16 = vrot.slane %v661_v14, 4  ;;  %v2010_v20 = vsel %vm8557_vm7, %v6064_v37, %v2009_v8  ;;  %v2011_v40 = vrot.slane %v2009_v8, 4  ;;  %v671_v27 = vrot.slane %v669_v60, 4  ;;  %v8702_v36 = vld [vmem:[%s10914_s0 + $0x12c] sm:$0xf] }
  0x6f   :  { %v657_v12 = vsel %vm8035_vm3, %v652_v62, %v656_v33  ;;  %v674_v2 = vrot.slane %v672_v4, 5  ;;  %v680_v28 = vrot.slane %v678_v30, 5  ;;  %v684_v51 = vrot.slane %v682_v63, 4  ;;  %v8713_v33 = vld [vmem:[%s10914_s0 + $0x130] sm:$0xf] }
  0x70   :  { %v667_v13 = vsel %vm8035_vm3, %v662_v16, %v666_v17  ;;  %v2013_v14 = vsel %vm8557_vm7, %v2011_v40, %v2012_v61  ;;  %v688_v37 = vshll.u32 %v8690_v46, 16  ;;  %v6065_v8 = vrot.slane %v8119_v32, 9 }
  0x71   :  { %v8715_v60 = vcombine.low %v657_v12, %v667_v13  ;;  %v8717_v62 = vcombine.low %v2010_v20, %v2013_v14  ;;  %v675_v4 = vor.u32 %v674_v2, %v671_v27  ;;  %v685_v30 = vor.u32 %v684_v51, %v680_v28  ;;  %v8729_v20 = vld [vmem:[%s10914_s0 + $0x134] sm:$0x1] }
  0x72   :  { %v690_v63 = vrot.slane %v688_v37, 5  ;;  %v2016_v17 = vrot.slane %v8128_v38, 5  ;;  %v2019_v61 = vrot.slane %v8142_v52, 5  ;;  %v693_v16 = vshrl.u32 %v8702_v36, 16 }
  0x73   :  { %11095 = vst [vmem:[#allocation34_spill] sm:$0xff] %v8715_v60  ;;  %11096 = vst [vmem:[#allocation35_spill] sm:$0xff] %v8717_v62  ;;  %6723 = vmatmul.mubr.msk.bf16.gmra.mrb[40].mxu1 %vm1006_vm4, %v8715_v60  ;;  %7017 = vmatmul.mubr.msk.bf16.gmra.mrb[4].mxu0 %vm1006_vm4, %v8717_v62  ;;  %v676_v32 = vrot.slane %v675_v4, 4  ;;  %v686_v13 = vrot.slane %v685_v30, 4  ;;  %v696_v40 = vshll.u32 %v8702_v36, 16  ;;  %v702_v38 = vshll.u32 %v8713_v33, 16 }
  0x74   :  { %v2017_v52 = vsel %vm8557_vm7, %v6065_v8, %v2016_v17  ;;  %v2018_v27 = vrot.slane %v2016_v17, 4  ;;  %v695_v12 = vrot.slane %v693_v16, 4  ;;  %v706_v2 = vshrl.u32 %v8713_v33, 16  ;;  %v8743_v30 = vld [vmem:[%s10914_s0 + $0x138] sm:$0xf] }
  0x75   :  { %v681_v51 = vsel %vm8035_vm3, %v676_v32, %v680_v28  ;;  %v691_v14 = vsel %vm8035_vm3, %v686_v13, %v690_v63  ;;  %v698_v37 = vrot.slane %v696_v40, 5  ;;  %v704_v4 = vrot.slane %v702_v38, 5  ;;  %v8757_v13 = vld [vmem:[%s10914_s0 + $0x13c] sm:$0xf]  ;;  %v8762_v40 = vld [vmem:[%s10914_s0 + $0x140] sm:$0x1] }
  0x76   :  { %v8745_v60 = vcombine.low %v681_v51, %v691_v14  ;;  %v2020_v8 = vsel %vm8557_vm7, %v2018_v27, %v2019_v61  ;;  %v708_v17 = vrot.slane %v706_v2, 4  ;;  %v712_v16 = vshll.u32 %v8729_v20, 16 }
  0x77   :  { %v8750_v62 = vcombine.low %v2017_v52, %v2020_v8  ;;  %v699_v28 = vor.u32 %v698_v37, %v695_v12  ;;  %v6066_v63 = vrot.slane %v8152_v0, 9  ;;  %v2023_v32 = vrot.slane %v8159_v3, 5  ;;  %v8771_v3 = vld [vmem:[%s10915_s1 + $0xe] sm:$0x3] }
  0x78   :  { %11097 = vst [vmem:[#allocation36_spill] sm:$0xff] %v8745_v60  ;;  %6726 = vmatprep.mubr.msk.bf16.mxu1 %vm1006_vm4, %v8745_v60  ;;  %v709_v61 = vor.u32 %v708_v17, %v704_v4  ;;  %v714_v38 = vrot.slane %v712_v16, 5  ;;  %v2026_v52 = vrot.slane %v8173_v18, 5  ;;  %v717_v0 = vshrl.u32 %v8743_v30, 16  ;;  %11099 = vst [vmem:[#allocation38_spill] sm:$0xff] %v8771_v3  ;;  %7811 = vmatprep.subr.msk.bf16.mxu0 %vm1103_vm0, %v8771_v3 }
  0x79   :  { %11098 = vst [vmem:[#allocation37_spill] sm:$0xff] %v8750_v62  ;;  %7020 = vmatprep.mubr.msk.bf16.mxu0 %vm1006_vm4, %v8750_v62  ;;  %v700_v27 = vrot.slane %v699_v28, 4  ;;  %v2024_v12 = vsel %vm8557_vm7, %v6066_v63, %v2023_v32  ;;  %v2025_v2 = vrot.slane %v2023_v32, 4  ;;  %v720_v51 = vshll.u32 %v8743_v30, 16  ;;  %v8790_v32 = vld [vmem:[%s10914_s0 + $0x144] sm:$0xf] }
  0x7a   :  { %v710_v18 = vrot.slane %v709_v61, 4  ;;  %v719_v14 = vrot.slane %v717_v0, 4  ;;  %v726_v37 = vshll.u32 %v8757_v13, 16  ;;  %v730_v8 = vshrl.u32 %v8757_v13, 16 }
  0x7b   :  { %v705_v17 = vsel %vm8035_vm3, %v700_v27, %v704_v4  ;;  %v2027_v16 = vsel %vm8557_vm7, %v2025_v2, %v2026_v52  ;;  %v722_v28 = vrot.slane %v720_v51, 5  ;;  %v736_v63 = vshll.u32 %v8762_v40, 16  ;;  %v8799_v4 = vld [vmem:[%s10914_s0 + $0x148] sm:$0xf] }
  0x7c   :  { %v715_v61 = vsel %vm8035_vm3, %v710_v18, %v714_v38  ;;  %v8794_v0 = vcombine.low %v2024_v12, %v2027_v16  ;;  %v728_v60 = vrot.slane %v726_v37, 5  ;;  %v732_v62 = vrot.slane %v730_v8, 4 }
  0x7d   :  { %v8801_v52 = vcombine.low %v705_v17, %v715_v61  ;;  %v723_v27 = vor.u32 %v722_v28, %v719_v14  ;;  %v738_v2 = vrot.slane %v736_v63, 5  ;;  %v6067_v51 = vrot.slane %v8183_v25, 9  ;;  %v8814_v14 = vld [vmem:[%s10914_s0 + $0x14c] sm:$0x1] }
  0x7e   :  { %11100 = vst [vmem:[#allocation39_spill] sm:$0xff] %v8794_v0  ;;  %7021 = vmatmul.mubr.msk.bf16.gmra.mrb[8].mxu0 %vm1006_vm4, %v8794_v0  ;;  %v733_v48 = vor.u32 %v732_v62, %v728_v60  ;;  %v2030_v38 = vrot.slane %v8190_v34, 5  ;;  %v2033_v12 = vrot.slane %v8203_v45, 5  ;;  %v741_v18 = vshrl.u32 %v8790_v32, 16 }
  0x7f   :  { %11101 = vst [vmem:[#allocation40_spill] sm:$0xff] %v8801_v52  ;;  %6727 = vmatmul.mubr.msk.bf16.gmra.mrb[44].mxu1 %vm1006_vm4, %v8801_v52  ;;  %v724_v37 = vrot.slane %v723_v27, 4  ;;  %v744_v25 = vshll.u32 %v8790_v32, 16  ;;  %v750_v8 = vshll.u32 %v8799_v4, 16  ;;  %v754_v62 = vshrl.u32 %v8799_v4, 16 }
  0x80   :  { %v734_v34 = vrot.slane %v733_v48, 4  ;;  %v2031_v45 = vsel %vm8557_vm7, %v6067_v51, %v2030_v38  ;;  %v2032_v17 = vrot.slane %v2030_v38, 4  ;;  %v743_v16 = vrot.slane %v741_v18, 4  ;;  %v8826_v52 = vld [vmem:[%s10914_s0 + $0x150] sm:$0xf] }
  0x81   :  { %v729_v28 = vsel %vm8035_vm3, %v724_v37, %v728_v60  ;;  %v746_v63 = vrot.slane %v744_v25, 5  ;;  %v752_v61 = vrot.slane %v750_v8, 5  ;;  %v756_v27 = vrot.slane %v754_v62, 4  ;;  %v8837_v60 = vld [vmem:[%s10914_s0 + $0x154] sm:$0xf] }
  0x82   :  { %v739_v0 = vsel %vm8035_vm3, %v734_v34, %v738_v2  ;;  %v2034_v48 = vsel %vm8557_vm7, %v2032_v17, %v2033_v12  ;;  %v760_v51 = vshll.u32 %v8814_v14, 16  ;;  %v6068_v38 = vrot.slane %v8213_v54, 9 }
  0x83   :  { %v8839_v18 = vcombine.low %v729_v28, %v739_v0  ;;  %v8841_v37 = vcombine.low %v2031_v45, %v2034_v48  ;;  %v747_v25 = vor.u32 %v746_v63, %v743_v16  ;;  %v757_v8 = vor.u32 %v756_v27, %v752_v61  ;;  %v8853_v45 = vld [vmem:[%s10914_s0 + $0x158] sm:$0x1] }
  0x84   :  { %v762_v62 = vrot.slane %v760_v51, 5  ;;  %v2037_v2 = vrot.slane %v8220_v5, 5  ;;  %v2040_v12 = vrot.slane %v8233_v15, 5  ;;  %v765_v34 = vshrl.u32 %v8826_v52, 16 }
  0x85   :  { %11102 = vst [vmem:[#allocation41_spill] sm:$0xff] %v8839_v18  ;;  %11103 = vst [vmem:[#allocation42_spill] sm:$0xff] %v8841_v37  ;;  %6730 = vmatprep.mubr.msk.bf16.mxu1 %vm1006_vm4, %v8839_v18  ;;  %7024 = vmatprep.mubr.msk.bf16.mxu0 %vm1006_vm4, %v8841_v37  ;;  %v748_v54 = vrot.slane %v747_v25, 4  ;;  %v758_v0 = vrot.slane %v757_v8, 4  ;;  %v768_v17 = vshll.u32 %v8826_v52, 16  ;;  %v774_v5 = vshll.u32 %v8837_v60, 16 }
  0x86   :  { %v2038_v15 = vsel %vm8557_vm7, %v6068_v38, %v2037_v2  ;;  %v2039_v16 = vrot.slane %v2037_v2, 4  ;;  %v767_v28 = vrot.slane %v765_v34, 4  ;;  %v778_v63 = vshrl.u32 %v8837_v60, 16  ;;  %v8867_v8 = vld [vmem:[%s10914_s0 + $0x15c] sm:$0xf] }
  0x87   :  { %v753_v27 = vsel %vm8035_vm3, %v748_v54, %v752_v61  ;;  %v763_v48 = vsel %vm8035_vm3, %v758_v0, %v762_v62  ;;  %v770_v51 = vrot.slane %v768_v17, 5  ;;  %v776_v25 = vrot.slane %v774_v5, 5  ;;  %v8881_v0 = vld [vmem:[%s10914_s0 + $0x160] sm:$0xf] }
  0x88   :  { %v8869_v18 = vcombine.low %v753_v27, %v763_v48  ;;  %v2041_v38 = vsel %vm8557_vm7, %v2039_v16, %v2040_v12  ;;  %v780_v2 = vrot.slane %v778_v63, 4  ;;  %v784_v34 = vshll.u32 %v8853_v45, 16 }
  0x89   :  { %v8874_v37 = vcombine.low %v2038_v15, %v2041_v38  ;;  %v771_v61 = vor.u32 %v770_v51, %v767_v28  ;;  %v6069_v62 = vrot.slane %v8242_v35, 9  ;;  %v2044_v54 = vrot.slane %v8250_v44, 5  ;;  %v8889_v15 = vld [vmem:[%s10914_s0 + $0x164] sm:$0x1] }
  0x8a   :  { %11104 = vst [vmem:[#allocation43_spill] sm:$0xff] %v8869_v18  ;;  %6731 = vmatmul.mubr.msk.bf16.gmra.mrb[48].mxu1 %vm1006_vm4, %v8869_v18  ;;  %v781_v17 = vor.u32 %v780_v2, %v776_v25  ;;  %v786_v12 = vrot.slane %v784_v34, 5  ;;  %v2047_v5 = vrot.slane %v8259_v50, 5  ;;  %11106 = vst [vmem:[#allocation45_spill] sm:$0xff] %v8889_v15  ;;  %v789_v35 = vshrl.u32 %v8867_v8, 16 }
  0x8b   :  { %11105 = vst [vmem:[#allocation44_spill] sm:$0xff] %v8874_v37  ;;  %7025 = vmatmul.mubr.msk.bf16.gmra.mrb[12].mxu0 %vm1006_vm4, %v8874_v37  ;;  %v772_v44 = vrot.slane %v771_v61, 4  ;;  %v2045_v16 = vsel %vm8557_vm7, %v6069_v62, %v2044_v54  ;;  %v2046_v28 = vrot.slane %v2044_v54, 4  ;;  %v792_v63 = vshll.u32 %v8867_v8, 16  ;;  %v8907_v62 = vld [vmem:[%s10914_s0 + $0x168] sm:$0xf] }
  0x8c   :  { %v782_v27 = vrot.slane %v781_v17, 4  ;;  %v791_v48 = vrot.slane %v789_v35, 4  ;;  %v798_v50 = vshll.u32 %v8881_v0, 16  ;;  %v802_v51 = vshrl.u32 %v8881_v0, 16  ;;  %11107 = vst [vmem:[#allocation46_spill] sm:$0xff] %v8907_v62 }
  0x8d   :  { %v777_v38 = vsel %vm8035_vm3, %v772_v44, %v776_v25  ;;  %v2048_v2 = vsel %vm8557_vm7, %v2046_v28, %v2047_v5  ;;  %v794_v34 = vrot.slane %v792_v63, 5  ;;  %v808_v61 = vshll.u32 %v8889_v15, 16  ;;  %v8916_v25 = vld [vmem:[%s10914_s0 + $0x16c] sm:$0xf] }
  0x8e   :  { %v787_v54 = vsel %vm8035_vm3, %v782_v27, %v786_v12  ;;  %v8911_v17 = vcombine.low %v2045_v16, %v2048_v2  ;;  %v800_v35 = vrot.slane %v798_v50, 5  ;;  %v804_v18 = vrot.slane %v802_v51, 4  ;;  %11109 = vst [vmem:[#allocation48_spill] sm:$0xff] %v8916_v25 }
  0x8f   :  { %v8918_v5 = vcombine.low %v777_v38, %v787_v54  ;;  %v795_v44 = vor.u32 %v794_v34, %v791_v48  ;;  %v810_v28 = vrot.slane %v808_v61, 5  ;;  %v6070_v63 = vrot.slane %v8272_v10, 9  ;;  %v8931_v48 = vld [vmem:[%s10914_s0 + $0x170] sm:$0x1] }
  0x90   :  { %11108 = vst [vmem:[#allocation47_spill] sm:$0xff] %v8911_v17  ;;  %7028 = vmatprep.mubr.msk.bf16.mxu0 %vm1006_vm4, %v8911_v17  ;;  %v805_v37 = vor.u32 %v804_v18, %v800_v35  ;;  %v2051_v12 = vrot.slane %v8280_v56, 5  ;;  %v2054_v16 = vrot.slane %v8289_v22, 5  ;;  %v813_v27 = vshrl.u32 %v8907_v62, 16  ;;  %11111 = vst [vmem:[#allocation50_spill] sm:$0xff] %v8931_v48 }
  0x91   :  { %11110 = vst [vmem:[#allocation49_spill] sm:$0xff] %v8918_v5  ;;  %6734 = vmatprep.mubr.msk.bf16.mxu1 %vm1006_vm4, %v8918_v5  ;;  %v796_v50 = vrot.slane %v795_v44, 4  ;;  %v816_v10 = vshll.u32 %v8907_v62, 16  ;;  %v822_v51 = vshll.u32 %v8916_v25, 16  ;;  %v826_v18 = vshrl.u32 %v8916_v25, 16 }
  0x92   :  { %v806_v56 = vrot.slane %v805_v37, 4  ;;  %v2052_v22 = vsel %vm8557_vm7, %v6070_v63, %v2051_v12  ;;  %v2053_v38 = vrot.slane %v2051_v12, 4  ;;  %v815_v2 = vrot.slane %v813_v27, 4  ;;  %v8943_v5 = vld [vmem:[%s10914_s0 + $0x174] sm:$0xf] }
  0x93   :  { %v801_v34 = vsel %vm8035_vm3, %v796_v50, %v800_v35  ;;  %v818_v61 = vrot.slane %v816_v10, 5  ;;  %v824_v54 = vrot.slane %v822_v51, 5  ;;  %v828_v44 = vrot.slane %v826_v18, 4  ;;  %v8954_v35 = vld [vmem:[%s10914_s0 + $0x178] sm:$0xf] }
  0x94   :  { %v811_v17 = vsel %vm8035_vm3, %v806_v56, %v810_v28  ;;  %v2055_v37 = vsel %vm8557_vm7, %v2053_v38, %v2054_v16  ;;  %v832_v63 = vshll.u32 %v8931_v48, 16  ;;  %v6071_v12 = vrot.slane %v8304_v53, 9 }
  0x95   :  { %v8956_v27 = vcombine.low %v801_v34, %v811_v17  ;;  %v8958_v50 = vcombine.low %v2052_v22, %v2055_v37  ;;  %v819_v10 = vor.u32 %v818_v61, %v815_v2  ;;  %v829_v51 = vor.u32 %v828_v44, %v824_v54  ;;  %v8970_v22 = vld [vmem:[%s10914_s0 + $0x17c] sm:$0x1] }
  0x96   :  { %v834_v18 = vrot.slane %v832_v63, 5  ;;  %v2058_v28 = vrot.slane %v8311_v57, 5  ;;  %v2061_v16 = vrot.slane %v8332_v47, 5  ;;  %v837_v56 = vshrl.u32 %v8943_v5, 16 }
  0x97   :  { %11112 = vst [vmem:[#allocation51_spill] sm:$0xff] %v8956_v27  ;;  %11113 = vst [vmem:[#allocation52_spill] sm:$0xff] %v8958_v50  ;;  %6735 = vmatmul.mubr.msk.bf16.gmra.mrb[52].mxu1 %vm1006_vm4, %v8956_v27  ;;  %7029 = vmatmul.mubr.msk.bf16.gmra.mrb[16].mxu0 %vm1006_vm4, %v8958_v50  ;;  %v820_v53 = vrot.slane %v819_v10, 4  ;;  %v830_v17 = vrot.slane %v829_v51, 4  ;;  %v840_v38 = vshll.u32 %v8943_v5, 16  ;;  %v846_v57 = vshll.u32 %v8954_v35, 16 }
  0x98   :  { %v2059_v47 = vsel %vm8557_vm7, %v6071_v12, %v2058_v28  ;;  %v2060_v2 = vrot.slane %v2058_v28, 4  ;;  %v839_v34 = vrot.slane %v837_v56, 4  ;;  %v850_v61 = vshrl.u32 %v8954_v35, 16  ;;  %v8984_v51 = vld [vmem:[%s10914_s0 + $0x180] sm:$0xf] }
  0x99   :  { %v825_v44 = vsel %vm8035_vm3, %v820_v53, %v824_v54  ;;  %v835_v37 = vsel %vm8035_vm3, %v830_v17, %v834_v18  ;;  %v842_v63 = vrot.slane %v840_v38, 5  ;;  %v848_v10 = vrot.slane %v846_v57, 5  ;;  %v8996_v18 = vld [vmem:[%s10914_s0 + $0x90] sm:$0xf]  ;;  %v9002_v17 = vld [vmem:[%s10914_s0 + $0x94] sm:$0xf] }
  0x9a   :  { %v8986_v27 = vcombine.low %v825_v44, %v835_v37  ;;  %v2062_v12 = vsel %vm8557_vm7, %v2060_v2, %v2061_v16  ;;  %v852_v28 = vrot.slane %v850_v61, 4  ;;  %v856_v56 = vshll.u32 %v8970_v22, 16  ;;  %11116 = vst [vmem:[#allocation55_spill] sm:$0xff] %v8996_v18  ;;  %11117 = vst [vmem:[#allocation56_spill] sm:$0xff] %v9002_v17  ;;  %v9008_v38 = vld [vmem:[%s10914_s0 + $0x184] sm:$0xf] }
  0x9b   :  { %v8991_v50 = vcombine.low %v2059_v47, %v2062_v12  ;;  %v843_v54 = vor.u32 %v842_v63, %v839_v34  ;;  %v6072_v53 = vrot.slane %v8996_v18, 9  ;;  %v2065_v16 = vrot.slane %v9002_v17, 5  ;;  %v9016_v34 = vld [vmem:[%s10914_s0 + $0x188] sm:$0x1] }
  0x9c   :  { %11114 = vst [vmem:[#allocation53_spill] sm:$0xff] %v8986_v27  ;;  %6738 = vmatprep.mubr.msk.bf16.mxu1 %vm1006_vm4, %v8986_v27  ;;  %v853_v57 = vor.u32 %v852_v28, %v848_v10  ;;  %v858_v47 = vrot.slane %v856_v56, 5  ;;  %v2068_v2 = vrot.slane %v8358_v24, 5  ;;  %v861_v61 = vshrl.u32 %v8984_v51, 16 }
  0x9d   :  { %11115 = vst [vmem:[#allocation54_spill] sm:$0xff] %v8991_v50  ;;  %7032 = vmatprep.mubr.msk.bf16.mxu0 %vm1006_vm4, %v8991_v50  ;;  %v844_v44 = vrot.slane %v843_v54, 4  ;;  %v2066_v37 = vsel %vm8557_vm7, %v6072_v53, %v2065_v16  ;;  %v2067_v63 = vrot.slane %v2065_v16, 4  ;;  %v864_v12 = vshll.u32 %v8984_v51, 16  ;;  %v9034_v53 = vld [vmem:[%s10914_s0 + $0x18c] sm:$0xf] }
  0x9e   :  { %v854_v28 = vrot.slane %v853_v57, 4  ;;  %v863_v56 = vrot.slane %v861_v61, 4  ;;  %v870_v24 = vshll.u32 %v9008_v38, 16  ;;  %v874_v27 = vshrl.u32 %v9008_v38, 16 }
  0x9f   :  { %v849_v11 = vsel %vm8035_vm3, %v844_v44, %v848_v10  ;;  %v2069_v3 = vsel %vm8557_vm7, %v2067_v63, %v2068_v2  ;;  %v866_v50 = vrot.slane %v864_v12, 5  ;;  %v880_v54 = vshll.u32 %v9016_v34, 16  ;;  %v9043_v10 = vld [vmem:[%s10914_s0 + $0x190] sm:$0xf]  ;;  %v9050_v12 = vld [vmem:[%s10914_s0 + $0x9c] sm:$0xf] }
  0xa0   :  { %v859_v16 = vsel %vm8035_vm3, %v854_v28, %v858_v47  ;;  %v9038_v57 = vcombine.low %v2066_v37, %v2069_v3  ;;  %v872_v61 = vrot.slane %v870_v24, 5  ;;  %v876_v48 = vrot.slane %v874_v27, 4  ;;  %11120 = vst [vmem:[#allocation59_spill] sm:$0xff] %v9050_v12  ;;  %v9058_v27 = vld [vmem:[%s10914_s0 + $0xa0] sm:$0xf] }
  0xa1   :  { %v9045_v2 = vcombine.low %v849_v11, %v859_v16  ;;  %v867_v44 = vor.u32 %v866_v50, %v863_v56  ;;  %v882_v63 = vrot.slane %v880_v54, 5  ;;  %v6073_v47 = vrot.slane %v9050_v12, 9  ;;  %11121 = vst [vmem:[#allocation60_spill] sm:$0xff] %v9058_v27  ;;  %v7863_v50 = vld [vmem:[%s10914_s0 + $0xa4] sm:$0x1] }
  0xa2   :  { %11118 = vst [vmem:[#allocation57_spill] sm:$0xff] %v9038_v57  ;;  %7033 = vmatmul.mubr.msk.bf16.gmra.mrb[20].mxu0 %vm1006_vm4, %v9038_v57  ;;  %v877_v3 = vor.u32 %v876_v48, %v872_v61  ;;  %v2072_v11 = vrot.slane %v9058_v27, 5  ;;  %v2075_v37 = vrot.slane %v7863_v50, 5  ;;  %v885_v28 = vshrl.u32 %v9034_v53, 16  ;;  %v9070_v48 = vld [vmem:[%s10914_s0 + $0x194] sm:$0x1] }
  0xa3   :  { %11119 = vst [vmem:[#allocation58_spill] sm:$0xff] %v9045_v2  ;;  %6739 = vmatmul.mubr.msk.bf16.gmra.mrb[56].mxu1 %vm1006_vm4, %v9045_v2  ;;  %v868_v56 = vrot.slane %v867_v44, 4  ;;  %v888_v24 = vshll.u32 %v9034_v53, 16  ;;  %v894_v54 = vshll.u32 %v9043_v10, 16  ;;  %v898_v16 = vshrl.u32 %v9043_v10, 16 }
  0xa4   :  { %v878_v57 = vrot.slane %v877_v3, 4  ;;  %v2073_v50 = vsel %vm8557_vm7, %v6073_v47, %v2072_v11  ;;  %v2074_v12 = vrot.slane %v2072_v11, 4  ;;  %v887_v27 = vrot.slane %v885_v28, 4  ;;  %v9087_v47 = vld [vmem:[%s10914_s0 + $0xa8] sm:$0xf] }
  0xa5   :  { %v873_v44 = vsel %vm8035_vm3, %v868_v56, %v872_v61  ;;  %v890_v2 = vrot.slane %v888_v24, 5  ;;  %v896_v62 = vrot.slane %v894_v54, 5  ;;  %v900_v18 = vrot.slane %v898_v16, 4  ;;  %v9128_v16 = vld [vmem:[%s10914_s0 + $0xb8] sm:$0xf] }
  0xa6   :  { %v883_v17 = vsel %vm8035_vm3, %v878_v57, %v882_v63  ;;  %v2076_v25 = vsel %vm8557_vm7, %v2074_v12, %v2075_v37  ;;  %v904_v15 = vshll.u32 %v9070_v48, 16  ;;  %v6074_v3 = vrot.slane %v9087_v47, 9  ;;  %v9097_v57 = vld [vmem:[%s10914_s0 + $0xac] sm:$0xf]  ;;  %v7866_v12 = vld [vmem:[%s10914_s0 + $0xb0] sm:$0x1] }
  0xa7   :  { %v9090_v11 = vcombine.low %v873_v44, %v883_v17  ;;  %v9092_v61 = vcombine.low %v2073_v50, %v2076_v25  ;;  %v891_v28 = vor.u32 %v890_v2, %v887_v27  ;;  %v901_v56 = vor.u32 %v900_v18, %v896_v62  ;;  %v9106_v25 = vld [vmem:[%s10914_s0] sm:$0xf]  ;;  %v9122_v27 = vld [vmem:[%s10914_s0 + $0xb4] sm:$0xf] }
  0xa8   :  { %v906_v24 = vrot.slane %v904_v15, 5  ;;  %v2079_v63 = vrot.slane %v9097_v57, 5  ;;  %v2082_v37 = vrot.slane %v7866_v12, 5  ;;  %11124 = vst [vmem:[#allocation63_spill] sm:$0xff] %v9106_v25  ;;  %v9111_v15 = vld [vmem:[%s10914_s0 + $0x4] sm:$0xf] }
  0xa9   :  { %11122 = vst [vmem:[#allocation61_spill] sm:$0xff] %v9090_v11  ;;  %11123 = vst [vmem:[#allocation62_spill] sm:$0xff] %v9092_v61  ;;  %v5996_v18 = vcombine.low %v9106_v25, %v9111_v15  ;;  %6742 = vmatprep.mubr.msk.bf16.mxu1 %vm1006_vm4, %v9090_v11  ;;  %7036 = vmatprep.mubr.msk.bf16.mxu0 %vm1006_vm4, %v9092_v61  ;;  %v892_v17 = vrot.slane %v891_v28, 4  ;;  %v902_v2 = vrot.slane %v901_v56, 4  ;;  %v6075_v54 = vrot.slane %v9122_v27, 9 }
  0xaa   :  { %11125 = vst [vmem:[#allocation64_spill] sm:$0xff] %v9111_v15  ;;  %11126 = vst [vmem:[#allocation65_spill] sm:$0xff] %v9122_v27  ;;  %v2086_v50 = vrot.slane %v9128_v16, 5  ;;  %v2080_v44 = vsel %vm8557_vm7, %v6074_v3, %v2079_v63  ;;  %v2081_v12 = vrot.slane %v2079_v63, 4  ;;  %v2089_v28 = vrot.slane %v8412_v31, 5 }
  0xab   :  { %v6227_v56 = vrot.slane %v8423_v19, 9  ;;  %v897_v11 = vsel %vm8035_vm3, %v892_v17, %v896_v62  ;;  %v907_v61 = vsel %vm8035_vm3, %v902_v2, %v906_v24  ;;  %v3549_v63 = vrot.slane %v8430_v21, 5  ;;  %v11128_v17 = vld [vmem:[#allocation20_spill] sm:$0xff]  ;;  %v11130_v21 = vld [vmem:[#allocation23_spill] sm:$0xff] }
  0xac   :  { %v2087_v25 = vsel %vm8557_vm7, %v6075_v54, %v2086_v50  ;;  %v2088_v15 = vrot.slane %v2086_v50, 4  ;;  %v9141_v27 = vcombine.low %v897_v11, %v907_v61  ;;  %v2083_v3 = vsel %vm8557_vm7, %v2081_v12, %v2082_v37  ;;  %v11129_v61 = vld [vmem:[#allocation21_spill] sm:$0xff]  ;;  %v7872_v12 = vld [vmem:[%s10914_s0 + $0x10] sm:$0xf] }
  0xad   :  { %v3552_v31 = vrot.slane %v8442_v43, 5  ;;  %v9147_v19 = vcombine.low %v2080_v44, %v2083_v3  ;;  %v6077_v24 = vrot.slane %v11128_v17, 9  ;;  %v3551_v11 = vrot.slane %v3549_v63, 4 }
  0xae   :  { %11127 = vst [vmem:[#allocation66_spill] sm:$0xff] %v9141_v27  ;;  %v2090_v62 = vsel %vm8557_vm7, %v2088_v15, %v2089_v28  ;;  %6743 = vmatmul.mubr.msk.bf16.gmra.mrb[60].mxu1 %vm1006_vm4, %v9141_v27  ;;  %v2100_v54 = vrot.slane %v11129_v61, 5  ;;  %v2103_v43 = vrot.slane %v11130_v21, 5  ;;  %v3550_v37 = vsel %vm8557_vm7, %v6227_v56, %v3549_v63 }
  0xaf   :  { %v9154_v2 = vcombine.low %v2087_v25, %v2090_v62  ;;  %7037 = vmatmul.mubr.msk.bf16.gmra.mrb[24].mxu0 %vm1006_vm4, %v9147_v19  ;;  %6748 = vmatprep.mubr.msk.bf16.mxu1 %vm1006_vm4, %v5996_v18  ;;  %v3553_v25 = vsel %vm8557_vm7, %v3551_v11, %v3552_v31  ;;  %v2107_v50 = vrot.slane %v8516_v6, 5  ;;  %v7871_v18 = vld [vmem:[%s10914_s0 + $0xc] sm:$0xf]  ;;  %v2114_v3 = vrot.slane %v8543_v55, 5  ;;  %v7873_v6 = vld [vmem:[%s10914_s0 + $0x18] sm:$0xf] }
  0xb0   :  { %v2102_v15 = vrot.slane %v2100_v54, 4  ;;  %v2101_v44 = vsel %vm8557_vm7, %v6077_v24, %v2100_v54  ;;  %v9176_v28 = vcombine.low %v7871_v18, %v7872_v12  ;;  %v9181_v63 = vcombine.low %v3550_v37, %v3553_v25  ;;  %v7874_v31 = vld [vmem:[%s10914_s0 + $0x1c] sm:$0xf]  ;;  %v11132_v24 = vld [vmem:[#allocation25_spill] sm:$0xff]  ;;  %v11133_v55 = vld [vmem:[#allocation27_spill] sm:$0xff] }
  0xb1   :  { %7040 = vmatprep.mubr.msk.bf16.mxu0 %vm1006_vm4, %v9154_v2  ;;  %v9189_v62 = vcombine.low %v7873_v6, %v7874_v31  ;;  %v6078_v11 = vrot.slane %v11132_v24, 9  ;;  %v2109_v61 = vrot.slane %v2107_v50, 4  ;;  %v2110_v54 = vrot.slane %v8528_v49, 5  ;;  %v11134_v25 = vld [vmem:[#allocation24_spill] sm:$0xff]  ;;  %v7875_v6 = vld [vmem:[%s10914_s0 + $0x24] sm:$0xf] }
  0xb2   :  { %v2104_v56 = vsel %vm8557_vm7, %v2102_v15, %v2103_v43  ;;  %11131 = vst [vmem:[#allocation20_spill] sm:$0xff] %v9181_v63  ;;  %v6079_v21 = vrot.slane %v11133_v55, 9  ;;  %v2116_v43 = vrot.slane %v2114_v3, 4  ;;  %v2117_v37 = vrot.slane %v8554_v9, 5 }
  0xb3   :  { %v9191_v17 = vcombine.low %v2101_v44, %v2104_v56  ;;  %v2398_v15 = vsel %vm1103_vm0, %v11134_v25, 0  ;;  %v2108_v49 = vsel %vm8557_vm7, %v6078_v11, %v2107_v50  ;;  %v2111_v9 = vsel %vm8557_vm7, %v2109_v61, %v2110_v54  ;;  %v7876_v50 = vld [vmem:[%s10914_s0 + $0x28] sm:$0xf] }
  0xb4   :  { %v2121_v44 = vrot.slane %v8590_v26, 5  ;;  %v2115_v18 = vsel %vm8557_vm7, %v6079_v21, %v2114_v3  ;;  %v2118_v12 = vsel %vm8557_vm7, %v2116_v43, %v2117_v37  ;;  %v2128_v56 = vrot.slane %v8640_v39, 5  ;;  %v7877_v26 = vld [vmem:[%s10914_s0 + $0x30] sm:$0xf]  ;;  %v7878_v39 = vld [vmem:[%s10914_s0 + $0x34] sm:$0xf] }
  0xb5   :  { %v9223_v31 = vcombine.low %v7875_v6, %v7876_v50  ;;  %v9225_v24 = vcombine.low %v2108_v49, %v2111_v9  ;;  %v9233_v3 = vcombine.low %v7877_v26, %v7878_v39  ;;  %v9235_v11 = vcombine.low %v2115_v18, %v2118_v12  ;;  %v7879_v49 = vld [vmem:[%s10914_s0 + $0x3c] sm:$0xf]  ;;  %v7880_v9 = vld [vmem:[%s10914_s0 + $0x40] sm:$0xf]  ;;  %v7882_v50 = vld [vmem:[%s10914_s0 + $0x4c] sm:$0xf] }
  0xb6   :  { %6749 = vmatmul.mubr.msk.bf16.vlgmr.msra.gmra.mrb[0].mxu1 %vm1006_vm4, %v9176_v28  ;;  %v6080_v61 = vrot.slane %v8578_v59, 9  ;;  %v2123_v54 = vrot.slane %v2121_v44, 4  ;;  %v2124_v55 = vrot.slane %v8609_v58, 5  ;;  %v6081_v21 = vrot.slane %v8628_v7, 9  ;;  %v9251_v59 = vld [vmem:[%s10915_s1 + $0x6] sm:$0x3] }
  0xb7   :  { %7041 = vmatmul.mubr.msk.bf16.gmra.mrb[28].mxu0 %vm1006_vm4, %v9181_v63  ;;  %6752 = vmatprep.mubr.msk.bf16.mxu1 %vm1006_vm4, %v9189_v62  ;;  %v2130_v43 = vrot.slane %v2128_v56, 4  ;;  %v2131_v37 = vrot.slane %v8646_v23, 5  ;;  %v2135_v25 = vrot.slane %v8675_v1, 5  ;;  %v2142_v23 = vrot.slane %v8713_v33, 5 }
  0xb8   :  { %7044 = vmatprep.mubr.msk.bf16.mxu0 %vm1006_vm4, %v9191_v17  ;;  %6813 = vmatpush3.bf16.msra.mxu1 %v2398_v15  ;;  %v2122_v58 = vsel %vm8557_vm7, %v6080_v61, %v2121_v44  ;;  %v2125_v7 = vsel %vm8557_vm7, %v2123_v54, %v2124_v55  ;;  %v2129_v1 = vsel %vm8557_vm7, %v6081_v21, %v2128_v56  ;;  %v6082_v18 = vrot.slane %v8666_v41, 9  ;;  %v7881_v56 = vld [vmem:[%s10914_s0 + $0x48] sm:$0xf]  ;;  %v7883_v21 = vld [vmem:[%s10914_s0 + $0x54] sm:$0xf] }
  0xb9   :  { %7806 = vmatprep.subr.msk.bf16.mxu1 %vm1103_vm0, %v9251_v59  ;;  %v2132_v15 = vsel %vm8557_vm7, %v2130_v43, %v2131_v37  ;;  %v9272_v44 = vcombine.low %v7879_v49, %v7880_v9  ;;  %v6083_v12 = vrot.slane %v8702_v36, 9  ;;  %v9276_v6 = vcombine.low %v2122_v58, %v2125_v7  ;;  %v7884_v43 = vld [vmem:[%s10914_s0 + $0x58] sm:$0xf]  ;;  %v7885_v58 = vld [vmem:[%s10914_s0 + $0x60] sm:$0xf] }
  0xba   :  { %v9284_v26 = vcombine.low %v7881_v56, %v7882_v50  ;;  %v2137_v39 = vrot.slane %v2135_v25, 4  ;;  %v2138_v61 = vrot.slane %v8690_v46, 5  ;;  %v9287_v54 = vcombine.low %v2129_v1, %v2132_v15  ;;  %v7886_v46 = vld [vmem:[%s10914_s0 + $0x64] sm:$0xf] }
  0xbb   :  { %v2144_v41 = vrot.slane %v2142_v23, 4  ;;  %v2145_v55 = vrot.slane %v8729_v20, 5  ;;  %v9296_v37 = vcombine.low %v7883_v21, %v7884_v43  ;;  %v9304_v7 = vcombine.low %v7885_v58, %v7886_v46 }
  0xbc   :  { %v2136_v20 = vsel %vm8557_vm7, %v6082_v18, %v2135_v25  ;;  %v2143_v1 = vsel %vm8557_vm7, %v6083_v12, %v2142_v23  ;;  %v6089_v15 = vrot.slane %v8943_v5, 9  ;;  %v2184_v49 = vrot.slane %v8954_v35, 5 }
  0xbd   :  { %v2139_v9 = vsel %vm8557_vm7, %v2137_v39, %v2138_v61  ;;  %v6084_v56 = vrot.slane %v8743_v30, 9  ;;  %v2149_v25 = vrot.slane %v8757_v13, 5  ;;  %v2187_v18 = vrot.slane %v8970_v22, 5 }
  0xbe   :  { %6753 = vmatmul.mubr.msk.bf16.gmra.mrb[4].mxu1 %vm1006_vm4, %v9223_v31  ;;  %v2146_v23 = vsel %vm8557_vm7, %v2144_v41, %v2145_v55  ;;  %v2185_v12 = vsel %vm8557_vm7, %v6089_v15, %v2184_v49  ;;  %v2186_v50 = vrot.slane %v2184_v49, 4  ;;  %v6090_v21 = vrot.slane %v8984_v51, 9 }
  0xbf   :  { %7045 = vmatmul.mubr.msk.bf16.gmra.mrb[32].mxu0 %vm1006_vm4, %v9225_v24  ;;  %6756 = vmatprep.mubr.msk.bf16.mxu1 %vm1006_vm4, %v9233_v3  ;;  %v2156_v39 = vrot.slane %v8799_v4, 5  ;;  %v2191_v61 = vrot.slane %v9008_v38, 5  ;;  %v2194_v43 = vrot.slane %v9016_v34, 5  ;;  %v6091_v22 = vrot.slane %v9034_v53, 9 }
  0xc0   :  { %7048 = vmatprep.mubr.msk.bf16.mxu0 %vm1006_vm4, %v9235_v11  ;;  %v9334_v58 = vcombine.low %v2136_v20, %v2139_v9  ;;  %v2188_v46 = vsel %vm8557_vm7, %v2186_v50, %v2187_v18  ;;  %v2198_v41 = vrot.slane %v9043_v10, 5  ;;  %v2201_v55 = vrot.slane %v9070_v48, 5 }
  0xc1   :  { %v2152_v15 = vrot.slane %v8762_v40, 5  ;;  %v9341_v49 = vcombine.low %v2185_v12, %v2188_v46  ;;  %v2192_v63 = vsel %vm8557_vm7, %v6090_v21, %v2191_v61  ;;  %v2193_v27 = vrot.slane %v2191_v61, 4 }
  0xc2   :  { %v9345_v34 = vcombine.low %v2143_v1, %v2146_v23  ;;  %v2151_v29 = vrot.slane %v2149_v25, 4  ;;  %v2199_v20 = vsel %vm8557_vm7, %v6091_v22, %v2198_v41  ;;  %v2200_v9 = vrot.slane %v2198_v41, 4  ;;  %v7887_v22 = vld [vmem:[%s10914_s0 + $0x6c] sm:$0xf] }
  0xc3   :  { %11135 = vst [vmem:[#allocation21_spill] sm:$0xff] %v9341_v49  ;;  %v6085_v18 = vrot.slane %v8790_v32, 9  ;;  %v2158_v50 = vrot.slane %v2156_v39, 4  ;;  %v2159_v48 = vrot.slane %v8814_v14, 5  ;;  %v2195_v40 = vsel %vm8557_vm7, %v2193_v27, %v2194_v43 }
  0xc4   :  { %11136 = vst [vmem:[#allocation23_spill] sm:$0xff] %v9345_v34  ;;  %v9355_v12 = vcombine.low %v2192_v63, %v2195_v40  ;;  %v2202_v1 = vsel %vm8557_vm7, %v2200_v9, %v2201_v55  ;;  %v2150_v14 = vsel %vm8557_vm7, %v6084_v56, %v2149_v25  ;;  %v2153_v27 = vsel %vm8557_vm7, %v2151_v29, %v2152_v15  ;;  %v7888_v56 = vld [vmem:[%s10914_s0 + $0x70] sm:$0xf]  ;;  %v7889_v55 = vld [vmem:[%s10914_s0 + $0x78] sm:$0xf]  ;;  %v11141_v9 = vld [vmem:[#allocation45_spill] sm:$0xff] }
  0xc5   :  { %v9363_v23 = vcombine.low %v2199_v20, %v2202_v1  ;;  %v2163_v63 = vrot.slane %v8837_v60, 5  ;;  %v2157_v21 = vsel %vm8557_vm7, %v6085_v18, %v2156_v39  ;;  %v2160_v61 = vsel %vm8557_vm7, %v2158_v50, %v2159_v48  ;;  %v7890_v15 = vld [vmem:[%s10914_s0 + $0x7c] sm:$0xf] }
  0xc6   :  { %6757 = vmatmul.mubr.msk.bf16.gmra.mrb[8].mxu1 %vm1006_vm4, %v9272_v44  ;;  %11137 = vst [vmem:[#allocation25_spill] sm:$0xff] %v9355_v12  ;;  %v2170_v43 = vrot.slane %v8881_v0, 5  ;;  %v9383_v25 = vcombine.low %v7887_v22, %v7888_v56  ;;  %v9387_v29 = vcombine.low %v8943_v5, %v8954_v35  ;;  %v9391_v39 = vcombine.low %v8984_v51, %v9008_v38  ;;  %v11142_v48 = vld [vmem:[#allocation48_spill] sm:$0xff]  ;;  %v11145_v56 = vld [vmem:[#allocation55_spill] sm:$0xff] }
  0xc7   :  { %7049 = vmatmul.mubr.msk.bf16.gmra.mrb[36].mxu0 %vm1006_vm4, %v9276_v6  ;;  %6760 = vmatprep.mubr.msk.bf16.mxu1 %vm1006_vm4, %v9284_v26  ;;  %11138 = vst [vmem:[#allocation27_spill] sm:$0xff] %v9363_v23  ;;  %v9395_v46 = vcombine.low %v9034_v53, %v9043_v10  ;;  %v9397_v41 = vcombine.low %v2150_v14, %v2153_v27  ;;  %v6086_v51 = vrot.slane %v8826_v52, 9  ;;  %v2165_v38 = vrot.slane %v2163_v63, 4  ;;  %v7891_v27 = vld [vmem:[%s10914_s0 + $0x84] sm:$0xf]  ;;  %v11144_v22 = vld [vmem:[#allocation56_spill] sm:$0xff] }
  0xc8   :  { %7052 = vmatprep.mubr.msk.bf16.mxu0 %vm1006_vm4, %v9287_v54  ;;  %v9405_v5 = vcombine.low %v7889_v55, %v7890_v15  ;;  %v9407_v35 = vcombine.low %v2157_v21, %v2160_v61  ;;  %v2166_v53 = vrot.slane %v8853_v45, 5  ;;  %v6087_v10 = vrot.slane %v8867_v8, 9  ;;  %v7892_v21 = vld [vmem:[%s10914_s0 + $0x88] sm:$0xf] }
  0xc9   :  { %11139 = vst [vmem:[#allocation24_spill] sm:$0xff] %v9397_v41  ;;  %v2172_v20 = vrot.slane %v2170_v43, 4  ;;  %v2173_v18 = vrot.slane %v11141_v9, 5  ;;  %v2164_v45 = vsel %vm8557_vm7, %v6086_v51, %v2163_v63  ;;  %v2177_v40 = vrot.slane %v11142_v48, 5  ;;  %v11147_v15 = vld [vmem:[#allocation46_spill] sm:$0xff] }
  0xca   :  { %11140 = vst [vmem:[#allocation67_spill] sm:$0xff] %v9407_v35  ;;  %v2167_v50 = vsel %vm8557_vm7, %v2165_v38, %v2166_v53  ;;  %v2171_v1 = vsel %vm8557_vm7, %v6087_v10, %v2170_v43  ;;  %v9436_v63 = vcombine.low %v7891_v27, %v7892_v21  ;;  %v9442_v55 = vcombine.low %v11145_v56, %v11144_v22  ;;  %v11148_v53 = vld [vmem:[#allocation50_spill] sm:$0xff]  ;;  %v9473_v27 = vld [vmem:[%s10914_s0 + $0x19c] sm:$0xf]  ;;  %v11153_v21 = vld [vmem:[#allocation65_spill] sm:$0xff] }
  0xcb   :  { %v2174_v14 = vsel %vm8557_vm7, %v2172_v20, %v2173_v18  ;;  %v9438_v61 = vcombine.low %v2164_v45, %v2167_v50  ;;  %v6088_v51 = vrot.slane %v11147_v15, 9  ;;  %v2179_v38 = vrot.slane %v2177_v40, 4  ;;  %v11149_v18 = vld [vmem:[#allocation60_spill] sm:$0xff]  ;;  %v11150_v45 = vld [vmem:[#allocation59_spill] sm:$0xff] }
  0xcc   :  { %v9444_v43 = vcombine.low %v2171_v1, %v2174_v14  ;;  %v2180_v10 = vrot.slane %v11148_v53, 5  ;;  %v9462_v50 = vcombine.low %v11150_v45, %v11149_v18  ;;  %v9468_v14 = vcombine.low %v9087_v47, %v9097_v57  ;;  %v9487_v57 = vld [vmem:[%s10914_s0 + $0x198] sm:$0xf]  ;;  %v7895_v18 = vld [vmem:[%s10914_s0 + $0xe4] sm:$0xf] }
  0xcd   :  { %11143 = vst [vmem:[#allocation45_spill] sm:$0xff] %v9438_v61  ;;  %v2178_v20 = vsel %vm8557_vm7, %v6088_v51, %v2177_v40  ;;  %v3556_v47 = vrot.slane %v9473_v27, 5  ;;  %v9492_v40 = vld [vmem:[%s10914_s0 + $0x1a0] sm:$0x1]  ;;  %v9496_v22 = vcombine.low %v11153_v21, %v9128_v16  ;;  %v9501_v56 = vld [vmem:[%s10914_s0 + $0xd8] sm:$0xf] }
  0xce   :  { %6761 = vmatmul.mubr.msk.bf16.gmra.mrb[12].mxu1 %vm1006_vm4, %v9296_v37  ;;  %11146 = vst [vmem:[#allocation48_spill] sm:$0xff] %v9444_v43  ;;  %v2181_v9 = vsel %vm8557_vm7, %v2179_v38, %v2180_v10  ;;  %11152 = vst [vmem:[#allocation55_spill] sm:$0xff] %v9492_v40  ;;  %v9506_v51 = vld [vmem:[%s10914_s0 + $0xdc] sm:$0xf]  ;;  %v6228_v53 = vrot.slane %v9487_v57, 9  ;;  %vm5244_vm8 = vcmask 130048  }
  0xcf   :  { %7053 = vmatmul.mubr.msk.bf16.gmra.mrb[40].mxu0 %vm1006_vm4, %v9334_v58  ;;  %6764 = vmatprep.mubr.msk.bf16.mxu1 %vm1006_vm4, %v9304_v7  ;;  %v9464_v1 = vcombine.low %v2178_v20, %v2181_v9  ;;  %v6012_v38 = vcombine.low %v9501_v56, %v9506_v51  ;;  %v3558_v10 = vrot.slane %v3556_v47, 4  ;;  %v3559_v20 = vrot.slane %v9492_v40, 5  ;;  %v7896_v45 = vld [vmem:[%s10914_s0 + $0xe8] sm:$0xf]  ;;  %v7897_v40 = vld [vmem:[%s10914_s0 + $0xf0] sm:$0xf] }
  0xd0   :  { %7056 = vmatprep.mubr.msk.bf16.mxu0 %vm1006_vm4, %v9345_v34  ;;  %v3557_v16 = vsel %vm8557_vm7, %v6228_v53, %v3556_v47  ;;  %v9529_v21 = vcombine.low %v7895_v18, %v7896_v45  ;;  %v7898_v47 = vld [vmem:[%s10914_s0 + $0xf4] sm:$0xf]  ;;  %v11155_v45 = vld [vmem:[#allocation38_spill] sm:$0xff]  ;;  %vm7937_vm9 = vmmov 0   ;;  %vm5523_vm10 = vcmask 1040384  }
  0xd1   :  { %11151 = vst [vmem:[#allocation56_spill] sm:$0xff] %v9464_v1  ;;  %v3560_v9 = vsel %vm8557_vm7, %v3558_v10, %v3559_v20  ;;  %v9539_v53 = vcombine.low %v7897_v40, %v7898_v47  ;;  %v7899_v10 = vld [vmem:[%s10914_s0 + $0xfc] sm:$0xf]  ;;  %v7900_v40 = vld [vmem:[%s10914_s0 + $0x100] sm:$0xf]  ;;  %v4368_v47 = vsel %vm1103_vm0, %v11155_v45, 0 }
  0xd2   :  { %v9555_v20 = vcombine.low %v7899_v10, %v7900_v40  ;;  %v9572_v10 = vld [vmem:[%s10915_s1 + $0x10] sm:$0x3]  ;;  %v7903_v40 = vld [vmem:[%s10914_s0 + $0x114] sm:$0xf]  ;;  %v7905_v45 = vld [vmem:[%s10914_s0 + $0x120] sm:$0xf] }
  0xd3   :  { %vm5619_vm11 = vcmask 15360  }
  0xd6   :  { %6765 = vmatmul.mubr.msk.bf16.gmra.mrb[16].mxu1 %vm1006_vm4, %v9383_v25 }
  0xd7   :  { %7057 = vmatmul.mubr.msk.bf16.gmra.mrb[44].mxu0 %vm1006_vm4, %v9397_v41  ;;  %6768 = vmatprep.mubr.msk.bf16.mxu1 %vm1006_vm4, %v9405_v5 }
  0xd8   :  { %7060 = vmatprep.mubr.msk.bf16.mxu0 %vm1006_vm4, %v9407_v35 }
  0xde   :  { %6769 = vmatmul.mubr.msk.bf16.gmra.mrb[20].mxu1 %vm1006_vm4, %v9436_v63 }
  0xdf   :  { %7061 = vmatmul.mubr.msk.bf16.gmra.mrb[48].mxu0 %vm1006_vm4, %v9438_v61  ;;  %6772 = vmatprep.mubr.msk.bf16.mxu1 %vm1006_vm4, %v9442_v55 }
  0xe0   :  { %7064 = vmatprep.mubr.msk.bf16.mxu0 %vm1006_vm4, %v9444_v43 }
  0xe6   :  { %6773 = vmatmul.mubr.msk.bf16.gmra.mrb[24].mxu1 %vm1006_vm4, %v9462_v50 }
  0xe7   :  { %7065 = vmatmul.mubr.msk.bf16.gmra.mrb[52].mxu0 %vm1006_vm4, %v9464_v1  ;;  %6776 = vmatprep.mubr.msk.bf16.mxu1 %vm1006_vm4, %v9468_v14 }
  0xe8   :  { %7068 = vmatprep.mubr.msk.bf16.mxu0 %vm1006_vm4, %v9341_v49 }
  0xee   :  { %6777 = vmatmul.mubr.msk.bf16.gmra.mrb[28].mxu1 %vm1006_vm4, %v9496_v22 }
  0xef   :  { %7069 = vmatmul.mubr.msk.bf16.gmra.mrb[56].mxu0 %vm1006_vm4, %v9355_v12  ;;  %6780 = vmatprep.mubr.msk.bf16.mxu1 %vm1006_vm4, %v6012_v38  ;;  %v9531_v38 = vcombine.low %v3557_v16, %v3560_v9  ;;  %v7901_v16 = vld [vmem:[%s10914_s0 + $0x108] sm:$0xf]  ;;  %v7902_v9 = vld [vmem:[%s10914_s0 + $0x10c] sm:$0xf] }
  0xf0   :  { %7072 = vmatprep.mubr.msk.bf16.mxu0 %vm1006_vm4, %v9363_v23  ;;  %v9563_v18 = vcombine.low %v7901_v16, %v7902_v9  ;;  %v7904_v16 = vld [vmem:[%s10914_s0 + $0x118] sm:$0xf] }
  0xf1   :  { %11154 = vst [vmem:[#allocation46_spill] sm:$0xff] %v9531_v38  ;;  %v9588_v9 = vcombine.low %v7903_v40, %v7904_v16  ;;  %v9608_v40 = vcombine.low %v8702_v36, %v8713_v33  ;;  %v9612_v16 = vcombine.low %v8743_v30, %v8757_v13  ;;  %v9624_v36 = vcombine.low %v8790_v32, %v8799_v4  ;;  %v11159_v32 = vld [vmem:[#allocation64_spill] sm:$0xff] }
  0xf2   :  { %v9628_v33 = vcombine.low %v8826_v52, %v8837_v60  ;;  %v9640_v30 = vcombine.low %v8867_v8, %v8881_v0  ;;  %v9644_v13 = vcombine.low %v11147_v15, %v11142_v48  ;;  %v1981_v4 = vrot.slane %v11159_v32, 5  ;;  %v7907_v52 = vld [vmem:[%s10914_s0 + $0x8] sm:$0x1]  ;;  %v11160_v8 = vld [vmem:[#allocation63_spill] sm:$0xff]  ;;  %v7908_v32 = vld [vmem:[%s10914_s0 + $0xc0] sm:$0xf] }
  0xf3   :  { %11156 = vst [vmem:[#allocation50_spill] sm:$0xff] %v9612_v16  ;;  %11157 = vst [vmem:[#allocation60_spill] sm:$0xff] %v9624_v36  ;;  %v1984_v60 = vrot.slane %v7907_v52, 5  ;;  %v6060_v0 = vrot.slane %v11160_v8, 9  ;;  %v7909_v52 = vld [vmem:[%s10914_s0 + $0xc4] sm:$0xf] }
  0xf4   :  { %11158 = vst [vmem:[#allocation59_spill] sm:$0xff] %v9628_v33  ;;  %v1983_v48 = vrot.slane %v1981_v4, 4  ;;  %v9677_v8 = vcombine.low %v7908_v32, %v7909_v52  ;;  %v11163_v32 = vld [vmem:[#allocation32_spill] sm:$0xff]  ;;  %v11165_v52 = vld [vmem:[#allocation37_spill] sm:$0xff] }
  0xf5   :  { %v1982_v15 = vsel %vm8557_vm7, %v6060_v0, %v1981_v4  ;;  %v9689_v4 = vld [vmem:[%s10914_s0 + $0xcc] sm:$0xf] }
  0xf6   :  { %6781 = vmatmul.mubr.msk.bf16.gmra.mrb[32].mxu1 %vm1006_vm4, %v9529_v21 }
  0xf7   :  { %7073 = vmatmul.mubr.msk.bf16.gmra.mrb[60].mxu0 %vm1006_vm4, %v9531_v38  ;;  %6784 = vmatprep.mubr.msk.bf16.mxu1 %vm1006_vm4, %v9539_v53 }
  0xf8   :  { %7078 = vmatprep.mubr.msk.bf16.mxu0 %vm1006_vm4, %v9189_v62 }
  0xfe   :  { %6785 = vmatmul.mubr.msk.bf16.gmra.mrb[36].mxu1 %vm1006_vm4, %v9555_v20 }
  0xff   :  { %7079 = vmatmul.mubr.msk.bf16.vlgmr.msra.gmra.mrb[0].mxu0 %vm1006_vm4, %v9223_v31  ;;  %6788 = vmatprep.mubr.msk.bf16.mxu1 %vm1006_vm4, %v9563_v18 }
 0x100   :  { %7143 = vmatpush3.bf16.msra.mxu0 %v4368_v47  ;;  %7082 = vmatprep.mubr.msk.bf16.mxu0 %vm1006_vm4, %v9233_v3  ;;  %v7906_v47 = vld [vmem:[%s10914_s0 + $0x124] sm:$0xf] }
 0x101   :  { %7812 = vmatprep.subr.msk.bf16.mxu0 %vm1103_vm0, %v9572_v10  ;;  %v9596_v38 = vcombine.low %v7905_v45, %v7906_v47  ;;  %v1985_v45 = vsel %vm8557_vm7, %v1983_v48, %v1984_v60  ;;  %v9694_v60 = vld [vmem:[%s10914_s0 + $0xd0] sm:$0xf]  ;;  %v2772_v48 = vsel %vm1103_vm0, %v9251_v59, 0 }
 0x102   :  { %v6093_v47 = vcombine.low %v1982_v15, %v1985_v45  ;;  %v6265_v0 = vcombine.low %v9689_v4, %v9694_v60  ;;  %v11161_v15 = vld [vmem:[#allocation29_spill] sm:$0xff]  ;;  %v11162_v45 = vld [vmem:[#allocation30_spill] sm:$0xff]  ;;  %v11164_v59 = vld [vmem:[#allocation35_spill] sm:$0xff] }
 0x106   :  { %6789 = vmatmul.mubr.msk.bf16.gmra.mrb[40].mxu1 %vm1006_vm4, %v9588_v9 }
 0x107   :  { %7083 = vmatmul.mubr.msk.bf16.gmra.mrb[4].mxu0 %vm1006_vm4, %v9272_v44  ;;  %6792 = vmatprep.mubr.msk.bf16.mxu1 %vm1006_vm4, %v9596_v38 }
 0x108   :  { %7086 = vmatprep.mubr.msk.bf16.mxu0 %vm1006_vm4, %v9284_v26 }
 0x10e   :  { %6793 = vmatmul.mubr.msk.bf16.gmra.mrb[44].mxu1 %vm1006_vm4, %v9608_v40 }
 0x10f   :  { %7087 = vmatmul.mubr.msk.bf16.gmra.mrb[8].mxu0 %vm1006_vm4, %v9296_v37  ;;  %6796 = vmatprep.mubr.msk.bf16.mxu1 %vm1006_vm4, %v9612_v16 }
 0x110   :  { %7090 = vmatprep.mubr.msk.bf16.mxu0 %vm1006_vm4, %v9304_v7 }
 0x116   :  { %6797 = vmatmul.mubr.msk.bf16.gmra.mrb[48].mxu1 %vm1006_vm4, %v9624_v36 }
 0x117   :  { %7091 = vmatmul.mubr.msk.bf16.gmra.mrb[12].mxu0 %vm1006_vm4, %v9383_v25  ;;  %6800 = vmatprep.mubr.msk.bf16.mxu1 %vm1006_vm4, %v9628_v33 }
 0x118   :  { %7094 = vmatprep.mubr.msk.bf16.mxu0 %vm1006_vm4, %v9405_v5 }
 0x11e   :  { %6801 = vmatmul.mubr.msk.bf16.gmra.mrb[52].mxu1 %vm1006_vm4, %v9640_v30 }
 0x11f   :  { %7095 = vmatmul.mubr.msk.bf16.gmra.mrb[16].mxu0 %vm1006_vm4, %v9436_v63  ;;  %6804 = vmatprep.mubr.msk.bf16.mxu1 %vm1006_vm4, %v9644_v13 }
 0x120   :  { %7098 = vmatprep.mubr.msk.bf16.mxu0 %vm1006_vm4, %v9442_v55 }
 0x126   :  { %6805 = vmatmul.mubr.msk.bf16.gmra.mrb[56].mxu1 %vm1006_vm4, %v9387_v29 }
 0x127   :  { %7099 = vmatmul.mubr.msk.bf16.gmra.mrb[20].mxu0 %vm1006_vm4, %v9462_v50  ;;  %6808 = vmatprep.mubr.msk.bf16.mxu1 %vm1006_vm4, %v9391_v39 }
 0x128   :  { %7102 = vmatprep.mubr.msk.bf16.mxu0 %vm1006_vm4, %v9468_v14 }
 0x12e   :  { %6809 = vmatmul.mubr.msk.bf16.gmra.mrb[60].mxu1 %vm1006_vm4, %v9395_v46 }
 0x12f   :  { %7103 = vmatmul.mubr.msk.bf16.gmra.mrb[24].mxu0 %vm1006_vm4, %v9496_v22  ;;  %6814 = vmatprep.mubr.msk.bf16.mxu1 %vm1006_vm4, %v6093_v47  ;;  %v7910_v47 = vld [vmem:[%s10915_s1 + $0x8] sm:$0x3] }
 0x130   :  { %7106 = vmatprep.mubr.msk.bf16.mxu0 %vm1006_vm4, %v9677_v8 }
 0x136   :  { %6815 = vmatmul.mubr.msk.bf16.vlgmr.msra.gmra.mrb[0].mxu1 %vm1006_vm4, %v11161_v15  ;;  %v11168_v15 = vld [vmem:[#allocation44_spill] sm:$0xff] }
 0x137   :  { %7107 = vmatmul.mubr.msk.bf16.gmra.mrb[28].mxu0 %vm1006_vm4, %v6265_v0  ;;  %6818 = vmatprep.mubr.msk.bf16.mxu1 %vm1006_vm4, %v11162_v45  ;;  %v11166_v0 = vld [vmem:[#allocation39_spill] sm:$0xff] }
 0x138   :  { %7110 = vmatprep.mubr.msk.bf16.mxu0 %vm1006_vm4, %v9539_v53  ;;  %6879 = vmatpush3.bf16.msra.mxu1 %v2772_v48  ;;  %v11167_v48 = vld [vmem:[#allocation42_spill] sm:$0xff] }
 0x139   :  { %7808 = vmatprep.subr.msk.bf16.mxu1 %vm1103_vm0, %v7910_v47  ;;  %v11169_v47 = vld [vmem:[#allocation47_spill] sm:$0xff] }
 0x13e   :  { %6819 = vmatmul.mubr.msk.bf16.gmra.mrb[4].mxu1 %vm1006_vm4, %v11163_v32 }
 0x13f   :  { %7111 = vmatmul.mubr.msk.bf16.gmra.mrb[32].mxu0 %vm1006_vm4, %v9555_v20  ;;  %6822 = vmatprep.mubr.msk.bf16.mxu1 %vm1006_vm4, %v11164_v59 }
 0x140   :  { %7114 = vmatprep.mubr.msk.bf16.mxu0 %vm1006_vm4, %v9563_v18 }
 0x146   :  { %6823 = vmatmul.mubr.msk.bf16.gmra.mrb[8].mxu1 %vm1006_vm4, %v11165_v52 }
 0x147   :  { %7115 = vmatmul.mubr.msk.bf16.gmra.mrb[36].mxu0 %vm1006_vm4, %v9588_v9  ;;  %6826 = vmatprep.mubr.msk.bf16.mxu1 %vm1006_vm4, %v11166_v0  ;;  %v11170_v0 = vld [vmem:[#allocation52_spill] sm:$0xff] }
 0x148   :  { %7118 = vmatprep.mubr.msk.bf16.mxu0 %vm1006_vm4, %v9596_v38 }
 0x14e   :  { %6827 = vmatmul.mubr.msk.bf16.gmra.mrb[12].mxu1 %vm1006_vm4, %v11167_v48  ;;  %v11171_v48 = vld [vmem:[#allocation54_spill] sm:$0xff] }
 0x14f   :  { %7119 = vmatmul.mubr.msk.bf16.gmra.mrb[40].mxu0 %vm1006_vm4, %v9608_v40  ;;  %6830 = vmatprep.mubr.msk.bf16.mxu1 %vm1006_vm4, %v11168_v15  ;;  %v11172_v15 = vld [vmem:[#allocation57_spill] sm:$0xff] }
 0x150   :  { %7122 = vmatprep.mubr.msk.bf16.mxu0 %vm1006_vm4, %v9612_v16 }
 0x156   :  { %6831 = vmatmul.mubr.msk.bf16.gmra.mrb[16].mxu1 %vm1006_vm4, %v11169_v47  ;;  %v2093_v47 = vrot.slane %v9506_v51, 5 }
 0x157   :  { %7123 = vmatmul.mubr.msk.bf16.gmra.mrb[44].mxu0 %vm1006_vm4, %v9624_v36  ;;  %6834 = vmatprep.mubr.msk.bf16.mxu1 %vm1006_vm4, %v11170_v0  ;;  %v6076_v36 = vrot.slane %v9501_v56, 9 }
 0x158   :  { %7126 = vmatprep.mubr.msk.bf16.mxu0 %vm1006_vm4, %v9628_v33  ;;  %v2095_v0 = vrot.slane %v2093_v47, 4  ;;  %v7911_v33 = vld [vmem:[%s10914_s0 + $0xe0] sm:$0x1] }
 0x159   :  { %v2096_v16 = vrot.slane %v7911_v33, 5  ;;  %v2094_v56 = vsel %vm8557_vm7, %v6076_v36, %v2093_v47  ;;  %v9770_v33 = vcombine.low %v9487_v57, %v9473_v27  ;;  %v9787_v36 = vld [vmem:[%s10914_s0 + $0x1a8] sm:$0xf]  ;;  %v4754_v47 = vsel %vm1103_vm0, %v9572_v10, 0  ;;  %v11180_v10 = vld [vmem:[#allocation11_spill] sm:$0xff] }
 0x15a   :  { %11175 = vst [vmem:[#allocation38_spill] sm:$0xff] %v9787_v36 }
 0x15b   :  { %v2097_v51 = vsel %vm8557_vm7, %v2095_v0, %v2096_v16  ;;  %v9782_v16 = vld [vmem:[%s10914_s0 + $0x1a4] sm:$0xf] }
 0x15c   :  { %11174 = vst [vmem:[#allocation65_spill] sm:$0xff] %v9782_v16  ;;  %v6266_v0 = vcombine.low %v9782_v16, %v9787_v36 }
 0x15e   :  { %6835 = vmatmul.mubr.msk.bf16.gmra.mrb[20].mxu1 %vm1006_vm4, %v11171_v48  ;;  %v11173_v48 = vld [vmem:[#allocation62_spill] sm:$0xff] }
 0x15f   :  { %7127 = vmatmul.mubr.msk.bf16.gmra.mrb[48].mxu0 %vm1006_vm4, %v9640_v30  ;;  %6838 = vmatprep.mubr.msk.bf16.mxu1 %vm1006_vm4, %v11172_v15  ;;  %v6109_v15 = vcombine.low %v2094_v56, %v2097_v51  ;;  %v11177_v56 = vld [vmem:[#allocation8_spill] sm:$0xff]  ;;  %v11179_v51 = vld [vmem:[#allocation10_spill] sm:$0xff] }
 0x160   :  { %7130 = vmatprep.mubr.msk.bf16.mxu0 %vm1006_vm4, %v9644_v13 }
 0x166   :  { %6839 = vmatmul.mubr.msk.bf16.gmra.mrb[24].mxu1 %vm1006_vm4, %v11173_v48 }
 0x167   :  { %7131 = vmatmul.mubr.msk.bf16.gmra.mrb[52].mxu0 %vm1006_vm4, %v9387_v29  ;;  %6842 = vmatprep.mubr.msk.bf16.mxu1 %vm1006_vm4, %v9147_v19 }
 0x168   :  { %7134 = vmatprep.mubr.msk.bf16.mxu0 %vm1006_vm4, %v9391_v39 }
 0x16e   :  { %6843 = vmatmul.mubr.msk.bf16.gmra.mrb[28].mxu1 %vm1006_vm4, %v9154_v2 }
 0x16f   :  { %7135 = vmatmul.mubr.msk.bf16.gmra.mrb[56].mxu0 %vm1006_vm4, %v9395_v46  ;;  %6846 = vmatprep.mubr.msk.bf16.mxu1 %vm1006_vm4, %v6109_v15  ;;  %v11176_v15 = vld [vmem:[#allocation7_spill] sm:$0xff] }
 0x170   :  { %7138 = vmatprep.mubr.msk.bf16.mxu0 %vm1006_vm4, %v9770_v33 }
 0x176   :  { %6847 = vmatmul.mubr.msk.bf16.gmra.mrb[32].mxu1 %vm1006_vm4, %v9191_v17  ;;  %v11178_v17 = vld [vmem:[#allocation9_spill] sm:$0xff] }
 0x177   :  { %7139 = vmatmul.mubr.msk.bf16.gmra.mrb[60].mxu0 %vm1006_vm4, %v6266_v0  ;;  %6850 = vmatprep.mubr.msk.bf16.mxu1 %vm1006_vm4, %v9225_v24  ;;  %v11181_v0 = vld [vmem:[#allocation12_spill] sm:$0xff] }
 0x178   :  { %7144 = vmatprep.mubr.msk.bf16.mxu0 %vm1006_vm4, %v11176_v15  ;;  %v11182_v15 = vld [vmem:[#allocation13_spill] sm:$0xff] }
 0x17e   :  { %6851 = vmatmul.mubr.msk.bf16.gmra.mrb[36].mxu1 %vm1006_vm4, %v9235_v11 }
 0x17f   :  { %7145 = vmatmul.mubr.msk.bf16.vlgmr.msra.gmra.mrb[0].mxu0 %vm1006_vm4, %v11177_v56  ;;  %6854 = vmatprep.mubr.msk.bf16.mxu1 %vm1006_vm4, %v9276_v6  ;;  %v11184_v56 = vld [vmem:[#allocation15_spill] sm:$0xff] }
 0x180   :  { %7209 = vmatpush3.bf16.msra.mxu0 %v4754_v47  ;;  %7148 = vmatprep.mubr.msk.bf16.mxu0 %vm1006_vm4, %v11178_v17  ;;  %v11183_v47 = vld [vmem:[#allocation14_spill] sm:$0xff]  ;;  %v11185_v17 = vld [vmem:[#allocation16_spill] sm:$0xff] }
 0x186   :  { %6855 = vmatmul.mubr.msk.bf16.gmra.mrb[40].mxu1 %vm1006_vm4, %v9287_v54 }
 0x187   :  { %7149 = vmatmul.mubr.msk.bf16.gmra.mrb[4].mxu0 %vm1006_vm4, %v11179_v51  ;;  %6858 = vmatprep.mubr.msk.bf16.mxu1 %vm1006_vm4, %v9334_v58  ;;  %v4306_v51 = vshrl.u32 %v9689_v4, 16 }
 0x188   :  { %7152 = vmatprep.mubr.msk.bf16.mxu0 %vm1006_vm4, %v11180_v10  ;;  %v4309_v10 = vshll.u32 %v9689_v4, 16 }
 0x18e   :  { %6859 = vmatmul.mubr.msk.bf16.gmra.mrb[44].mxu1 %vm1006_vm4, %v9345_v34 }
 0x18f   :  { %7153 = vmatmul.mubr.msk.bf16.gmra.mrb[8].mxu0 %vm1006_vm4, %v11181_v0  ;;  %6862 = vmatprep.mubr.msk.bf16.mxu1 %vm1006_vm4, %v9397_v41  ;;  %v4319_v0 = vshrl.u32 %v9694_v60, 16 }
 0x190   :  { %7156 = vmatprep.mubr.msk.bf16.mxu0 %vm1006_vm4, %v11182_v15  ;;  %v11186_v15 = vld [vmem:[#allocation17_spill] sm:$0xff] }
 0x196   :  { %6863 = vmatmul.mubr.msk.bf16.gmra.mrb[48].mxu1 %vm1006_vm4, %v9407_v35  ;;  %v4321_v35 = vrot.slane %v4319_v0, 4 }
 0x197   :  { %7157 = vmatmul.mubr.msk.bf16.gmra.mrb[12].mxu0 %vm1006_vm4, %v11183_v47  ;;  %6866 = vmatprep.mubr.msk.bf16.mxu1 %vm1006_vm4, %v9438_v61  ;;  %v4315_v47 = vshll.u32 %v9694_v60, 16  ;;  %v4311_v61 = vrot.slane %v4309_v10, 5 }
 0x198   :  { %7160 = vmatprep.mubr.msk.bf16.mxu0 %vm1006_vm4, %v11184_v56  ;;  %v4308_v56 = vrot.slane %v4306_v51, 4 }
 0x19a   :  { %v4312_v51 = vor.u32 %v4311_v61, %v4308_v56 }
 0x19e   :  { %6867 = vmatmul.mubr.msk.bf16.gmra.mrb[52].mxu1 %vm1006_vm4, %v9444_v43  ;;  %v4317_v43 = vrot.slane %v4315_v47, 5  ;;  %v4313_v47 = vrot.slane %v4312_v51, 4  ;;  %v3165_v51 = vshrl.u32 %v9473_v27, 16 }
 0x19f   :  { %7161 = vmatmul.mubr.msk.bf16.gmra.mrb[16].mxu0 %vm1006_vm4, %v11185_v17  ;;  %6870 = vmatprep.mubr.msk.bf16.mxu1 %vm1006_vm4, %v9464_v1  ;;  %v9847_v17 = vld [vmem:[%s10914_s0 + $0xd4] sm:$0x1]  ;;  %v11187_v1 = vld [vmem:[#allocation18_spill] sm:$0xff] }
 0x1a0   :  { %7164 = vmatprep.mubr.msk.bf16.mxu0 %vm1006_vm4, %v11186_v15  ;;  %v11188_v15 = vld [vmem:[#allocation19_spill] sm:$0xff]  ;;  %v4322_v10 = vor.u32 %v4321_v35, %v4317_v43  ;;  %v4325_v0 = vshll.u32 %v9847_v17, 16  ;;  %v4318_v35 = vsel %vm8035_vm3, %v4313_v47, %v4317_v43  ;;  %v3167_v47 = vrot.slane %v3165_v51, 4 }
 0x1a1   :  { %v11194_v43 = vld [vmem:[#allocation31_spill] sm:$0xff] }
 0x1a2   :  { %v4323_v41 = vrot.slane %v4322_v10, 4  ;;  %v4327_v34 = vrot.slane %v4325_v0, 5 }
 0x1a4   :  { %v4328_v61 = vsel %vm8035_vm3, %v4323_v41, %v4327_v34  ;;  %v11197_v34 = vld [vmem:[#allocation36_spill] sm:$0xff]  ;;  %v3155_v41 = vshll.u32 %v9487_v57, 16 }
 0x1a5   :  { %v6300_v56 = vcombine.low %v4318_v35, %v4328_v61  ;;  %v4343_v35 = vshrl.u32 %v9787_v36, 16  ;;  %v4339_v61 = vshll.u32 %v9787_v36, 16  ;;  %v11205_v36 = vld [vmem:[#allocation58_spill] sm:$0xff] }
 0x1a6   :  { %6871 = vmatmul.mubr.msk.bf16.gmra.mrb[56].mxu1 %vm1006_vm4, %v9341_v49  ;;  %v11189_v49 = vld [vmem:[#allocation22_spill] sm:$0xff]  ;;  %v3157_v0 = vrot.slane %v3155_v41, 5 }
 0x1a7   :  { %7165 = vmatmul.mubr.msk.bf16.gmra.mrb[20].mxu0 %vm1006_vm4, %v11187_v1  ;;  %6874 = vmatprep.mubr.msk.bf16.mxu1 %vm1006_vm4, %v9355_v12  ;;  %v11190_v1 = vld [vmem:[#allocation26_spill] sm:$0xff]  ;;  %v4345_v51 = vrot.slane %v4343_v35, 4 }
 0x1a8   :  { %7168 = vmatprep.mubr.msk.bf16.mxu0 %vm1006_vm4, %v11188_v15 }
 0x1ae   :  { %6875 = vmatmul.mubr.msk.bf16.gmra.mrb[60].mxu1 %vm1006_vm4, %v9363_v23 }
 0x1af   :  { %7169 = vmatmul.mubr.msk.bf16.gmra.mrb[24].mxu0 %vm1006_vm4, %v11189_v49  ;;  %6880 = vmatprep.mubr.msk.bf16.mxu1 %vm1006_vm4, %v9176_v28  ;;  %v11192_v49 = vld [vmem:[#allocation28_spill] sm:$0xff]  ;;  %v11193_v28 = vld [vmem:[#allocation5_spill] sm:$0xff] }
 0x1b0   :  { %7172 = vmatprep.mubr.msk.bf16.mxu0 %vm1006_vm4, %v11190_v1  ;;  %v11202_v1 = vld [vmem:[#allocation51_spill] sm:$0xff] }
 0x1b6   :  { %6881 = vmatmul.mubr.msk.bf16.vlgmr.msra.gmra.mrb[0].mxu1 %vm1006_vm4, %v9189_v62  ;;  %v11195_v62 = vld [vmem:[#allocation33_spill] sm:$0xff] }
 0x1b7   :  { %7173 = vmatmul.mubr.msk.bf16.gmra.mrb[28].mxu0 %vm1006_vm4, %v6300_v56  ;;  %6884 = vmatprep.mubr.msk.bf16.mxu1 %vm1006_vm4, %v9223_v31  ;;  %v11196_v31 = vld [vmem:[#allocation34_spill] sm:$0xff] }
 0x1b8   :  { %7176 = vmatprep.mubr.msk.bf16.mxu0 %vm1006_vm4, %v11192_v49  ;;  %7290 = vmatpush3.bf16.msra.mxu1 %v11193_v28 }
 0x1be   :  { %6885 = vmatmul.mubr.msk.bf16.gmra.mrb[4].mxu1 %vm1006_vm4, %v9233_v3  ;;  %v11198_v3 = vld [vmem:[#allocation40_spill] sm:$0xff] }
 0x1bf   :  { %7177 = vmatmul.mubr.msk.bf16.gmra.mrb[32].mxu0 %vm1006_vm4, %v11194_v43  ;;  %6888 = vmatprep.mubr.msk.bf16.mxu1 %vm1006_vm4, %v9272_v44  ;;  %v11199_v44 = vld [vmem:[#allocation41_spill] sm:$0xff] }
 0x1c0   :  { %7180 = vmatprep.mubr.msk.bf16.mxu0 %vm1006_vm4, %v11195_v62 }
 0x1c6   :  { %6889 = vmatmul.mubr.msk.bf16.gmra.mrb[8].mxu1 %vm1006_vm4, %v9284_v26  ;;  %v11200_v26 = vld [vmem:[#allocation43_spill] sm:$0xff] }
 0x1c7   :  { %7181 = vmatmul.mubr.msk.bf16.gmra.mrb[36].mxu0 %vm1006_vm4, %v11196_v31  ;;  %6892 = vmatprep.mubr.msk.bf16.mxu1 %vm1006_vm4, %v9296_v37  ;;  %v11201_v37 = vld [vmem:[#allocation49_spill] sm:$0xff] }
 0x1c8   :  { %7184 = vmatprep.mubr.msk.bf16.mxu0 %vm1006_vm4, %v11197_v34 }
 0x1ce   :  { %6893 = vmatmul.mubr.msk.bf16.gmra.mrb[12].mxu1 %vm1006_vm4, %v9304_v7  ;;  %v3152_v7 = vshrl.u32 %v9487_v57, 16  ;;  %v4333_v57 = vshll.u32 %v9782_v16, 16 }
 0x1cf   :  { %7185 = vmatmul.mubr.msk.bf16.gmra.mrb[40].mxu0 %vm1006_vm4, %v11198_v3  ;;  %6896 = vmatprep.mubr.msk.bf16.mxu1 %vm1006_vm4, %v9383_v25  ;;  %v3161_v25 = vshll.u32 %v9473_v27, 16  ;;  %v11203_v27 = vld [vmem:[#allocation53_spill] sm:$0xff] }
 0x1d0   :  { %7188 = vmatprep.mubr.msk.bf16.mxu0 %vm1006_vm4, %v11199_v44  ;;  %v3154_v10 = vrot.slane %v3152_v7, 4  ;;  %v4335_v41 = vrot.slane %v4333_v57, 5 }
 0x1d2   :  { %v3158_v56 = vor.u32 %v3157_v0, %v3154_v10  ;;  %v11206_v10 = vld [vmem:[#allocation61_spill] sm:$0xff] }
 0x1d6   :  { %6897 = vmatmul.mubr.msk.bf16.gmra.mrb[16].mxu1 %vm1006_vm4, %v9405_v5  ;;  %v3163_v5 = vrot.slane %v3161_v25, 5  ;;  %v4341_v25 = vrot.slane %v4339_v61, 5 }
 0x1d7   :  { %7189 = vmatmul.mubr.msk.bf16.gmra.mrb[44].mxu0 %vm1006_vm4, %v11200_v26  ;;  %6900 = vmatprep.mubr.msk.bf16.mxu1 %vm1006_vm4, %v9436_v63  ;;  %v4330_v63 = vshrl.u32 %v9782_v16, 16  ;;  %v9930_v16 = vld [vmem:[%s10914_s0 + $0x1ac] sm:$0x1] }
 0x1d8   :  { %7192 = vmatprep.mubr.msk.bf16.mxu0 %vm1006_vm4, %v11201_v37  ;;  %v3168_v49 = vor.u32 %v3167_v47, %v3163_v5  ;;  %v4346_v47 = vor.u32 %v4345_v51, %v4341_v25 }
 0x1d9   :  { %v4332_v7 = vrot.slane %v4330_v63, 4  ;;  %v4349_v63 = vshll.u32 %v9930_v16, 16 }
 0x1da   :  { %v3169_v23 = vrot.slane %v3168_v49, 4 }
 0x1db   :  { %v4336_v0 = vor.u32 %v4335_v41, %v4332_v7  ;;  %v4351_v49 = vrot.slane %v4349_v63, 5 }
 0x1dd   :  { %v4337_v61 = vrot.slane %v4336_v0, 4 }
 0x1de   :  { %6901 = vmatmul.mubr.msk.bf16.gmra.mrb[20].mxu1 %vm1006_vm4, %v9442_v55  ;;  %v11204_v55 = vld [vmem:[#allocation55_spill] sm:$0xff] }
 0x1df   :  { %7193 = vmatmul.mubr.msk.bf16.gmra.mrb[48].mxu0 %vm1006_vm4, %v11202_v1  ;;  %6904 = vmatprep.mubr.msk.bf16.mxu1 %vm1006_vm4, %v9462_v50  ;;  %v3171_v28 = vshll.u32 %v11204_v55, 16  ;;  %v3159_v50 = vrot.slane %v3158_v56, 4  ;;  %v4347_v56 = vrot.slane %v4346_v47, 4 }
 0x1e0   :  { %7196 = vmatprep.mubr.msk.bf16.mxu0 %vm1006_vm4, %v11203_v27 }
 0x1e1   :  { %v3173_v12 = vrot.slane %v3171_v28, 5  ;;  %v3164_v57 = vsel %vm8035_vm3, %v3159_v50, %v3163_v5 }
 0x1e3   :  { %v3174_v35 = vsel %vm8035_vm3, %v3169_v23, %v3173_v12  ;;  %v4342_v12 = vsel %vm8035_vm3, %v4337_v61, %v4341_v25  ;;  %v4352_v23 = vsel %vm8035_vm3, %v4347_v56, %v4351_v49 }
 0x1e4   :  { %v6301_v5 = vcombine.low %v4342_v12, %v4352_v23 }
 0x1e6   :  { %6905 = vmatmul.mubr.msk.bf16.gmra.mrb[24].mxu1 %vm1006_vm4, %v9468_v14  ;;  %v9945_v14 = vcombine.low %v3164_v57, %v3174_v35 }
 0x1e7   :  { %7197 = vmatmul.mubr.msk.bf16.gmra.mrb[52].mxu0 %vm1006_vm4, %v11205_v36  ;;  %6908 = vmatprep.mubr.msk.bf16.mxu1 %vm1006_vm4, %v9496_v22  ;;  %v11207_v22 = vld [vmem:[#allocation66_spill] sm:$0xff] }
 0x1e8   :  { %7200 = vmatprep.mubr.msk.bf16.mxu0 %vm1006_vm4, %v11206_v10 }
 0x1ee   :  { %6909 = vmatmul.mubr.msk.bf16.gmra.mrb[28].mxu1 %vm1006_vm4, %v9677_v8  ;;  %v11214_v8 = vld [vmem:[#allocation47_spill] sm:$0xff] }
 0x1ef   :  { %7201 = vmatmul.mubr.msk.bf16.gmra.mrb[56].mxu0 %vm1006_vm4, %v11207_v22  ;;  %6912 = vmatprep.mubr.msk.bf16.mxu1 %vm1006_vm4, %v9529_v21  ;;  %v11208_v21 = vld [vmem:[#allocation39_spill] sm:$0xff] }
 0x1f0   :  { %7204 = vmatprep.mubr.msk.bf16.mxu0 %vm1006_vm4, %v9945_v14 }
 0x1f6   :  { %6913 = vmatmul.mubr.msk.bf16.gmra.mrb[32].mxu1 %vm1006_vm4, %v9539_v53  ;;  %v11209_v53 = vld [vmem:[#allocation50_spill] sm:$0xff] }
 0x1f7   :  { %7205 = vmatmul.mubr.msk.bf16.gmra.mrb[60].mxu0 %vm1006_vm4, %v6301_v5  ;;  %6916 = vmatprep.mubr.msk.bf16.mxu1 %vm1006_vm4, %v9555_v20  ;;  %v11210_v20 = vld [vmem:[#allocation42_spill] sm:$0xff] }
 0x1f8   :  { %7210 = vmatprep.mubr.msk.bf16.mxu0 %vm1006_vm4, %v11162_v45  ;;  %v11216_v45 = vld [vmem:[#allocation54_spill] sm:$0xff] }
 0x1fe   :  { %6917 = vmatmul.mubr.msk.bf16.gmra.mrb[36].mxu1 %vm1006_vm4, %v9563_v18  ;;  %v11211_v18 = vld [vmem:[#allocation60_spill] sm:$0xff] }
 0x1ff   :  { %7211 = vmatmul.mubr.msk.bf16.vlgmr.msra.gmra.mrb[0].mxu0 %vm1006_vm4, %v11163_v32  ;;  %6920 = vmatprep.mubr.msk.bf16.mxu1 %vm1006_vm4, %v9588_v9  ;;  %v11212_v9 = vld [vmem:[#allocation44_spill] sm:$0xff]  ;;  %v11217_v32 = vld [vmem:[#allocation57_spill] sm:$0xff] }
 0x200   :  { %7214 = vmatprep.mubr.msk.bf16.mxu0 %vm1006_vm4, %v11164_v59  ;;  %v4730_v59 = vrot.slane %v9847_v17, 5 }
 0x206   :  { %6921 = vmatmul.mubr.msk.bf16.gmra.mrb[40].mxu1 %vm1006_vm4, %v9596_v38  ;;  %v11213_v38 = vld [vmem:[#allocation59_spill] sm:$0xff] }
 0x207   :  { %7215 = vmatmul.mubr.msk.bf16.gmra.mrb[4].mxu0 %vm1006_vm4, %v11165_v52  ;;  %6924 = vmatprep.mubr.msk.bf16.mxu1 %vm1006_vm4, %v9608_v40  ;;  %v11215_v40 = vld [vmem:[#allocation52_spill] sm:$0xff]  ;;  %v11226_v52 = vld [vmem:[#allocation25_spill] sm:$0xff] }
 0x208   :  { %7218 = vmatprep.mubr.msk.bf16.mxu0 %vm1006_vm4, %v11208_v21 }
 0x20e   :  { %6925 = vmatmul.mubr.msk.bf16.gmra.mrb[44].mxu1 %vm1006_vm4, %v11209_v53  ;;  %v5528_v53 = vld [vmem:[%s10917_s3] sm:$0xff] }
 0x20f   :  { %7219 = vmatmul.mubr.msk.bf16.gmra.mrb[8].mxu0 %vm1006_vm4, %v11210_v20  ;;  %6928 = vmatprep.mubr.msk.bf16.mxu1 %vm1006_vm4, %v11211_v18  ;;  %v5529_v20 = vld [vmem:[%s10917_s3 + $0x8] sm:$0xff]  ;;  %v7936_v18 = vmov 0.0|0.0  }
 0x210   :  { %7222 = vmatprep.mubr.msk.bf16.mxu0 %vm1006_vm4, %v11212_v9  ;;  %7286 = vmatprep.subr.bf16.mxu1 %v7936_v18  ;;  %v7287_v9 = vpack.c.bf16 %v5529_v20, %v5528_v53 }
 0x216   :  { %6929 = vmatmul.mubr.msk.bf16.gmra.mrb[48].mxu1 %vm1006_vm4, %v11213_v38 }
 0x217   :  { %7223 = vmatmul.mubr.msk.bf16.gmra.mrb[12].mxu0 %vm1006_vm4, %v11214_v8  ;;  %6932 = vmatprep.mubr.msk.bf16.mxu1 %vm1006_vm4, %v9640_v30  ;;  %v4727_v30 = vrot.slane %v9694_v60, 5  ;;  %v11225_v60 = vld [vmem:[#allocation21_spill] sm:$0xff] }
 0x218   :  { %7226 = vmatprep.mubr.msk.bf16.mxu0 %vm1006_vm4, %v11215_v40 }
 0x21e   :  { %6933 = vmatmul.mubr.msk.bf16.gmra.mrb[52].mxu1 %vm1006_vm4, %v9644_v13  ;;  %v6334_v13 = vrot.slane %v9689_v4, 9 }
 0x21f   :  { %7227 = vmatmul.mubr.msk.bf16.gmra.mrb[16].mxu0 %vm1006_vm4, %v11216_v45  ;;  %6936 = vmatprep.mubr.msk.bf16.mxu1 %vm1006_vm4, %v9387_v29  ;;  %v4729_v29 = vrot.slane %v4727_v30, 4 }
 0x220   :  { %7230 = vmatprep.mubr.msk.bf16.mxu0 %vm1006_vm4, %v11217_v32 }
 0x226   :  { %6937 = vmatmul.mubr.msk.bf16.gmra.mrb[56].mxu1 %vm1006_vm4, %v9391_v39  ;;  %v11218_v39 = vld [vmem:[#allocation20_spill] sm:$0xff] }
 0x227   :  { %7231 = vmatmul.mubr.msk.bf16.gmra.mrb[20].mxu0 %vm1006_vm4, %v11173_v48  ;;  %6940 = vmatprep.mubr.msk.bf16.mxu1 %vm1006_vm4, %v9395_v46  ;;  %v4731_v46 = vsel %vm8557_vm7, %v4729_v29, %v4730_v59  ;;  %v11227_v48 = vld [vmem:[#allocation38_spill] sm:$0xff] }
 0x228   :  { %7234 = vmatprep.mubr.msk.bf16.mxu0 %vm1006_vm4, %v9147_v19  ;;  %v4728_v19 = vsel %vm8557_vm7, %v6334_v13, %v4727_v30 }
 0x229   :  { %v6337_v4 = vcombine.low %v4728_v19, %v4731_v46  ;;  %v10161_v19 = vld [vmem:[%s10916_s2] ss:$0 sm:$0xff] }
 0x22e   :  { %6941 = vmatmul.mubr.msk.bf16.gmra.mrb[60].mxu1 %vm1006_vm4, %v9770_v33  ;;  %v4734_v33 = vrot.slane %v11227_v48, 5 }
 0x22f   :  { %7235 = vmatmul.mubr.msk.bf16.gmra.mrb[24].mxu0 %vm1006_vm4, %v9154_v2  ;;  %6982 = vmatprep.mubr.msk.bf16.mxu1 %vm1006_vm4, %v11194_v43  ;;  %v11219_v2 = vld [vmem:[#allocation23_spill] sm:$0xff]  ;;  %v4737_v43 = vrot.slane %v9930_v16, 5 }
 0x230   :  { %7238 = vmatprep.mubr.msk.bf16.mxu0 %vm1006_vm4, %v11218_v39  ;;  %v4736_v15 = vrot.slane %v4734_v33, 4 }
 0x236   :  { %6983 = vmatmul.mubr.msk.bf16.vlgmr.msra.gmra.mrb[36].mxu1 %vm1006_vm4, %v11195_v62  ;;  %v11229_v62 = vld [vmem:[#allocation27_spill] sm:$0xff] }
 0x237   :  { %7239 = vmatmul.mubr.msk.bf16.gmra.mrb[28].mxu0 %vm1006_vm4, %v6337_v4  ;;  %6986 = vmatprep.mubr.msk.bf16.mxu1 %vm1006_vm4, %v11196_v31  ;;  %v11230_v31 = vld [vmem:[#allocation46_spill] sm:$0xff] }
 0x238   :  { %7242 = vmatprep.mubr.msk.bf16.mxu0 %vm1006_vm4, %v9225_v24  ;;  %v11220_v24 = vld [vmem:[#allocation24_spill] sm:$0xff]  ;;  %7288 = vmatpush3.bf16.msra.mxu1 %v7287_v9 }
 0x23e   :  { %6987 = vmatmul.mubr.msk.bf16.gmra.mrb[40].mxu1 %vm1006_vm4, %v11197_v34 }
 0x23f   :  { %7243 = vmatmul.mubr.msk.bf16.gmra.mrb[32].mxu0 %vm1006_vm4, %v9235_v11  ;;  %6990 = vmatprep.mubr.msk.bf16.mxu1 %vm1006_vm4, %v11198_v3  ;;  %v11221_v11 = vld [vmem:[#allocation67_spill] sm:$0xff]  ;;  %v4738_v3 = vsel %vm8557_vm7, %v4736_v15, %v4737_v43 }
 0x240   :  { %7246 = vmatprep.mubr.msk.bf16.mxu0 %vm1006_vm4, %v9276_v6  ;;  %v11222_v6 = vld [vmem:[#allocation45_spill] sm:$0xff] }
 0x246   :  { %6991 = vmatmul.mubr.msk.bf16.gmra.mrb[44].mxu1 %vm1006_vm4, %v11199_v44 }
 0x247   :  { %7247 = vmatmul.mubr.msk.bf16.gmra.mrb[36].mxu0 %vm1006_vm4, %v9287_v54  ;;  %6994 = vmatprep.mubr.msk.bf16.mxu1 %vm1006_vm4, %v11200_v26  ;;  %v11223_v54 = vld [vmem:[#allocation48_spill] sm:$0xff] }
 0x248   :  { %7250 = vmatprep.mubr.msk.bf16.mxu0 %vm1006_vm4, %v9334_v58  ;;  %v11224_v58 = vld [vmem:[#allocation56_spill] sm:$0xff] }
 0x24e   :  { %6995 = vmatmul.mubr.msk.bf16.gmra.mrb[48].mxu1 %vm1006_vm4, %v11201_v37 }
 0x24f   :  { %7251 = vmatmul.mubr.msk.bf16.gmra.mrb[40].mxu0 %vm1006_vm4, %v11219_v2  ;;  %6998 = vmatprep.mubr.msk.bf16.mxu1 %vm1006_vm4, %v11202_v1 }
 0x250   :  { %7254 = vmatprep.mubr.msk.bf16.mxu0 %vm1006_vm4, %v11220_v24 }
 0x256   :  { %6999 = vmatmul.mubr.msk.bf16.gmra.mrb[52].mxu1 %vm1006_vm4, %v11203_v27 }
 0x257   :  { %7255 = vmatmul.mubr.msk.bf16.gmra.mrb[44].mxu0 %vm1006_vm4, %v11221_v11  ;;  %7002 = vmatprep.mubr.msk.bf16.mxu1 %vm1006_vm4, %v11205_v36  ;;  %v11228_v36 = vld [vmem:[#allocation65_spill] sm:$0xff] }
 0x258   :  { %7258 = vmatprep.mubr.msk.bf16.mxu0 %vm1006_vm4, %v11222_v6  ;;  %v6335_v17 = vrot.slane %v11228_v36, 9 }
 0x25a   :  { %v4735_v34 = vsel %vm8557_vm7, %v6335_v17, %v4734_v33 }
 0x25b   :  { %v6338_v44 = vcombine.low %v4735_v34, %v4738_v3 }
 0x25e   :  { %7003 = vmatmul.mubr.msk.bf16.gmra.mrb[56].mxu1 %vm1006_vm4, %v11206_v10 }
 0x25f   :  { %7259 = vmatmul.mubr.msk.bf16.gmra.mrb[48].mxu0 %vm1006_vm4, %v11223_v54  ;;  %7006 = vmatprep.mubr.msk.bf16.mxu1 %vm1006_vm4, %v11207_v22 }
 0x260   :  { %7262 = vmatprep.mubr.msk.bf16.mxu0 %vm1006_vm4, %v11224_v58 }
 0x266   :  { %7007 = vmatmul.mubr.msk.bf16.gmra.mrb[60].mxu1 %vm1006_vm4, %v9945_v14 }
 0x267   :  { %7263 = vmatmul.mubr.msk.bf16.gmra.mrb[52].mxu0 %vm1006_vm4, %v11225_v60 }
 0x268   :  { %7266 = vmatprep.mubr.msk.bf16.mxu0 %vm1006_vm4, %v11226_v52 }
 0x26f   :  { %7267 = vmatmul.mubr.msk.bf16.gmra.mrb[56].mxu0 %vm1006_vm4, %v11229_v62 }
 0x270   :  { %7270 = vmatprep.mubr.msk.bf16.mxu0 %vm1006_vm4, %v11230_v31 }
 0x277   :  { %7271 = vmatmul.mubr.msk.bf16.gmra.mrb[60].mxu0 %vm1006_vm4, %v6338_v44 }
 0x289   :  { %v6882_v26 = vpop.f32.mrb[0].mxu1 }
 0x28a   :  { %v2808_v37 = vpop.f32.mrb[1].mxu1 }
 0x28b   :  { %v6883_v1 = vpop.f32.mrb[2].mxu1 }
 0x28c   :  { %v2811_v27 = vpop.f32.mrb[3].mxu1 }
 0x291   :  { %v6886_v16 = vpop.f32.mrb[4].mxu1 }
 0x292   :  { %v2824_v55 = vpop.f32.mrb[5].mxu1 }
 0x293   :  { %v6887_v28 = vpop.f32.mrb[6].mxu1 }
 0x294   :  { %v10094_v7 = vpop.f32.mrb[7].mxu1 }
 0x299   :  { %v10096_v41 = vpop.f32.mrb[8].mxu1 }
 0x29a   :  { %v10098_v25 = vpop.f32.mrb[9].mxu1 }
 0x29b   :  { %v10100_v51 = vpop.f32.mrb[10].mxu1 }
 0x29c   :  { %v10102_v42 = vpop.f32.mrb[11].mxu1 }
 0x2a1   :  { %v10104_v50 = vpop.f32.mrb[12].mxu1 }
 0x2a2   :  { %v10106_v10 = vpop.f32.mrb[13].mxu1 }
 0x2a3   :  { %v10108_v0 = vpop.f32.mrb[14].mxu1 }
 0x2a4   :  { %v10110_v47 = vpop.f32.mrb[15].mxu1 }
 0x2a9   :  { %v10112_v63 = vpop.f32.mrb[16].mxu1 }
 0x2aa   :  { %v10114_v57 = vpop.f32.mrb[17].mxu1 }
 0x2ab   :  { %v10116_v35 = vpop.f32.mrb[18].mxu1 }
 0x2ac   :  { %v10118_v14 = vpop.f32.mrb[19].mxu1 }
 0x2b1   :  { %v10120_v61 = vpop.f32.mrb[20].mxu1 }
 0x2b2   :  { %v10122_v56 = vpop.f32.mrb[21].mxu1 }
 0x2b3   :  { %v10124_v49 = vpop.f32.mrb[22].mxu1 }
 0x2b4   :  { %v10126_v22 = vpop.f32.mrb[23].mxu1 }
 0x2b9   :  { %v10128_v12 = vpop.f32.mrb[24].mxu1 }
 0x2ba   :  { %v10130_v23 = vpop.f32.mrb[25].mxu1 }
 0x2bb   :  { %v10132_v5 = vpop.f32.mrb[26].mxu1 }
 0x2bc   :  { %v10134_v21 = vpop.f32.mrb[27].mxu1 }
 0x2c1   :  { %v10142_v38 = vpop.f32.mrb[28].mxu1 }
 0x2c2   :  { %v10144_v8 = vpop.f32.mrb[29].mxu1 }
 0x2c3   :  { %v10146_v40 = vpop.f32.mrb[30].mxu1 }
 0x2c4   :  { %v10148_v45 = vpop.f32.mrb[31].mxu1 }
 0x2c9   :  { %v10150_v32 = vpop.f32.mrb[32].mxu1 }
 0x2ca   :  { %v10152_v30 = vpop.f32.mrb[33].mxu1 }
 0x2cb   :  { %v10154_v13 = vpop.f32.mrb[34].mxu1 }
 0x2cc   :  { %v10156_v29 = vpop.f32.mrb[35].mxu1 }
 0x2d2   :  { %v7212_v59 = vpop.f32.mrb[0].mxu0 }
 0x2d3   :  { %v7291_v39 = vadd.f32 %v7212_v59, %v6882_v26  ;;  %v4790_v46 = vpop.f32.mrb[1].mxu0 }
 0x2d4   :  { %v7292_v4 = vadd.f32 %v4790_v46, %v2808_v37  ;;  %v7213_v2 = vpop.f32.mrb[2].mxu0 }
 0x2d5   :  { %v7293_v24 = vadd.f32 %v7213_v2, %v6883_v1  ;;  %v4793_v11 = vpop.f32.mrb[3].mxu0  ;;  %v5118_v6 = vadd.f32 %v7291_v39, %v10161_v19 }
 0x2d6   :  { %v5116_v54 = vadd.f32 %v7292_v4, %v10161_v19  ;;  %v7294_v58 = vadd.f32 %v4793_v11, %v2811_v27 }
 0x2d7   :  { %v5119_v52 = vadd.f32 %v7293_v24, %v10161_v19  ;;  %v10169_v33 = vmax.f32 %v5118_v6, 0.0 }
 0x2d8   :  { %v10165_v60 = vmax.f32 %v5116_v54, 0.0  ;;  %v5117_v48 = vadd.f32 %v7294_v58, %v10161_v19 }
 0x2d9   :  { %v10175_v31 = vmax.f32 %v5119_v52, 0.0  ;;  %v5248_v27 = vsel %vm5244_vm8, %v10169_v33, 0.0 }
 0x2da   :  { %v10171_v36 = vmax.f32 %v5117_v48, 0.0  ;;  %v7216_v17 = vpop.f32.mrb[4].mxu0  ;;  %v5245_v62 = vsel %vm5244_vm8, %v10165_v60, 0.0 }
 0x2db   :  { %v7295_v15 = vadd.f32 %v7216_v17, %v6886_v16  ;;  %v4806_v43 = vpop.f32.mrb[5].mxu0  ;;  %v5250_v9 = vsel %vm5244_vm8, %v10175_v31, 0.0 }
 0x2dc   :  { %v5246_v34 = vsel %vm5244_vm8, %v10171_v36, 0.0  ;;  %v7296_v3 = vadd.f32 %v4806_v43, %v2824_v55  ;;  %v7217_v44 = vpop.f32.mrb[6].mxu0 }
 0x2dd   :  { %v5247_v26 = vadd.f32 %v5246_v34, %v5245_v62  ;;  %v7297_v37 = vadd.f32 %v7217_v44, %v6887_v28  ;;  %v4809_v1 = vpop.f32.mrb[7].mxu0  ;;  %v5122_v53 = vadd.f32 %v7295_v15, %v10161_v19 }
 0x2de   :  { %v5120_v16 = vadd.f32 %v7296_v3, %v10161_v19  ;;  %v7298_v20 = vadd.f32 %v4809_v1, %v10094_v7 }
 0x2df   :  { %v5249_v18 = vadd.f32 %v5248_v27, %v5247_v26  ;;  %v5123_v55 = vadd.f32 %v7297_v37, %v10161_v19  ;;  %v10190_v46 = vmax.f32 %v5122_v53, 0.0  ;;  %v11029_v27 = vmov 0.0  }
 0x2e0   :  { %v10186_v59 = vmax.f32 %v5120_v16, 0.0  ;;  %v5121_v28 = vadd.f32 %v7298_v20, %v10161_v19  ;;  %7278 = vmatprep.mubr.msk.f32.mxu1 %vm7937_vm9, %v11029_v27  ;;  %7281 = vmatprep.subr.mxu1 %v11029_v27 }
 0x2e1   :  { %v5251_v39 = vadd.f32 %v5250_v9, %v5249_v18  ;;  %v10196_v6 = vmax.f32 %v5123_v55, 0.0  ;;  %v5256_v62 = vsel %vm5244_vm8, %v10190_v46, 0.0 }
 0x2e2   :  { %v5252_v4 = vsel %vm5244_vm8, %v10186_v59, 0.0  ;;  %v10194_v2 = vmax.f32 %v5121_v28, 0.0  ;;  %v7220_v24 = vpop.f32.mrb[8].mxu0 }
 0x2e3   :  { %v5253_v7 = vadd.f32 %v5252_v4, %v5251_v39  ;;  %v4822_v11 = vpop.f32.mrb[9].mxu0  ;;  %v7299_v58 = vadd.f32 %v7220_v24, %v10096_v41  ;;  %v5258_v41 = vsel %vm5244_vm8, %v10196_v6, 0.0 }
 0x2e4   :  { %v5254_v54 = vsel %vm5244_vm8, %v10194_v2, 0.0  ;;  %v7221_v52 = vpop.f32.mrb[10].mxu0  ;;  %v7300_v17 = vadd.f32 %v4822_v11, %v10098_v25 }
 0x2e5   :  { %v5255_v48 = vadd.f32 %v5254_v54, %v5253_v7  ;;  %v7301_v15 = vadd.f32 %v7221_v52, %v10100_v51  ;;  %v4825_v43 = vpop.f32.mrb[11].mxu0  ;;  %v5126_v44 = vadd.f32 %v7299_v58, %v10161_v19 }
 0x2e6   :  { %v7302_v34 = vadd.f32 %v4825_v43, %v10102_v42  ;;  %v5124_v26 = vadd.f32 %v7300_v17, %v10161_v19 }
 0x2e7   :  { %v5257_v3 = vadd.f32 %v5256_v62, %v5255_v48  ;;  %v5127_v51 = vadd.f32 %v7301_v15, %v10161_v19  ;;  %v10219_v16 = vmax.f32 %v5126_v44, 0.0 }
 0x2e8   :  { %v5125_v37 = vadd.f32 %v7302_v34, %v10161_v19  ;;  %v10211_v1 = vmax.f32 %v5124_v26, 0.0 }
 0x2e9   :  { %v5259_v25 = vadd.f32 %v5258_v41, %v5257_v3  ;;  %11233 = vst [vmem:[#allocation29_spill] sm:$0xff] %v10219_v16  ;;  %v10225_v39 = vmax.f32 %v5127_v51, 0.0  ;;  %v5264_v52 = vsel %vm5244_vm8, %v10219_v16, 0.0 }
 0x2ea   :  { %11231 = vst [vmem:[#allocation64_spill] sm:$0xff] %v10211_v1  ;;  %v10217_v42 = vmax.f32 %v5125_v37, 0.0  ;;  %v7224_v53 = vpop.f32.mrb[12].mxu0  ;;  %v5260_v20 = vsel %vm5244_vm8, %v10211_v1, 0.0 }
 0x2eb   :  { %v4838_v18 = vpop.f32.mrb[13].mxu0  ;;  %v5261_v9 = vadd.f32 %v5260_v20, %v5259_v25  ;;  %11234 = vst [vmem:[#allocation30_spill] sm:$0xff] %v10225_v39  ;;  %v7303_v4 = vadd.f32 %v7224_v53, %v10104_v50  ;;  %v5266_v50 = vsel %vm5244_vm8, %v10225_v39, 0.0 }
 0x2ec   :  { %11232 = vst [vmem:[#allocation63_spill] sm:$0xff] %v10217_v42  ;;  %v5262_v55 = vsel %vm5244_vm8, %v10217_v42, 0.0  ;;  %v7225_v28 = vpop.f32.mrb[14].mxu0  ;;  %v7304_v24 = vadd.f32 %v4838_v18, %v10106_v10 }
 0x2ed   :  { %v4841_v7 = vpop.f32.mrb[15].mxu0  ;;  %v5263_v11 = vadd.f32 %v5262_v55, %v5261_v9  ;;  %v7305_v54 = vadd.f32 %v7225_v28, %v10108_v0  ;;  %v5130_v48 = vadd.f32 %v7303_v4, %v10161_v19 }
 0x2ee   :  { %v7306_v58 = vadd.f32 %v4841_v7, %v10110_v47  ;;  %v5128_v17 = vadd.f32 %v7304_v24, %v10161_v19 }
 0x2ef   :  { %v5265_v15 = vadd.f32 %v5264_v52, %v5263_v11  ;;  %v5131_v62 = vadd.f32 %v7305_v54, %v10161_v19  ;;  %v10243_v3 = vmax.f32 %v5130_v48, 0.0 }
 0x2f0   :  { %v5129_v43 = vadd.f32 %v7306_v58, %v10161_v19  ;;  %v10238_v10 = vmax.f32 %v5128_v17, 0.0 }
 0x2f1   :  { %v5267_v0 = vadd.f32 %v5266_v50, %v5265_v15  ;;  %11237 = vst [vmem:[#allocation37_spill] sm:$0xff] %v10243_v3  ;;  %v10247_v25 = vmax.f32 %v5131_v62, 0.0  ;;  %v5272_v55 = vsel %vm5244_vm8, %v10243_v3, 0.0 }
 0x2f2   :  { %11235 = vst [vmem:[#allocation32_spill] sm:$0xff] %v10238_v10  ;;  %v10241_v34 = vmax.f32 %v5129_v43, 0.0  ;;  %v7228_v47 = vpop.f32.mrb[16].mxu0  ;;  %v5268_v44 = vsel %vm5244_vm8, %v10238_v10, 0.0 }
 0x2f3   :  { %v4854_v26 = vpop.f32.mrb[17].mxu0  ;;  %v5269_v41 = vadd.f32 %v5268_v44, %v5267_v0  ;;  %11238 = vst [vmem:[#allocation62_spill] sm:$0xff] %v10247_v25  ;;  %v7307_v53 = vadd.f32 %v7228_v47, %v10112_v63  ;;  %v5274_v54 = vsel %vm5244_vm8, %v10247_v25, 0.0 }
 0x2f4   :  { %11236 = vst [vmem:[#allocation35_spill] sm:$0xff] %v10241_v34  ;;  %v7229_v37 = vpop.f32.mrb[18].mxu0  ;;  %v5270_v51 = vsel %vm5244_vm8, %v10241_v34, 0.0  ;;  %v7308_v9 = vadd.f32 %v4854_v26, %v10114_v57 }
 0x2f5   :  { %v4857_v20 = vpop.f32.mrb[19].mxu0  ;;  %v5271_v18 = vadd.f32 %v5270_v51, %v5269_v41  ;;  %v7309_v28 = vadd.f32 %v7229_v37, %v10116_v35  ;;  %v5134_v7 = vadd.f32 %v7307_v53, %v10161_v19  ;;  %v5317_v51 = vsel %vm5244_vm8, %v10169_v33, -inf }
 0x2f6   :  { %v7310_v4 = vadd.f32 %v4857_v20, %v10118_v14  ;;  %v5132_v11 = vadd.f32 %v7308_v9, %v10161_v19  ;;  %v5323_v53 = vsel %vm5244_vm8, %v10190_v46, -inf }
 0x2f7   :  { %v5273_v24 = vadd.f32 %v5272_v55, %v5271_v18  ;;  %v5135_v52 = vadd.f32 %v7309_v28, %v10161_v19  ;;  %v10267_v14 = vmax.f32 %v5134_v7, 0.0  ;;  %v5315_v18 = vsel %vm5244_vm8, %v10165_v60, -inf }
 0x2f8   :  { %v5133_v63 = vadd.f32 %v7310_v4, %v10161_v19  ;;  %v10262_v58 = vmax.f32 %v5132_v11, 0.0  ;;  %v5319_v28 = vsel %vm5244_vm8, %v10186_v59, -inf  ;;  %v5316_v7 = vsel %vm5244_vm8, %v10171_v36, -inf }
 0x2f9   :  { %v5275_v57 = vadd.f32 %v5274_v54, %v5273_v24  ;;  %v10272_v47 = vmax.f32 %v5135_v52, 0.0  ;;  %v5324_v11 = vmax.f32 %v5317_v51, %v5323_v53  ;;  %v5327_v51 = vsel %vm5244_vm8, %v10211_v1, -inf }
 0x2fa   :  { %v7232_v48 = vpop.f32.mrb[20].mxu0  ;;  %v10265_v17 = vmax.f32 %v5133_v63, 0.0  ;;  %v5276_v15 = vsel %vm5244_vm8, %v10262_v58, 0.0  ;;  %v5333_v53 = vsel %vm5244_vm8, %v10225_v39, -inf }
 0x2fb   :  { %v4870_v35 = vpop.f32.mrb[21].mxu0  ;;  %v7311_v43 = vadd.f32 %v7232_v48, %v10120_v61  ;;  %v5277_v62 = vadd.f32 %v5276_v15, %v5275_v57  ;;  %v5280_v61 = vsel %vm5244_vm8, %v10267_v14, 0.0  ;;  %v5282_v4 = vsel %vm5244_vm8, %v10272_v47, 0.0 }
 0x2fc   :  { %v7233_v50 = vpop.f32.mrb[22].mxu0  ;;  %v5278_v44 = vsel %vm5244_vm8, %v10265_v17, 0.0  ;;  %v7312_v41 = vadd.f32 %v4870_v35, %v10122_v56 }
 0x2fd   :  { %v4873_v0 = vpop.f32.mrb[23].mxu0  ;;  %v5279_v26 = vadd.f32 %v5278_v44, %v5277_v62  ;;  %v7313_v37 = vadd.f32 %v7233_v50, %v10124_v49  ;;  %v5138_v55 = vadd.f32 %v7311_v43, %v10161_v19  ;;  %v5318_v49 = vsel %vm5244_vm8, %v10175_v31, -inf }
 0x2fe   :  { %v7314_v20 = vadd.f32 %v4873_v0, %v10126_v22  ;;  %v5136_v56 = vadd.f32 %v7312_v41, %v10161_v19  ;;  %v5320_v50 = vmax.f32 %v5315_v18, %v5319_v28  ;;  %v5325_v62 = vsel %vm5244_vm8, %v10196_v6, -inf }
 0x2ff   :  { %v5281_v9 = vadd.f32 %v5280_v61, %v5279_v26  ;;  %v5139_v52 = vadd.f32 %v7313_v37, %v10161_v19  ;;  %v10307_v0 = vmax.f32 %v5138_v55, 0.0  ;;  %v5321_v41 = vsel %vm5244_vm8, %v10194_v2, -inf }
 0x300   :  { %v5137_v24 = vadd.f32 %v7314_v20, %v10161_v19  ;;  %v10298_v54 = vmax.f32 %v5136_v56, 0.0  ;;  %v5331_v37 = vsel %vm5244_vm8, %v10219_v16, -inf  ;;  %v5329_v18 = vsel %vm5244_vm8, %v10217_v42, -inf }
 0x301   :  { %v5283_v63 = vadd.f32 %v5282_v4, %v5281_v9  ;;  %v10325_v9 = vmax.f32 %v5139_v52, 0.0  ;;  %v5326_v28 = vmax.f32 %v5318_v49, %v5325_v62  ;;  %v5322_v4 = vmax.f32 %v5316_v7, %v5321_v41 }
 0x302   :  { %v7236_v22 = vpop.f32.mrb[24].mxu0  ;;  %v10301_v48 = vmax.f32 %v5137_v24, 0.0  ;;  %v5284_v44 = vsel %vm5244_vm8, %v10298_v54, 0.0  ;;  %v5332_v24 = vmax.f32 %v5324_v11, %v5331_v37  ;;  %v5335_v49 = vsel %vm5244_vm8, %v10238_v10, -inf }
 0x303   :  { %v4886_v57 = vpop.f32.mrb[25].mxu0  ;;  %v7315_v35 = vadd.f32 %v7236_v22, %v10128_v12  ;;  %v5285_v12 = vadd.f32 %v5284_v44, %v5283_v63  ;;  %v5288_v22 = vsel %vm5244_vm8, %v10307_v0, 0.0  ;;  %v5337_v62 = vsel %vm5244_vm8, %v10241_v34, -inf }
 0x304   :  { %v7316_v15 = vadd.f32 %v4886_v57, %v10130_v23  ;;  %v7237_v43 = vpop.f32.mrb[26].mxu0  ;;  %v5286_v23 = vsel %vm5244_vm8, %v10301_v48, 0.0  ;;  %v5328_v57 = vmax.f32 %v5320_v50, %v5327_v51  ;;  %v5341_v50 = vsel %vm5244_vm8, %v10247_v25, -inf }
 0x305   :  { %v4889_v26 = vpop.f32.mrb[27].mxu0  ;;  %v7317_v20 = vadd.f32 %v7237_v43, %v10132_v5  ;;  %v5287_v55 = vadd.f32 %v5286_v23, %v5285_v12  ;;  %v5334_v12 = vmax.f32 %v5326_v28, %v5333_v53  ;;  %v5330_v23 = vmax.f32 %v5322_v4, %v5329_v18 }
 0x306   :  { %v5140_v61 = vadd.f32 %v7316_v15, %v10161_v19  ;;  %v7318_v56 = vadd.f32 %v4889_v26, %v10134_v21  ;;  %v5339_v21 = vsel %vm5244_vm8, %v10243_v3, -inf  ;;  %v5347_v26 = vsel %vm5244_vm8, %v10267_v14, -inf }
 0x307   :  { %v5289_v15 = vadd.f32 %v5288_v22, %v5287_v55  ;;  %v5290_v41 = vsel %vm5244_vm8, %v10325_v9, 0.0  ;;  %v5142_v28 = vadd.f32 %v7315_v35, %v10161_v19  ;;  %v5340_v25 = vmax.f32 %v5332_v24, %v5339_v21 }
 0x308   :  { %v10332_v44 = vmax.f32 %v5140_v61, 0.0  ;;  %v5141_v5 = vadd.f32 %v7318_v56, %v10161_v19  ;;  %v5336_v3 = vmax.f32 %v5328_v57, %v5335_v49  ;;  %v5342_v34 = vmax.f32 %v5334_v12, %v5341_v50 }
 0x309   :  { %v10330_v63 = vpop.f32.mrb[36].mxu1  ;;  %v5291_v53 = vadd.f32 %v5290_v41, %v5289_v15  ;;  %v5338_v15 = vmax.f32 %v5330_v23, %v5337_v62  ;;  %v5348_v41 = vmax.f32 %v5340_v25, %v5347_v26  ;;  %v10372_v24 = vmax.f32 %v5142_v28, 0.0 }
 0x30a   :  { %11239 = vst [vmem:[#allocation7_spill] sm:$0xff] %v10332_v44  ;;  %v7240_v43 = vpop.f32.mrb[28].mxu0  ;;  %v10335_v52 = vpop.f32.mrb[37].mxu1  ;;  %v5292_v4 = vsel %vm5244_vm8, %v10332_v44, 0.0  ;;  %v10359_v22 = vmax.f32 %v5141_v5, 0.0  ;;  %v5345_v5 = vsel %vm5244_vm8, %v10265_v17, -inf  ;;  %v5143_v21 = vadd.f32 %v7317_v20, %v10161_v19 }
 0x30b   :  { %v4902_v7 = vpop.f32.mrb[29].mxu0  ;;  %v10341_v11 = vpop.f32.mrb[38].mxu1  ;;  %v7319_v61 = vadd.f32 %v7240_v43, %v10142_v38  ;;  %v5343_v38 = vsel %vm5244_vm8, %v10262_v58, -inf  ;;  %11241 = vst [vmem:[#allocation9_spill] sm:$0xff] %v10372_v24  ;;  %v5351_v12 = vsel %vm5244_vm8, %v10298_v54, -inf  ;;  %v10382_v23 = vsel %vm5244_vm8, %v10325_v9, -inf }
 0x30c   :  { %v7241_v37 = vpop.f32.mrb[30].mxu0  ;;  %v10351_v51 = vpop.f32.mrb[39].mxu1  ;;  %v7320_v18 = vadd.f32 %v4902_v7, %v10144_v8  ;;  %11240 = vst [vmem:[#allocation8_spill] sm:$0xff] %v10359_v22  ;;  %v5349_v8 = vsel %vm5244_vm8, %v10272_v47, -inf  ;;  %v5294_v25 = vsel %vm5244_vm8, %v10359_v22, 0.0  ;;  %v5344_v62 = vmax.f32 %v5336_v3, %v5343_v38 }
 0x30d   :  { %v7321_v55 = vadd.f32 %v7241_v37, %v10146_v40  ;;  %v4905_v56 = vpop.f32.mrb[31].mxu0  ;;  %v5293_v40 = vadd.f32 %v5292_v4, %v5291_v53  ;;  %v10388_v26 = vmax.f32 %v5342_v34, %v5349_v8  ;;  %v10396_v4 = vsel %vm5244_vm8, %v10301_v48, -inf }
 0x30e   :  { %v7322_v27 = vadd.f32 %v4905_v56, %v10148_v45  ;;  %v5355_v45 = vsel %vm5244_vm8, %v10307_v0, -inf  ;;  %v10392_v56 = vmax.f32 %v5338_v15, %v5345_v5  ;;  %v5352_v39 = vmax.f32 %v5344_v62, %v5351_v12 }
 0x30f   :  { %v5356_v28 = vmax.f32 %v5348_v41, %v5355_v45  ;;  %v5295_v10 = vadd.f32 %v5294_v25, %v5293_v40  ;;  %v5363_v34 = vsel %vm5244_vm8, %v10372_v24, -inf  ;;  %v5144_v3 = vadd.f32 %v7320_v18, %v10161_v19 }
 0x310   :  { %v10403_v38 = vmax.f32 %v5143_v21, 0.0  ;;  %v5354_v40 = vmax.f32 %v10392_v56, %v10396_v4  ;;  %v5296_v5 = vsel %vm5244_vm8, %v10372_v24, 0.0  ;;  %v5147_v45 = vadd.f32 %v7321_v55, %v10161_v19 }
 0x311   :  { %v10366_v35 = vpop.f32.mrb[40].mxu1  ;;  %v5145_v18 = vadd.f32 %v7322_v27, %v10161_v19  ;;  %v10423_v21 = vmax.f32 %v5144_v3, 0.0 }
 0x312   :  { %v7244_v57 = vpop.f32.mrb[32].mxu0  ;;  %v10376_v43 = vpop.f32.mrb[41].mxu1  ;;  %11242 = vst [vmem:[#allocation10_spill] sm:$0xff] %v10403_v38  ;;  %v5298_v27 = vsel %vm5244_vm8, %v10403_v38, 0.0 }
 0x313   :  { %v7323_v49 = vadd.f32 %v7244_v57, %v10150_v32  ;;  %v4918_v7 = vpop.f32.mrb[33].mxu0  ;;  %v10386_v50 = vpop.f32.mrb[42].mxu1  ;;  %v5358_v32 = vmax.f32 %v10388_v26, %v10382_v23  ;;  %v5297_v57 = vadd.f32 %v5296_v5, %v5295_v10  ;;  %v5359_v23 = vsel %vm5244_vm8, %v10332_v44, -inf  ;;  %11243 = vst [vmem:[#allocation11_spill] sm:$0xff] %v10423_v21 }
 0x314   :  { %v7245_v37 = vpop.f32.mrb[34].mxu0  ;;  %v10390_v53 = vpop.f32.mrb[43].mxu1  ;;  %v7324_v15 = vadd.f32 %v4918_v7, %v10152_v30  ;;  %v5146_v10 = vadd.f32 %v7319_v61, %v10161_v19  ;;  %v5365_v61 = vsel %vm5244_vm8, %v10403_v38, -inf  ;;  %v10447_v5 = vmax.f32 %v5145_v18, 0.0 }
 0x315   :  { %v4921_v20 = vpop.f32.mrb[35].mxu0  ;;  %v7325_v41 = vadd.f32 %v7245_v37, %v10154_v13  ;;  %v5150_v25 = vadd.f32 %v7323_v49, %v10161_v19 }
 0x316   :  { %v7326_v8 = vadd.f32 %v4921_v20, %v10156_v29  ;;  %v5148_v12 = vadd.f32 %v7324_v15, %v10161_v19  ;;  %v10419_v29 = vmax.f32 %v5356_v28, %v5363_v34  ;;  %v10437_v28 = vmax.f32 %v5147_v45, 0.0  ;;  %11247 = vst [vmem:[#allocation15_spill] sm:$0xff] %v10447_v5 }
 0x317   :  { %v5151_v55 = vadd.f32 %v7325_v41, %v10161_v19  ;;  %v10439_v4 = vmax.f32 %v5150_v25, 0.0  ;;  %v5360_v41 = vmax.f32 %v5352_v39, %v5359_v23  ;;  %v5300_v45 = vsel %vm5244_vm8, %v10423_v21, 0.0 }
 0x318   :  { %v5149_v30 = vadd.f32 %v7326_v8, %v10161_v19  ;;  %v10431_v62 = vmax.f32 %v5148_v12, 0.0  ;;  %v5299_v8 = vadd.f32 %v5298_v27, %v5297_v57  ;;  %v5361_v39 = vsel %vm5244_vm8, %v10359_v22, -inf }
 0x319   :  { %v10417_v13 = vpop.f32.mrb[44].mxu1  ;;  %11246 = vst [vmem:[#allocation14_spill] sm:$0xff] %v10439_v4  ;;  %v5373_v23 = vsel %vm5244_vm8, %v10437_v28, -inf }
 0x31a   :  { %v7248_v7 = vpop.f32.mrb[36].mxu0  ;;  %v10426_v49 = vpop.f32.mrb[45].mxu1  ;;  %11244 = vst [vmem:[#allocation12_spill] sm:$0xff] %v10431_v62  ;;  %v10433_v26 = vmax.f32 %v5149_v30, 0.0  ;;  %v5384_v25 = vsel %vm5244_vm8, %v10431_v62, 0.0  ;;  %v10459_v30 = vmax.f32 %v5146_v10, 0.0 }
 0x31b   :  { %v4934_v37 = vpop.f32.mrb[37].mxu0  ;;  %v10435_v56 = vpop.f32.mrb[46].mxu1  ;;  %v7327_v20 = vadd.f32 %v7248_v7, %v10330_v63  ;;  %v10453_v63 = vmax.f32 %v5151_v55, 0.0  ;;  %v5387_v7 = vsel %vm5244_vm8, %v10439_v4, 0.0 }
 0x31c   :  { %11245 = vst [vmem:[#allocation13_spill] sm:$0xff] %v10433_v26  ;;  %v7328_v34 = vadd.f32 %v4934_v37, %v10335_v52  ;;  %v7249_v3 = vpop.f32.mrb[38].mxu0  ;;  %v10443_v15 = vpop.f32.mrb[47].mxu1  ;;  %v5385_v52 = vsel %vm5244_vm8, %v10433_v26, 0.0  ;;  %v5301_v37 = vadd.f32 %v5300_v45, %v5299_v8 }
 0x31d   :  { %v4937_v12 = vpop.f32.mrb[39].mxu0  ;;  %11248 = vst [vmem:[#allocation16_spill] sm:$0xff] %v10453_v63  ;;  %v5386_v57 = vadd.f32 %v5385_v52, %v5384_v25  ;;  %v7329_v55 = vadd.f32 %v7249_v3, %v10341_v11  ;;  %v5154_v16 = vadd.f32 %v7327_v20, %v10161_v19  ;;  %v5366_v25 = vmax.f32 %v5358_v32, %v5365_v61 }
 0x31e   :  { %v5152_v18 = vadd.f32 %v7328_v34, %v10161_v19  ;;  %v7330_v27 = vadd.f32 %v4937_v12, %v10351_v51  ;;  %v5302_v34 = vsel %vm5244_vm8, %v10447_v5, 0.0  ;;  %v5389_v52 = vsel %vm5244_vm8, %v10453_v63, 0.0 }
 0x31f   :  { %v5388_v38 = vadd.f32 %v5387_v7, %v5386_v57  ;;  %v5362_v51 = vmax.f32 %v5354_v40, %v5361_v39  ;;  %v5369_v20 = vsel %vm5244_vm8, %v10447_v5, -inf  ;;  %v5155_v12 = vadd.f32 %v7329_v55, %v10161_v19 }
 0x320   :  { %v10469_v24 = vmax.f32 %v5152_v18, 0.0  ;;  %v5153_v42 = vadd.f32 %v7330_v27, %v10161_v19  ;;  %v5371_v61 = vsel %vm5244_vm8, %v10459_v30, -inf  ;;  %v5367_v57 = vsel %vm5244_vm8, %v10423_v21, -inf }
 0x321   :  { %v10471_v10 = vpop.f32.mrb[48].mxu1  ;;  %v5390_v8 = vadd.f32 %v5389_v52, %v5388_v38  ;;  %v5374_v18 = vmax.f32 %v5366_v25, %v5373_v23  ;;  %v5303_v27 = vadd.f32 %v5302_v34, %v5301_v37  ;;  %v10493_v38 = vmax.f32 %v5154_v16, 0.0 }
 0x322   :  { %11249 = vst [vmem:[#allocation17_spill] sm:$0xff] %v10469_v24  ;;  %v7252_v11 = vpop.f32.mrb[40].mxu0  ;;  %v10478_v3 = vpop.f32.mrb[49].mxu1  ;;  %v5391_v7 = vsel %vm5244_vm8, %v10469_v24, 0.0  ;;  %v10495_v52 = vmax.f32 %v5153_v42, 0.0  ;;  %v5370_v22 = vmax.f32 %v5362_v51, %v5369_v20  ;;  %v10500_v25 = vmax.f32 %v5155_v12, 0.0 }
 0x323   :  { %v4950_v45 = vpop.f32.mrb[41].mxu0  ;;  %v10483_v32 = vpop.f32.mrb[50].mxu1  ;;  %11250 = vst [vmem:[#allocation18_spill] sm:$0xff] %v10493_v38  ;;  %v5392_v55 = vadd.f32 %v5391_v7, %v5390_v8  ;;  %v7331_v1 = vadd.f32 %v7252_v11, %v10366_v35  ;;  %v5304_v16 = vsel %vm5244_vm8, %v10459_v30, 0.0  ;;  %v5372_v37 = vmax.f32 %v10419_v29, %v5371_v61 }
 0x324   :  { %v7253_v40 = vpop.f32.mrb[42].mxu0  ;;  %v10491_v39 = vpop.f32.mrb[51].mxu1  ;;  %v7332_v44 = vadd.f32 %v4950_v45, %v10376_v43  ;;  %11251 = vst [vmem:[#allocation19_spill] sm:$0xff] %v10500_v25  ;;  %v5393_v21 = vsel %vm5244_vm8, %v10495_v52, 0.0  ;;  %v5368_v42 = vmax.f32 %v5360_v41, %v5367_v57  ;;  %v5305_v8 = vadd.f32 %v5304_v16, %v5303_v27 }
 0x325   :  { %v4953_v5 = vpop.f32.mrb[43].mxu0  ;;  %v7333_v23 = vadd.f32 %v7253_v40, %v10386_v50  ;;  %v5394_v34 = vadd.f32 %v5393_v21, %v5392_v55  ;;  %v5395_v35 = vsel %vm5244_vm8, %v10493_v38, 0.0  ;;  %v5376_v51 = vmax.f32 %v5372_v37, %v5374_v18 }
 0x326   :  { %v5156_v43 = vadd.f32 %v7332_v44, %v10161_v19  ;;  %v7334_v50 = vadd.f32 %v4953_v5, %v10390_v53  ;;  %v5375_v20 = vmax.f32 %v5368_v42, %v5370_v22  ;;  %v5158_v45 = vadd.f32 %v7331_v1, %v10161_v19 }
 0x327   :  { %v5396_v12 = vadd.f32 %v5395_v35, %v5394_v34  ;;  %v5397_v29 = vsel %vm5244_vm8, %v10500_v25, 0.0  ;;  %v5306_v22 = vsel %vm5244_vm8, %v10437_v28, 0.0  ;;  %v5159_v1 = vadd.f32 %v7333_v23, %v10161_v19 }
 0x328   :  { %v10518_v21 = vmax.f32 %v5156_v43, 0.0  ;;  %v5157_v41 = vadd.f32 %v7334_v50, %v10161_v19  ;;  %v10530_v55 = vadd.f32 %v5306_v22, %v5305_v8  ;;  %v5456_v37 = vsel %vm5244_vm8, %v10439_v4, -inf }
 0x329   :  { %v10511_v11 = vpop.f32.mrb[52].mxu1  ;;  %v5398_v61 = vadd.f32 %v5397_v29, %v5396_v12  ;;  %v10536_v42 = vmax.f32 %v5158_v45, 0.0  ;;  %v10540_v23 = vmax.f32 %v5375_v20, %v5376_v51  ;;  %v5462_v50 = vsel %vm5244_vm8, %v10493_v38, -inf }
 0x32a   :  { %v7256_v7 = vpop.f32.mrb[44].mxu0  ;;  %v10514_v40 = vpop.f32.mrb[53].mxu1  ;;  %v5399_v16 = vsel %vm5244_vm8, %v10518_v21, 0.0  ;;  %v10538_v35 = vmax.f32 %v5157_v41, 0.0  ;;  %v10548_v12 = vmax.f32 %v5159_v1, 0.0  ;;  %v5457_v20 = vsel %vm5244_vm8, %v10453_v63, -inf }
 0x32b   :  { %v7335_v44 = vadd.f32 %v7256_v7, %v10417_v13  ;;  %v4966_v53 = vpop.f32.mrb[45].mxu0  ;;  %v10522_v5 = vpop.f32.mrb[54].mxu1  ;;  %11252 = vst [vmem:[#allocation22_spill] sm:$0xff] %v10536_v42  ;;  %v5400_v34 = vadd.f32 %v5399_v16, %v5398_v61  ;;  %v5403_v22 = vsel %vm5244_vm8, %v10536_v42, 0.0  ;;  %v5463_v16 = vmax.f32 %v5456_v37, %v5462_v50 }
 0x32c   :  { %v7336_v57 = vadd.f32 %v4966_v53, %v10426_v49  ;;  %v7257_v18 = vpop.f32.mrb[46].mxu0  ;;  %v10528_v27 = vpop.f32.mrb[55].mxu1  ;;  %11253 = vst [vmem:[#allocation26_spill] sm:$0xff] %v10538_v35  ;;  %v5454_v49 = vsel %vm5244_vm8, %v10431_v62, -inf  ;;  %11254 = vst [vmem:[#allocation6_spill] sm:$0xff] %v10548_v12  ;;  %v5401_v45 = vsel %vm5244_vm8, %v10538_v35, 0.0 }
 0x32d   :  { %v4969_v13 = vpop.f32.mrb[47].mxu0  ;;  %v7337_v43 = vadd.f32 %v7257_v18, %v10435_v56  ;;  %v5402_v29 = vadd.f32 %v5401_v45, %v5400_v34  ;;  %v5458_v56 = vsel %vm5244_vm8, %v10469_v24, -inf  ;;  %v5162_v61 = vadd.f32 %v7335_v44, %v10161_v19 }
 0x32e   :  { %v5160_v8 = vadd.f32 %v7336_v57, %v10161_v19  ;;  %v7338_v7 = vadd.f32 %v4969_v13, %v10443_v15  ;;  %v5455_v18 = vsel %vm5244_vm8, %v10433_v26, -inf  ;;  %v5464_v13 = vsel %vm5244_vm8, %v10500_v25, -inf }
 0x32f   :  { %v5404_v34 = vadd.f32 %v5403_v22, %v5402_v29  ;;  %v5405_v51 = vsel %vm5244_vm8, %v10548_v12, 0.0  ;;  %v5459_v37 = vmax.f32 %v5454_v49, %v5458_v56  ;;  %v5460_v4 = vsel %vm5244_vm8, %v10495_v52, -inf }
 0x330   :  { %v10556_v41 = vmax.f32 %v5160_v8, 0.0  ;;  %v5161_v15 = vadd.f32 %v7338_v7, %v10161_v19  ;;  %v5163_v7 = vadd.f32 %v7337_v43, %v10161_v19  ;;  %v5470_v26 = vsel %vm5244_vm8, %v10536_v42, -inf }
 0x331   :  { %v10558_v53 = vpop.f32.mrb[56].mxu1  ;;  %v5406_v50 = vadd.f32 %v5405_v51, %v5404_v34  ;;  %v10589_v62 = vmax.f32 %v5162_v61, 0.0  ;;  %v5466_v49 = vsel %vm5244_vm8, %v10518_v21, -inf  ;;  %v5461_v34 = vmax.f32 %v5455_v18, %v5460_v4 }
 0x332   :  { %11255 = vst [vmem:[#allocation28_spill] sm:$0xff] %v10556_v41  ;;  %v7260_v1 = vpop.f32.mrb[48].mxu0  ;;  %v10566_v57 = vpop.f32.mrb[57].mxu1  ;;  %v5407_v44 = vsel %vm5244_vm8, %v10556_v41, 0.0  ;;  %v10579_v38 = vmax.f32 %v5161_v15, 0.0  ;;  %v5465_v15 = vmax.f32 %v5457_v20, %v5464_v13  ;;  %v10597_v51 = vmax.f32 %v5163_v7, 0.0 }
 0x333   :  { %v4982_v8 = vpop.f32.mrb[49].mxu0  ;;  %v10572_v45 = vpop.f32.mrb[58].mxu1  ;;  %v7339_v29 = vadd.f32 %v7260_v1, %v10471_v10  ;;  %11257 = vst [vmem:[#allocation31_spill] sm:$0xff] %v10589_v62  ;;  %v5472_v10 = vsel %vm5244_vm8, %v10548_v12, -inf  ;;  %v5468_v20 = vsel %vm5244_vm8, %v10538_v35, -inf }
 0x334   :  { %11256 = vst [vmem:[#allocation5_spill] sm:$0xff] %v10579_v38  ;;  %v7261_v24 = vpop.f32.mrb[50].mxu0  ;;  %v10581_v63 = vpop.f32.mrb[59].mxu1  ;;  %v7340_v22 = vadd.f32 %v4982_v8, %v10478_v3  ;;  %v5409_v43 = vsel %vm5244_vm8, %v10579_v38, 0.0  ;;  %v5408_v3 = vadd.f32 %v5407_v44, %v5406_v50  ;;  %11258 = vst [vmem:[#allocation33_spill] sm:$0xff] %v10597_v51  ;;  %v10602_v8 = vmax.f32 %v5463_v16, %v5470_v26 }
 0x335   :  { %v4985_v25 = vpop.f32.mrb[51].mxu0  ;;  %v7341_v1 = vadd.f32 %v7261_v24, %v10483_v32  ;;  %v5411_v44 = vsel %vm5244_vm8, %v10589_v62, 0.0  ;;  %v5166_v7 = vadd.f32 %v7339_v29, %v10161_v19  ;;  %v5467_v26 = vmax.f32 %v5459_v37, %v5466_v49 }
 0x336   :  { %v5164_v56 = vadd.f32 %v7340_v22, %v10161_v19  ;;  %v7342_v61 = vadd.f32 %v4985_v25, %v10491_v39  ;;  %v5410_v13 = vadd.f32 %v5409_v43, %v5408_v3  ;;  %v5473_v4 = vmax.f32 %v5465_v15, %v5472_v10 }
 0x337   :  { %v5478_v43 = vsel %vm5244_vm8, %v10589_v62, -inf  ;;  %v5413_v29 = vsel %vm5244_vm8, %v10597_v51, 0.0  ;;  %v5469_v15 = vmax.f32 %v5461_v34, %v5468_v20  ;;  %v5476_v34 = vsel %vm5244_vm8, %v10579_v38, -inf }
 0x338   :  { %v10611_v50 = vmax.f32 %v5164_v56, 0.0  ;;  %v5165_v24 = vadd.f32 %v7342_v61, %v10161_v19  ;;  %v5412_v25 = vadd.f32 %v5411_v44, %v5410_v13  ;;  %v5167_v56 = vadd.f32 %v7341_v1, %v10161_v19 }
 0x339   :  { %v10606_v42 = vpop.f32.mrb[60].mxu1  ;;  %v5480_v44 = vsel %vm5244_vm8, %v10597_v51, -inf  ;;  %v5479_v12 = vmax.f32 %v10602_v8, %v5478_v43 }
 0x33a   :  { %v7264_v32 = vpop.f32.mrb[52].mxu0  ;;  %v10614_v39 = vpop.f32.mrb[61].mxu1  ;;  %v5415_v3 = vsel %vm5244_vm8, %v10611_v50, 0.0  ;;  %v5414_v49 = vadd.f32 %v5413_v29, %v5412_v25  ;;  %v10630_v10 = vmax.f32 %v5165_v24, 0.0  ;;  %v10643_v29 = vmax.f32 %v5167_v56, 0.0 }
 0x33b   :  { %v7343_v18 = vadd.f32 %v7264_v32, %v10511_v11  ;;  %v4998_v16 = vpop.f32.mrb[53].mxu0  ;;  %v10617_v22 = vpop.f32.mrb[62].mxu1  ;;  %v5474_v11 = vsel %vm5244_vm8, %v10556_v41, -inf  ;;  %v10634_v32 = vmax.f32 %v5166_v7, 0.0  ;;  %v5481_v41 = vmax.f32 %v5473_v4, %v5480_v44 }
 0x33c   :  { %v7265_v61 = vpop.f32.mrb[54].mxu0  ;;  %v10626_v37 = vpop.f32.mrb[63].mxu1  ;;  %v7344_v62 = vadd.f32 %v4998_v16, %v10514_v40  ;;  %v5416_v20 = vadd.f32 %v5415_v3, %v5414_v49  ;;  %v5417_v24 = vsel %vm5244_vm8, %v10630_v10, 0.0  ;;  %v5475_v25 = vmax.f32 %v5467_v26, %v5474_v11 }
 0x33d   :  { %v5001_v13 = vpop.f32.mrb[55].mxu0  ;;  %v7345_v1 = vadd.f32 %v7265_v61, %v10522_v5  ;;  %v5170_v51 = vadd.f32 %v7343_v18, %v10161_v19  ;;  %v5477_v16 = vmax.f32 %v5469_v15, %v5476_v34  ;;  %v5419_v43 = vsel %vm5244_vm8, %v10634_v32, 0.0 }
 0x33e   :  { %v5168_v7 = vadd.f32 %v7344_v62, %v10161_v19  ;;  %v5418_v40 = vadd.f32 %v5417_v24, %v5416_v20  ;;  %v7346_v8 = vadd.f32 %v5001_v13, %v10528_v27  ;;  %v5486_v3 = vsel %vm5244_vm8, %v10634_v32, -inf }
 0x33f   :  { %v5171_v5 = vadd.f32 %v7345_v1, %v10161_v19  ;;  %v5482_v18 = vsel %vm5244_vm8, %v10611_v50, -inf  ;;  %v5421_v27 = vsel %vm5244_vm8, %v10643_v29, 0.0  ;;  %v5488_v15 = vsel %vm5244_vm8, %v10643_v29, -inf }
 0x340   :  { %v10653_v26 = vmax.f32 %v5168_v7, 0.0  ;;  %v5420_v62 = vadd.f32 %v5419_v43, %v5418_v40  ;;  %v5169_v4 = vadd.f32 %v7346_v8, %v10161_v19  ;;  %v10663_v49 = vmax.f32 %v5170_v51, 0.0 }
 0x341   :  { %v5484_v1 = vsel %vm5244_vm8, %v10630_v10, -inf  ;;  %v10669_v20 = vmax.f32 %v5171_v5, 0.0  ;;  %v5487_v43 = vmax.f32 %v5479_v12, %v5486_v3 }
 0x342   :  { %v7268_v56 = vpop.f32.mrb[56].mxu0  ;;  %v5423_v13 = vsel %vm5244_vm8, %v10653_v26, 0.0  ;;  %v5422_v34 = vadd.f32 %v5421_v27, %v5420_v62  ;;  %v5489_v62 = vmax.f32 %v5481_v41, %v5488_v15  ;;  %v5494_v5 = vsel %vm5244_vm8, %v10663_v49, -inf }
 0x343   :  { %v7347_v61 = vadd.f32 %v7268_v56, %v10558_v53  ;;  %v5014_v11 = vpop.f32.mrb[57].mxu0  ;;  %v10671_v53 = vmax.f32 %v5169_v4, 0.0  ;;  %v5483_v56 = vmax.f32 %v5475_v25, %v5482_v18  ;;  %v5485_v27 = vmax.f32 %v5477_v16, %v5484_v1 }
 0x344   :  { %v7269_v44 = vpop.f32.mrb[58].mxu0  ;;  %v7348_v40 = vadd.f32 %v5014_v11, %v10566_v57  ;;  %v5424_v38 = vadd.f32 %v5423_v13, %v5422_v34  ;;  %v5427_v12 = vsel %vm5244_vm8, %v10663_v49, 0.0  ;;  %v5496_v41 = vsel %vm5244_vm8, %v10669_v20, -inf }
 0x345   :  { %v5017_v24 = vpop.f32.mrb[59].mxu0  ;;  %v5174_v7 = vadd.f32 %v7347_v61, %v10161_v19  ;;  %v7349_v51 = vadd.f32 %v7269_v44, %v10572_v45  ;;  %v5425_v35 = vsel %vm5244_vm8, %v10671_v53, 0.0  ;;  %v5490_v45 = vsel %vm5244_vm8, %v10653_v26, -inf }
 0x346   :  { %v7350_v8 = vadd.f32 %v5017_v24, %v10581_v63  ;;  %v5172_v4 = vadd.f32 %v7348_v40, %v10161_v19  ;;  %v5426_v57 = vadd.f32 %v5425_v35, %v5424_v38  ;;  %v5495_v18 = vmax.f32 %v5487_v43, %v5494_v5 }
 0x347   :  { %v5175_v61 = vadd.f32 %v7349_v51, %v10161_v19  ;;  %v10683_v11 = vmax.f32 %v5174_v7, 0.0  ;;  %v5429_v13 = vsel %vm5244_vm8, %v10669_v20, 0.0  ;;  %v5492_v44 = vsel %vm5244_vm8, %v10671_v53, -inf }
 0x348   :  { %v5173_v63 = vadd.f32 %v7350_v8, %v10161_v19  ;;  %v10692_v25 = vmax.f32 %v5172_v4, 0.0  ;;  %v5428_v15 = vadd.f32 %v5427_v12, %v5426_v57  ;;  %v5491_v7 = vmax.f32 %v5483_v56, %v5490_v45 }
 0x349   :  { %v10703_v34 = vmax.f32 %v5175_v61, 0.0  ;;  %v5497_v40 = vmax.f32 %v5489_v62, %v5496_v41  ;;  %v5502_v51 = vsel %vm5244_vm8, %v10683_v11, -inf  ;;  %v5435_v61 = vsel %vm5244_vm8, %v10683_v11, 0.0 }
 0x34a   :  { %v7272_v3 = vpop.f32.mrb[60].mxu0  ;;  %v10694_v16 = vmax.f32 %v5173_v63, 0.0  ;;  %v5431_v1 = vsel %vm5244_vm8, %v10692_v25, 0.0  ;;  %v5430_v8 = vadd.f32 %v5429_v13, %v5428_v15  ;;  %v5493_v63 = vmax.f32 %v5485_v27, %v5492_v44 }
 0x34b   :  { %v7351_v38 = vadd.f32 %v7272_v3, %v10606_v42  ;;  %v5030_v35 = vpop.f32.mrb[61].mxu0  ;;  %v5504_v12 = vsel %vm5244_vm8, %v10703_v34, -inf  ;;  %v5503_v15 = vmax.f32 %v5495_v18, %v5502_v51  ;;  %v5437_v44 = vsel %vm5244_vm8, %v10703_v34, 0.0 }
 0x34c   :  { %v7273_v24 = vpop.f32.mrb[62].mxu0  ;;  %v5433_v43 = vsel %vm5244_vm8, %v10694_v16, 0.0  ;;  %v7352_v4 = vadd.f32 %v5030_v35, %v10614_v39  ;;  %v5432_v56 = vadd.f32 %v5431_v1, %v5430_v8  ;;  %v5498_v39 = vsel %vm5244_vm8, %v10692_v25, -inf }
 0x34d   :  { %v5033_v42 = vpop.f32.mrb[63].mxu0  ;;  %v5178_v5 = vadd.f32 %v7351_v38, %v10161_v19  ;;  %v7353_v57 = vadd.f32 %v7273_v24, %v10617_v22  ;;  %v5500_v38 = vsel %vm5244_vm8, %v10694_v16, -inf  ;;  %v5505_v18 = vmax.f32 %v5497_v40, %v5504_v12 }
 0x34e   :  { %v7354_v62 = vadd.f32 %v5033_v42, %v10626_v37  ;;  %v5176_v41 = vadd.f32 %v7352_v4, %v10161_v19  ;;  %v5434_v22 = vadd.f32 %v5433_v43, %v5432_v56  ;;  %v5499_v51 = vmax.f32 %v5491_v7, %v5498_v39 }
 0x34f   :  { %v10717_v45 = vmax.f32 %v5178_v5, 0.0  ;;  %v5179_v3 = vadd.f32 %v7353_v57, %v10161_v19  ;;  %v5501_v43 = vmax.f32 %v5493_v63, %v5500_v38  ;;  %v11259_v40 = vrot.slane %v10530_v55, 4 }
 0x350   :  { %v5177_v27 = vadd.f32 %v7354_v62, %v10161_v19  ;;  %v10728_v35 = vmax.f32 %v5176_v41, 0.0  ;;  %v5436_v1 = vadd.f32 %v5435_v61, %v5434_v22  ;;  %v5378_v39 = vrot.slane %v10540_v23, 4 }
 0x351   :  { %v5510_v37 = vsel %vm5244_vm8, %v10717_v45, -inf  ;;  %v10730_v13 = vmax.f32 %v5179_v3, 0.0  ;;  %v5309_v61 = vadd.f32 %v11259_v40, %v10530_v55  ;;  %v5443_v22 = vsel %vm5244_vm8, %v10717_v45, 0.0 }
 0x352   :  { %v10734_v24 = vmax.f32 %v5177_v27, 0.0  ;;  %v5439_v19 = vsel %vm5244_vm8, %v10728_v35, 0.0  ;;  %v5506_v8 = vsel %vm5244_vm8, %v10728_v35, -inf  ;;  %v5511_v5 = vmax.f32 %v5503_v15, %v5510_v37 }
 0x353   :  { %v5512_v42 = vsel %vm5244_vm8, %v10730_v13, -inf  ;;  %v5438_v4 = vadd.f32 %v5437_v44, %v5436_v1  ;;  %v5507_v12 = vmax.f32 %v5499_v51, %v5506_v8  ;;  %v5310_v27 = vrot.slane %v5309_v61, 2 }
 0x354   :  { %v5513_v57 = vmax.f32 %v5505_v18, %v5512_v42  ;;  %v5441_v7 = vsel %vm5244_vm8, %v10734_v24, 0.0  ;;  %v5508_v56 = vsel %vm5244_vm8, %v10734_v24, -inf  ;;  %v5379_v37 = vmax.f32 %v10540_v23, %v5378_v39 }
 0x355   :  { %v5440_v62 = vadd.f32 %v5439_v19, %v5438_v4  ;;  %v5509_v3 = vmax.f32 %v5501_v43, %v5508_v56  ;;  %v5445_v44 = vsel %vm5244_vm8, %v10730_v13, 0.0  ;;  %v5311_v51 = vadd.f32 %v5310_v27, %v5309_v61 }
 0x356   :  { %v5515_v41 = vmax.f32 %v5511_v5, %v5513_v57  ;;  %v5380_v42 = vrot.slane %v5379_v37, 2 }
 0x357   :  { %v5442_v63 = vadd.f32 %v5441_v7, %v5440_v62  ;;  %v5514_v15 = vmax.f32 %v5507_v12, %v5509_v3  ;;  %v5312_v4 = vrot.slane %v5311_v51, 1 }
 0x358   :  { %v5381_v40 = vmax.f32 %v5379_v37, %v5380_v42  ;;  %v5611_v37 = vld [vmem:[%s10919_s5] sm:$0x3] }
 0x359   :  { %v5444_v38 = vadd.f32 %v5443_v22, %v5442_v63  ;;  %v5516_v55 = vmax.f32 %v5514_v15, %v5515_v41  ;;  %v5313_v12 = vadd.f32 %v5312_v4, %v5311_v51 }
 0x35a   :  { %v5382_v41 = vrot.slane %v5381_v40, 1 }
 0x35b   :  { %v5446_v18 = vadd.f32 %v5445_v44, %v5444_v38  ;;  %v5517_v1 = vrot.slane %v5516_v55, 4  ;;  %v5314_v39 = vmul.f32 0.00390625, %v5313_v12  ;;  %v6372_v44 = vld [vmem:[%s10918_s4] ss:$0 sm:$0xff]  ;;  %s7939_s4 = smov [#allocation2]  }
 0x35c   :  { %v5383_v15 = vmax.f32 %v5381_v40, %v5382_v41  ;;  %s5920_s5 = sshll.u32 %s7939_s4, 4  ;;  %s5921_s5 = int_to_ptr.vmem [resolvable:$true] %s5920_s5 }
 0x35d   :  { %v5447_v19 = vrot.slane %v5446_v18, 4  ;;  %v5518_v8 = vmax.f32 %v5516_v55, %v5517_v1  ;;  %v11260_v55 = vmov 0.0   ;;  %p7917_p1 = scmp.lt.s32.totalorder %s5921_s5, %s5921_s5 }
 0x35f   :  { %v5448_v43 = vadd.f32 %v5447_v19, %v5446_v18  ;;  %v5519_v5 = vrot.slane %v5518_v8, 2 }
 0x361   :  { %v5449_v57 = vrot.slane %v5448_v43, 2  ;;  %v5520_v56 = vmax.f32 %v5518_v8, %v5519_v5  ;;  %v6374_v8 = vld [vmem:[%s10920_s6] ss:$0 sm:$0xff]  ;;  %s7912_s6 = scalar_lea.vmem %s5921_s5, 1024 }
 0x362   :  { %p7913_p0 = scmp.ne.s32.totalorder %s5921_s5, %s7912_s6  ;;  %p7918_p2 = scmp.lt.s32.totalorder %s7912_s6, %s7912_s6 }
 0x363   :  { %v5450_v7 = vadd.f32 %v5449_v57, %v5448_v43  ;;  %v5521_v3 = vrot.slane %v5520_v56, 1 }
 0x364   :  { %p7919_p3 = por %p7918_p2, %p7917_p1 }
 0x365   :  { %v5451_v62 = vrot.slane %v5450_v7, 1  ;;  %v5522_v61 = vmax.f32 %v5520_v56, %v5521_v3 }
 0x366   :  { %p7920_p4 = pnand %p7919_p3, %p7913_p0 }
 0x367   :  { %v5452_v23 = vadd.f32 %v5451_v62, %v5450_v7  ;;  %v5706_v62 = vlaneseq }
 0x369   :  { %v5453_v63 = vmul.f32 0.00390625, %v5452_v23  ;;  %v5707_v12 = vshrl.u32 %v5706_v62, 7 }
 0x36b   :  { %v5524_v22 = vsel %vm5523_vm10, %v5314_v39, %v5453_v63  ;;  %v5708_v41 = vsub.s32 0, %v5707_v12  ;;  %v5812_v23 = vsub.s32 1, %v5707_v12  ;;  %v11272_v12 = vld [vmem:[#allocation35_spill] sm:$0xff] }
 0x36c   :  { %v5525_v27 = vsel %vm1103_vm0, %v5524_v22, %v5383_v15 }
 0x36d   :  { %v5527_v38 = vsel %vm1976_vm5, %v5525_v27, %v5522_v61 }
 0x36e   :  { %7279 = vmatmul.mubr.msk.f32.vlgmr.msra.gmra.mrb[64].mxu1 %vm5244_vm8, %v5527_v38 }
 0x36f   :  { %7283 = vmatprep.mubr.msk.f32.mxu1 %vm7937_vm9, %v11260_v55  ;;  %7282 = vmatpush3.msk.msra.mxu1 %vm1103_vm0, %v5611_v37  ;;  %v11262_v37 = vld [vmem:[#allocation64_spill] sm:$0xff] }
 0x441   :  { %v5606_v18 = vpop.f32.mrb[64].mxu1 }
 0x442   :  { %v5607_v1 = vadd.f32 %v6372_v44, %v5606_v18  ;;  %v7280_v51 = vpop.f32.mrb[65].mxu1  ;;  %v11264_v18 = vld [vmem:[#allocation63_spill] sm:$0xff] }
 0x443   :  { %v11266_v51 = vld [vmem:[#allocation29_spill] sm:$0xff] }
 0x444   :  { %v5610_v19 = vmax.f32 %v5607_v1, 0.0 }
 0x446   :  { %7284 = vmatmul.mubr.msk.f32.vlgmr.msra.gmra.mrb[66].mxu1 %vm5619_vm11, %v5610_v19 }
 0x519   :  { %v5692_v42 = vpop.f32.mrb[66].mxu1 }
 0x51a   :  { %v5693_v43 = vadd.f32 %v6374_v8, %v5692_v42  ;;  %v7285_v5 = vpop.f32.mrb[67].mxu1  ;;  %v11267_v8 = vld [vmem:[#allocation10_spill] sm:$0xff] }
 0x51c   :  { %v5697_v4 = vrot.slane %v5693_v43, 2 }
 0x51e   :  { %v5699_v57 = vadd.f32 %v5697_v4, %v5693_v43  ;;  %v11268_v43 = vld [vmem:[#allocation30_spill] sm:$0xff]  ;;  %v11269_v4 = vld [vmem:[#allocation11_spill] sm:$0xff] }
 0x520   :  { %v6377_v40 = vmul.f32 -1.442695, %v5699_v57 }
 0x522   :  { %7855 = vpow2.f32 %v6377_v40  ;;  %v11270_v40 = vld [vmem:[#allocation32_spill] sm:$0xff] }
 0x52c   :  { %v7856_v7 = vpop.eup %7855 }
 0x52d   :  { %v5703_v56 = vadd.f32 1.0, %v7856_v7 }
 0x52f   :  { %7857 = vrcp.f32 %v5703_v56  ;;  %v11271_v56 = vld [vmem:[#allocation15_spill] sm:$0xff] }
 0x539   :  { %v7858_v3 = vpop.eup %7857 }
 0x53a   :  { %v10770_v39 = vrot.slane %v7858_v3, %v5708_v41  ;;  %v10772_v63 = vrot.slane %v7858_v3, %v5812_v23  ;;  %v11273_v3 = vld [vmem:[#allocation37_spill] sm:$0xff] }
 0x53c   :  { %v5726_v15 = vmul.f32 %v10770_v39, %v10262_v58  ;;  %v5710_v61 = vmul.f32 %v10770_v39, %v10165_v60  ;;  %v5727_v22 = vmul.f32 %v10770_v39, %v10265_v17  ;;  %v5711_v27 = vmul.f32 %v10770_v39, %v10171_v36 }
 0x53d   :  { %v5728_v38 = vmul.f32 %v10770_v39, %v10267_v14  ;;  %v5712_v55 = vmul.f32 %v10770_v39, %v10169_v33  ;;  %v5729_v60 = vmul.f32 %v10770_v39, %v10272_v47  ;;  %v5713_v58 = vmul.f32 %v10770_v39, %v10175_v31 }
 0x53e   :  { %5774 = vxpose.xlu1.b32.start [1/16] (narrow) %v5726_v15, 16  ;;  %5742 = vxpose.xlu0.b32.start [1/16] (narrow) %v5710_v61, 16  ;;  %v5730_v36 = vmul.f32 %v10770_v39, %v10298_v54  ;;  %v5714_v17 = vmul.f32 %v10770_v39, %v10186_v59  ;;  %v5731_v33 = vmul.f32 %v10770_v39, %v10301_v48  ;;  %v11261_v48 = vld [vmem:[#allocation7_spill] sm:$0xff] }
 0x53f   :  { %v5715_v14 = vmul.f32 %v10770_v39, %v10194_v2  ;;  %v5732_v31 = vmul.f32 %v10770_v39, %v10307_v0  ;;  %v5716_v47 = vmul.f32 %v10770_v39, %v10190_v46  ;;  %v5733_v59 = vmul.f32 %v10770_v39, %v10325_v9  ;;  %v11263_v0 = vld [vmem:[#allocation8_spill] sm:$0xff]  ;;  %v11265_v9 = vld [vmem:[#allocation9_spill] sm:$0xff] }
 0x540   :  { %v5717_v54 = vmul.f32 %v10770_v39, %v10196_v6  ;;  %v5734_v2 = vmul.f32 %v10770_v39, %v11261_v48  ;;  %v5718_v44 = vmul.f32 %v10770_v39, %v11262_v37  ;;  %v5735_v46 = vmul.f32 %v10770_v39, %v11263_v0 }
 0x541   :  { %v5719_v1 = vmul.f32 %v10770_v39, %v11264_v18  ;;  %v5736_v6 = vmul.f32 %v10770_v39, %v11265_v9  ;;  %v5720_v19 = vmul.f32 %v10770_v39, %v11266_v51  ;;  %v5737_v42 = vmul.f32 %v10770_v39, %v11267_v8  ;;  %v11285_v9 = vld [vmem:[#allocation28_spill] sm:$0xff]  ;;  %v11286_v51 = vld [vmem:[#allocation5_spill] sm:$0xff]  ;;  %v11287_v8 = vld [vmem:[#allocation31_spill] sm:$0xff] }
 0x542   :  { %5775 = vxpose.xlu1.b32.cont [2/16] (narrow) %v5727_v22, 16  ;;  %5743 = vxpose.xlu0.b32.cont [2/16] (narrow) %v5711_v27, 16  ;;  %v5721_v5 = vmul.f32 %v10770_v39, %v11268_v43  ;;  %v5738_v57 = vmul.f32 %v10770_v39, %v11269_v4  ;;  %v5722_v7 = vmul.f32 %v10770_v39, %v11270_v40  ;;  %v11274_v22 = vld [vmem:[#allocation62_spill] sm:$0xff]  ;;  %v11288_v43 = vld [vmem:[#allocation33_spill] sm:$0xff] }
 0x543   :  { %v5739_v62 = vmul.f32 %v10770_v39, %v11271_v56  ;;  %v5723_v41 = vmul.f32 %v10770_v39, %v11272_v12  ;;  %v5740_v23 = vmul.f32 %v10770_v39, %v10459_v30  ;;  %v5724_v15 = vmul.f32 %v10770_v39, %v11273_v3 }
 0x544   :  { %v5741_v61 = vmul.f32 %v10770_v39, %v10437_v28  ;;  %v5725_v27 = vmul.f32 %v10770_v39, %v11274_v22  ;;  %v5831_v30 = vmul.f32 %v10772_v63, %v10630_v10  ;;  %v5832_v28 = vmul.f32 %v10772_v63, %v10634_v32  ;;  %v11277_v39 = vld [vmem:[#allocation14_spill] sm:$0xff] }
 0x545   :  { %v5834_v10 = vmul.f32 %v10772_v63, %v10653_v26  ;;  %v5835_v32 = vmul.f32 %v10772_v63, %v10671_v53  ;;  %v5837_v26 = vmul.f32 %v10772_v63, %v10669_v20  ;;  %v5822_v53 = vmul.f32 %v10772_v63, %v10518_v21 }
 0x546   :  { %5776 = vxpose.xlu1.b32.cont [3/16] (narrow) %v5728_v38, 16  ;;  %5744 = vxpose.xlu0.b32.cont [3/16] (narrow) %v5712_v55, 16  ;;  %v5830_v38 = vmul.f32 %v10772_v63, %v10611_v50  ;;  %v11275_v55 = vld [vmem:[#allocation12_spill] sm:$0xff]  ;;  %v5833_v50 = vmul.f32 %v10772_v63, %v10643_v29  ;;  %v5836_v29 = vmul.f32 %v10772_v63, %v10663_v49 }
 0x547   :  { %v5839_v49 = vmul.f32 %v10772_v63, %v10694_v16  ;;  %v5840_v20 = vmul.f32 %v10772_v63, %v10683_v11  ;;  %v5841_v21 = vmul.f32 %v10772_v63, %v10703_v34  ;;  %v5842_v16 = vmul.f32 %v10772_v63, %v10728_v35 }
 0x548   :  { %v5843_v11 = vmul.f32 %v10772_v63, %v10734_v24  ;;  %v5844_v34 = vmul.f32 %v10772_v63, %v10717_v45  ;;  %v5845_v35 = vmul.f32 %v10772_v63, %v10730_v13 }
 0x54a   :  { %5777 = vxpose.xlu1.b32.cont [4/16] (narrow) %v5729_v60, 16  ;;  %5745 = vxpose.xlu0.b32.cont [4/16] (narrow) %v5713_v58, 16  ;;  %v5814_v60 = vmul.f32 %v10772_v63, %v11275_v55  ;;  %v11276_v58 = vld [vmem:[#allocation13_spill] sm:$0xff] }
 0x54e   :  { %5778 = vxpose.xlu1.b32.cont [5/16] (narrow) %v5730_v36, 16  ;;  %5746 = vxpose.xlu0.b32.cont [5/16] (narrow) %v5714_v17, 16  ;;  %v5815_v36 = vmul.f32 %v10772_v63, %v11276_v58  ;;  %v5816_v17 = vmul.f32 %v10772_v63, %v11277_v39 }
 0x552   :  { %5779 = vxpose.xlu1.b32.cont [6/16] (narrow) %v5731_v33, 16  ;;  %5747 = vxpose.xlu0.b32.cont [6/16] (narrow) %v5715_v14, 16  ;;  %v11278_v33 = vld [vmem:[#allocation16_spill] sm:$0xff] }
 0x553   :  { %v5817_v14 = vmul.f32 %v10772_v63, %v11278_v33 }
 0x556   :  { %5780 = vxpose.xlu1.b32.cont [7/16] (narrow) %v5732_v31, 16  ;;  %5748 = vxpose.xlu0.b32.cont [7/16] (narrow) %v5716_v47, 16  ;;  %v11279_v31 = vld [vmem:[#allocation17_spill] sm:$0xff] }
 0x557   :  { %v5818_v47 = vmul.f32 %v10772_v63, %v11279_v31 }
 0x55a   :  { %5781 = vxpose.xlu1.b32.cont [8/16] (narrow) %v5733_v59, 16  ;;  %5749 = vxpose.xlu0.b32.cont [8/16] (narrow) %v5717_v54, 16  ;;  %v5819_v59 = vmul.f32 %v10772_v63, %v10495_v52  ;;  %v11280_v54 = vld [vmem:[#allocation18_spill] sm:$0xff]  ;;  %v5838_v52 = vmul.f32 %v10772_v63, %v10692_v25 }
 0x55b   :  { %v5820_v48 = vmul.f32 %v10772_v63, %v11280_v54  ;;  %v11284_v25 = vld [vmem:[#allocation6_spill] sm:$0xff] }
 0x55e   :  { %5782 = vxpose.xlu1.b32.cont [9/16] (narrow) %v5734_v2, 16  ;;  %5750 = vxpose.xlu0.b32.cont [9/16] (narrow) %v5718_v44, 16  ;;  %v11281_v2 = vld [vmem:[#allocation19_spill] sm:$0xff]  ;;  %v11282_v44 = vld [vmem:[#allocation26_spill] sm:$0xff] }
 0x55f   :  { %v5821_v37 = vmul.f32 %v10772_v63, %v11281_v2  ;;  %v5823_v0 = vmul.f32 %v10772_v63, %v11282_v44 }
 0x562   :  { %5783 = vxpose.xlu1.b32.cont [10/16] (narrow) %v5735_v46, 16  ;;  %5751 = vxpose.xlu0.b32.cont [10/16] (narrow) %v5719_v1, 16  ;;  %v11283_v46 = vld [vmem:[#allocation22_spill] sm:$0xff]  ;;  %v5825_v1 = vmul.f32 %v10772_v63, %v11284_v25 }
 0x563   :  { %v5824_v18 = vmul.f32 %v10772_v63, %v11283_v46 }
 0x566   :  { %5784 = vxpose.xlu1.b32.cont [11/16] (narrow) %v5736_v6, 16  ;;  %5752 = vxpose.xlu0.b32.cont [11/16] (narrow) %v5720_v19, 16  ;;  %v5826_v6 = vmul.f32 %v10772_v63, %v11285_v9  ;;  %v5827_v19 = vmul.f32 %v10772_v63, %v11286_v51 }
 0x56a   :  { %5785 = vxpose.xlu1.b32.cont [12/16] (narrow) %v5737_v42, 16  ;;  %5753 = vxpose.xlu0.b32.cont [12/16] (narrow) %v5721_v5, 16  ;;  %v5828_v42 = vmul.f32 %v10772_v63, %v11287_v8  ;;  %v5829_v5 = vmul.f32 %v10772_v63, %v11288_v43 }
 0x56e   :  { %5786 = vxpose.xlu1.b32.cont [13/16] (narrow) %v5738_v57, 16  ;;  %5754 = vxpose.xlu0.b32.cont [13/16] (narrow) %v5722_v7, 16 }
 0x572   :  { %5787 = vxpose.xlu1.b32.cont [14/16] (narrow) %v5739_v62, 16  ;;  %5755 = vxpose.xlu0.b32.cont [14/16] (narrow) %v5723_v41, 16 }
 0x576   :  { %5788 = vxpose.xlu1.b32.cont [15/16] (narrow) %v5740_v23, 16  ;;  %5756 = vxpose.xlu0.b32.cont [15/16] (narrow) %v5724_v15, 16 }
 0x57a   :  { %5789 = vxpose.xlu1.b32.end [16/16] (narrow) %v5741_v61, 16  ;;  %5757 = vxpose.xlu0.b32.end [16/16] (narrow) %v5725_v27, 16 }
 0x57e   :  { %5878 = vxpose.xlu1.b32.start [1/16] (narrow) %v5830_v38, 16  ;;  %5846 = vxpose.xlu0.b32.start [1/16] (narrow) %v5814_v60, 16 }
 0x582   :  { %5879 = vxpose.xlu1.b32.cont [2/16] (narrow) %v5831_v30, 16  ;;  %5847 = vxpose.xlu0.b32.cont [2/16] (narrow) %v5815_v36, 16 }
 0x586   :  { %5880 = vxpose.xlu1.b32.cont [3/16] (narrow) %v5832_v28, 16  ;;  %5848 = vxpose.xlu0.b32.cont [3/16] (narrow) %v5816_v17, 16 }
 0x58a   :  { %5881 = vxpose.xlu1.b32.cont [4/16] (narrow) %v5833_v50, 16  ;;  %5849 = vxpose.xlu0.b32.cont [4/16] (narrow) %v5817_v14, 16 }
 0x58e   :  { %5882 = vxpose.xlu1.b32.cont [5/16] (narrow) %v5834_v10, 16  ;;  %5850 = vxpose.xlu0.b32.cont [5/16] (narrow) %v5818_v47, 16 }
 0x592   :  { %5883 = vxpose.xlu1.b32.cont [6/16] (narrow) %v5835_v32, 16  ;;  %5851 = vxpose.xlu0.b32.cont [6/16] (narrow) %v5819_v59, 16 }
 0x596   :  { %5884 = vxpose.xlu1.b32.cont [7/16] (narrow) %v5836_v29, 16  ;;  %5852 = vxpose.xlu0.b32.cont [7/16] (narrow) %v5820_v48, 16 }
 0x59a   :  { %5885 = vxpose.xlu1.b32.cont [8/16] (narrow) %v5837_v26, 16  ;;  %5853 = vxpose.xlu0.b32.cont [8/16] (narrow) %v5821_v37, 16 }
 0x59e   :  { %5886 = vxpose.xlu1.b32.cont [9/16] (narrow) %v5838_v52, 16  ;;  %5854 = vxpose.xlu0.b32.cont [9/16] (narrow) %v5822_v53, 16 }
 0x5a2   :  { %5887 = vxpose.xlu1.b32.cont [10/16] (narrow) %v5839_v49, 16  ;;  %5855 = vxpose.xlu0.b32.cont [10/16] (narrow) %v5823_v0, 16 }
 0x5a6   :  { %5888 = vxpose.xlu1.b32.cont [11/16] (narrow) %v5840_v20, 16  ;;  %5856 = vxpose.xlu0.b32.cont [11/16] (narrow) %v5824_v18, 16 }
 0x5aa   :  { %5889 = vxpose.xlu1.b32.cont [12/16] (narrow) %v5841_v21, 16  ;;  %5857 = vxpose.xlu0.b32.cont [12/16] (narrow) %v5825_v1, 16 }
 0x5ae   :  { %5890 = vxpose.xlu1.b32.cont [13/16] (narrow) %v5842_v16, 16  ;;  %5858 = vxpose.xlu0.b32.cont [13/16] (narrow) %v5826_v6, 16 }
 0x5b2   :  { %5891 = vxpose.xlu1.b32.cont [14/16] (narrow) %v5843_v11, 16  ;;  %5859 = vxpose.xlu0.b32.cont [14/16] (narrow) %v5827_v19, 16 }
 0x5b6   :  { %5892 = vxpose.xlu1.b32.cont [15/16] (narrow) %v5844_v34, 16  ;;  %5860 = vxpose.xlu0.b32.cont [15/16] (narrow) %v5828_v42, 16 }
 0x5ba   :  { %5893 = vxpose.xlu1.b32.end [16/16] (narrow) %v5845_v35, 16  ;;  %5861 = vxpose.xlu0.b32.end [16/16] (narrow) %v5829_v5, 16 }
 0x5be   :  { %v5790_v24 = vpop.trf.xlu1  ;;  %v5758_v4 = vpop.trf.xlu0 }
 0x5bf   :  { %5807 = vst [vmem:[#allocation2 + $0x8] sm:$0xff] %v5790_v24  ;;  %5806 = vst [vmem:[#allocation2] sm:$0xff] %v5758_v4 }
 0x5c2   :  { %v5791_v57 = vpop.trf.xlu1  ;;  %v5759_v40 = vpop.trf.xlu0 }
 0x5c3   :  { %5809 = vst [vmem:[#allocation2 + $0x18] sm:$0xff] %v5791_v57  ;;  %5808 = vst [vmem:[#allocation2 + $0x10] sm:$0xff] %v5759_v40 }
 0x5fe   :  { %v5894_v45 = vpop.trf.xlu1  ;;  %v5862_v7 = vpop.trf.xlu0 }
 0x5ff   :  { %5912 = vst [vmem:[#allocation2 + $0x28] sm:$0xff] %v5894_v45  ;;  %5911 = vst [vmem:[#allocation2 + $0x20] sm:$0xff] %v5862_v7 }
 0x602   :  { %v5895_v13 = vpop.trf.xlu1  ;;  %v5863_v56 = vpop.trf.xlu0 }
 0x603   :  { %5914 = vst [vmem:[#allocation2 + $0x38] sm:$0xff] %v5895_v13  ;;  %5913 = vst [vmem:[#allocation2 + $0x30] sm:$0xff] %v5863_v56 }
 0x604   :  { %7923 = shalt.err (!%p7920_p4)
}
 0x605   :  { %s7924_s29 = scalar_lea.hbm %s10921_s7, 1024 }
 0x606   :  { %p7925_p5 = scmp.ne.s32.totalorder %s10921_s7, %s7924_s29  ;;  %p7928_p6 = scmp.lt.u32.totalorder %s7924_s29, %s10921_s7 }
 0x608   :  { %p7930_p7 = pnand %p7928_p6, %p7925_p5 }
 0x60a   :  { %7933 = shalt.err (!%p7930_p7)
}
 0x60b   :  { %s7940_s10 = smov 256   ;;  %s7941_s11 = smov 16  }
 0x60c   :  { %5926 = dma.vmem_to_hbm [thread:$0]  %s5921_s5, 1024, %s10921_s7, [#allocation3], %s7940_s10, %s7940_s10, %s7941_s11  }
 0x60d   :  { %7934 = dma.done.wait [#allocation3], 1024  }
 0x60e   :  { %7935 = vsyncadd [#allocation3], 4294966272 }
 0x60f   :  { %5930 = vsyncpa [#allocation3], 1 }

</bundles_post_ra>
